<compile_context>
chip_gen: v7x
topology: tpu7x:2x2x1
jax: 0.10.0
libtpu: 0.0.40
codegen_flags: <defaults>
</compile_context>

<pallas_src>
import jax
import jax.numpy as jnp
from jax.experimental import pallas as pl
from jax.experimental.pallas import tpu as pltpu


def _zero_halo(ref, h, w, c):
    """Zero the 1-pixel border of a (h+2, w+2, c) padded VMEM scratch."""
    ref[0:1, :, :] = jnp.zeros((1, w + 2, c), jnp.float32)
    ref[h + 1:h + 2, :, :] = jnp.zeros((1, w + 2, c), jnp.float32)
    ref[:, 0:1, :] = jnp.zeros((h + 2, 1, c), jnp.float32)
    ref[:, w + 1:w + 2, :] = jnp.zeros((h + 2, 1, c), jnp.float32)


def _conv3x3(pad_ref, w_ref, tap_ref, h, w, cin, cout):
    """3x3 conv (pad=1, stride=1) on a padded map, kw fused into K.

    pad_ref : (h+2, w+2, cin) padded activations (VMEM)
    w_ref   : (3, 3*cin, cout) weights indexed [kh, kw*cin + cin_idx, cout]
    tap_ref : (h, w, 3*cin)    im2col staging scratch (VMEM)
    returns : (h*w, cout) f32 accumulator
    """
    acc = jnp.zeros((h * w, cout), jnp.float32)
    for kh in range(3):
        # Build the fused (h, w, 3*cin) tap matrix for this kernel row.
        for kw in range(3):
            tap_ref[:, :, kw * cin:(kw + 1) * cin] = \
                pad_ref[kh:kh + h, kw:kw + w, :]
        tap = tap_ref[...].reshape(h * w, 3 * cin)
        acc = acc + jnp.dot(tap, w_ref[kh],
                            preferred_element_type=jnp.float32)
    return acc


def basic_block_kernel(x_ref, w1_ref, s1_ref, b1_ref, w2_ref, s2_ref, b2_ref,
                       out_ref, xpad, midpad, tapbuf):
    # x_ref   : (1, H, W, C)       input image (NHWC, unpadded)
    # w1_ref  : (3, 3*C, C)        conv1 weights, kw fused into K
    # s1/b1   : (1, C)             folded BN1 scale / bias
    # w2_ref  : (3, 3*C, C)        conv2 weights, kw fused into K
    # s2/b2   : (1, C)             folded BN2 scale / bias
    # out_ref : (1, H, W, C)
    # xpad    : (H+2, W+2, C) f32  padded input scratch
    # midpad  : (H+2, W+2, C) f32  padded inter-conv scratch
    # tapbuf  : (H, W, 3*C)   f32  im2col staging scratch
    H, W, C = x_ref.shape[1], x_ref.shape[2], x_ref.shape[3]

    x = x_ref[0].astype(jnp.float32)                      # (H, W, C)

    # ---- padded input: zero 1-px halo, interior = x ----
    _zero_halo(xpad, H, W, C)
    xpad[1:1 + H, 1:1 + W, :] = x

    # ---- conv1 (3x3, pad=1, no bias) -> bn1 -> relu ----
    acc1 = _conv3x3(xpad, w1_ref, tapbuf, H, W, C, C)
    out1 = jnp.maximum(acc1 * s1_ref[0] + b1_ref[0], 0.0)  # (H*W, C)

    # ---- padded intermediate map ----
    _zero_halo(midpad, H, W, C)
    midpad[1:1 + H, 1:1 + W, :] = out1.reshape(H, W, C)

    # ---- conv2 -> bn2 -> + residual -> relu ----
    acc2 = _conv3x3(midpad, w2_ref, tapbuf, H, W, C, C)
    out2 = acc2 * s2_ref[0] + b2_ref[0]                    # (H*W, C)
    y = jnp.maximum(out2 + x.reshape(H * W, C), 0.0)
    out_ref[0] = y.reshape(H, W, C).astype(out_ref.dtype)


def basic_block(x_nhwc, w1, g1, be1, m1, v1, w2, g2, be2, m2, v2, eps=1e-5):
    """x_nhwc: (N,H,W,C);  w1,w2: PyTorch-layout (C_out, C_in, 3, 3)."""
    N, H, W, C = x_nhwc.shape
    Cout, Cin = w1.shape[0], w1.shape[1]
    assert (Cin, Cout) == (C, C), "downsample=None requires inplanes == planes"

    # fold BN (eval mode, running stats) into per-channel scale/bias
    s1 = g1 / jnp.sqrt(v1 + eps)
    b1 = be1 - m1 * s1
    s2 = g2 / jnp.sqrt(v2 + eps)
    b2 = be2 - m2 * s2

    # (Cout, Cin, 3, 3) -> (kh, kw*Cin + cin, Cout): kw fused into contraction
    w1_f = jnp.transpose(w1, (2, 3, 1, 0)).reshape(3, 3 * C, Cout)
    w2_f = jnp.transpose(w2, (2, 3, 1, 0)).reshape(3, 3 * Cout, Cout)

    grid_spec = pltpu.PrefetchScalarGridSpec(
        num_scalar_prefetch=0,
        grid=(N,),
        in_specs=[
            pl.BlockSpec((1, H, W, C), lambda n: (n, 0, 0, 0)),
            pl.BlockSpec((3, 3 * C, Cout), lambda n: (0, 0, 0)),
            pl.BlockSpec((1, Cout), lambda n: (0, 0)),
            pl.BlockSpec((1, Cout), lambda n: (0, 0)),
            pl.BlockSpec((3, 3 * Cout, Cout), lambda n: (0, 0, 0)),
            pl.BlockSpec((1, Cout), lambda n: (0, 0)),
            pl.BlockSpec((1, Cout), lambda n: (0, 0)),
        ],
        out_specs=pl.BlockSpec((1, H, W, Cout), lambda n: (n, 0, 0, 0)),
        scratch_shapes=[
            pltpu.VMEM((H + 2, W + 2, C), jnp.float32),      # padded input
            pltpu.VMEM((H + 2, W + 2, Cout), jnp.float32),   # padded conv1 out
            pltpu.VMEM((H, W, 3 * Cout), jnp.float32),       # im2col staging
        ],
    )

    return pl.pallas_call(
        basic_block_kernel,
        out_shape=jax.ShapeDtypeStruct((N, H, W, Cout), x_nhwc.dtype),
        grid_spec=grid_spec,
        compiler_params=pltpu.CompilerParams(
            dimension_semantics=("parallel",)),
    )(x_nhwc, w1_f, s1.reshape(1, Cout), b1.reshape(1, Cout),
      w2_f, s2.reshape(1, Cout), b2.reshape(1, Cout))


def _reference(x_nhwc, w1, g1, be1, m1, v1, w2, g2, be2, m2, v2, eps=1e-5):
    """Pure-JAX reference (NHWC conv via lax.conv_general_dilated)."""
    def conv(x, w):  # w in (Cout, Cin, 3, 3)
        return jax.lax.conv_general_dilated(
            x, jnp.transpose(w, (2, 3, 1, 0)), window_strides=(1, 1),
            padding="SAME", dimension_numbers=("NHWC", "HWIO", "NHWC"))

    def bn(x, g, b, m, v):
        return (x - m) * (g / jnp.sqrt(v + eps)) + b

    out = jnp.maximum(bn(conv(x_nhwc, w1), g1, be1, m1, v1), 0.0)
    out = bn(conv(out, w2), g2, be2, m2, v2)
    return jnp.maximum(out + x_nhwc, 0.0)


if __name__ == "__main__":
    N, C, H, W = 2, 8, 16, 16   # inplanes == planes (downsample=None)
    key = jax.random.PRNGKey(0)
    keys = jax.random.split(key, 12)

    # input in NCHW (as PyTorch would supply), converted to NHWC for the kernel
    x_nchw = jax.random.normal(keys[0], (N, C, H, W), jnp.float32)
    x_nhwc = jnp.transpose(x_nchw, (0, 2, 3, 1))

    # deterministic synthetic parameters
    w1 = 0.1 * jax.random.normal(keys[1], (C, C, 3, 3), jnp.float32)
    w2 = 0.1 * jax.random.normal(keys[2], (C, C, 3, 3), jnp.float32)
    g1 = 1.0 + 0.1 * jax.random.normal(keys[3], (C,), jnp.float32)
    be1 = 0.1 * jax.random.normal(keys[4], (C,), jnp.float32)
    m1 = 0.1 * jax.random.normal(keys[5], (C,), jnp.float32)
    v1 = jnp.abs(1.0 + 0.1 * jax.random.normal(keys[6], (C,), jnp.float32))
    g2 = 1.0 + 0.1 * jax.random.normal(keys[7], (C,), jnp.float32)
    be2 = 0.1 * jax.random.normal(keys[8], (C,), jnp.float32)
    m2 = 0.1 * jax.random.normal(keys[9], (C,), jnp.float32)
    v2 = jnp.abs(1.0 + 0.1 * jax.random.normal(keys[10], (C,), jnp.float32))

    out = basic_block(x_nhwc, w1, g1, be1, m1, v1, w2, g2, be2, m2, v2)
    out = jax.block_until_ready(out)

    ref = _reference(x_nhwc, w1, g1, be1, m1, v1, w2, g2, be2, m2, v2)
    assert out.shape == (N, H, W, C)
    assert jnp.allclose(out, ref, atol=1e-3, rtol=1e-3), \
        f"max abs err {jnp.max(jnp.abs(out - ref))}"

    print("KERNEL_OK")
</pallas_src>

<mosaic_0001>
module attributes {stable_mosaic.version = 11 : i64} {
  func.func @basic_block_kernel(%arg0: i32, %arg1: memref<1x16x16x8xf32, #tpu.memory_space<vmem>>, %arg2: memref<3x24x8xf32, #tpu.memory_space<vmem>>, %arg3: memref<1x8xf32, #tpu.memory_space<vmem>>, %arg4: memref<1x8xf32, #tpu.memory_space<vmem>>, %arg5: memref<3x24x8xf32, #tpu.memory_space<vmem>>, %arg6: memref<1x8xf32, #tpu.memory_space<vmem>>, %arg7: memref<1x8xf32, #tpu.memory_space<vmem>>, %arg8: memref<1x16x16x8xf32, #tpu.memory_space<vmem>>, %arg9: memref<18x18x8xf32, #tpu.memory_space<vmem>>, %arg10: memref<18x18x8xf32, #tpu.memory_space<vmem>>, %arg11: memref<16x16x24xf32, #tpu.memory_space<vmem>>) attributes {dimension_semantics = [#tpu.dimension_semantics<parallel>], iteration_bounds = array<i64: 2>, scalar_prefetch = 0 : i64, scratch_operands = 3 : i64, tpu.core_type = #tpu.core_type<tc>, window_params = [{transform_indices = @transform_0, window_bounds = array<i64: 1, 16, 16, 8>}, {pipeline_mode = #tpu.pipeline_mode<synchronous>, transform_indices = @transform_1, window_bounds = array<i64: 3, 24, 8>}, {pipeline_mode = #tpu.pipeline_mode<synchronous>, transform_indices = @transform_2, window_bounds = array<i64: 1, 8>}, {pipeline_mode = #tpu.pipeline_mode<synchronous>, transform_indices = @transform_3, window_bounds = array<i64: 1, 8>}, {pipeline_mode = #tpu.pipeline_mode<synchronous>, transform_indices = @transform_4, window_bounds = array<i64: 3, 24, 8>}, {pipeline_mode = #tpu.pipeline_mode<synchronous>, transform_indices = @transform_5, window_bounds = array<i64: 1, 8>}, {pipeline_mode = #tpu.pipeline_mode<synchronous>, transform_indices = @transform_6, window_bounds = array<i64: 1, 8>}, {transform_indices = @transform_7, window_bounds = array<i64: 1, 16, 16, 8>}]} {
    %c0 = arith.constant 0 : index
    %c0_0 = arith.constant 0 : index
    %c0_1 = arith.constant 0 : index
    %c0_2 = arith.constant 0 : index
    %0 = vector.load %arg1[%c0, %c0_0, %c0_1, %c0_2] : memref<1x16x16x8xf32, #tpu.memory_space<vmem>>, vector<1x16x16x8xf32>
    %1 = vector.shape_cast %0 : vector<1x16x16x8xf32> to vector<16x16x8xf32>
    %cst = arith.constant 0.000000e+00 : f32
    %2 = vector.broadcast %cst : f32 to vector<1x18x8xf32>
    %c0_3 = arith.constant 0 : index
    %c0_4 = arith.constant 0 : index
    %c0_5 = arith.constant 0 : index
    %3 = vector.load %arg9[%c0_3, %c0_4, %c0_5] : memref<18x18x8xf32, #tpu.memory_space<vmem>>, vector<1x18x8xf32>
    tpu.vector_store %arg9[%c0_3, %c0_4, %c0_5], %2 {strides = array<i32>} : memref<18x18x8xf32, #tpu.memory_space<vmem>>, vector<1x18x8xf32>,
    %cst_6 = arith.constant 0.000000e+00 : f32
    %4 = vector.broadcast %cst_6 : f32 to vector<1x18x8xf32>
    %c17 = arith.constant 17 : index
    %c0_7 = arith.constant 0 : index
    %c0_8 = arith.constant 0 : index
    %5 = vector.load %arg9[%c17, %c0_7, %c0_8] : memref<18x18x8xf32, #tpu.memory_space<vmem>>, vector<1x18x8xf32>
    tpu.vector_store %arg9[%c17, %c0_7, %c0_8], %4 {strides = array<i32>} : memref<18x18x8xf32, #tpu.memory_space<vmem>>, vector<1x18x8xf32>,
    %cst_9 = arith.constant 0.000000e+00 : f32
    %6 = vector.broadcast %cst_9 : f32 to vector<18x1x8xf32>
    %c0_10 = arith.constant 0 : index
    %c0_11 = arith.constant 0 : index
    %c0_12 = arith.constant 0 : index
    %7 = vector.load %arg9[%c0_10, %c0_11, %c0_12] : memref<18x18x8xf32, #tpu.memory_space<vmem>>, vector<18x1x8xf32>
    tpu.vector_store %arg9[%c0_10, %c0_11, %c0_12], %6 {strides = array<i32>} : memref<18x18x8xf32, #tpu.memory_space<vmem>>, vector<18x1x8xf32>,
    %cst_13 = arith.constant 0.000000e+00 : f32
    %8 = vector.broadcast %cst_13 : f32 to vector<18x1x8xf32>
    %c0_14 = arith.constant 0 : index
    %c17_15 = arith.constant 17 : index
    %c0_16 = arith.constant 0 : index
    %9 = vector.load %arg9[%c0_14, %c17_15, %c0_16] : memref<18x18x8xf32, #tpu.memory_space<vmem>>, vector<18x1x8xf32>
    tpu.vector_store %arg9[%c0_14, %c17_15, %c0_16], %8 {strides = array<i32>} : memref<18x18x8xf32, #tpu.memory_space<vmem>>, vector<18x1x8xf32>,
    %c1 = arith.constant 1 : index
    %c1_17 = arith.constant 1 : index
    %c0_18 = arith.constant 0 : index
    %10 = vector.load %arg9[%c1, %c1_17, %c0_18] : memref<18x18x8xf32, #tpu.memory_space<vmem>>, vector<16x16x8xf32>
    tpu.vector_store %arg9[%c1, %c1_17, %c0_18], %1 {strides = array<i32>} : memref<18x18x8xf32, #tpu.memory_space<vmem>>, vector<16x16x8xf32>,
    %cst_19 = arith.constant 0.000000e+00 : f32
    %11 = vector.broadcast %cst_19 : f32 to vector<256x8xf32>
    %c0_20 = arith.constant 0 : index
    %c0_21 = arith.constant 0 : index
    %c0_22 = arith.constant 0 : index
    %12 = vector.load %arg9[%c0_20, %c0_21, %c0_22] : memref<18x18x8xf32, #tpu.memory_space<vmem>>, vector<16x16x8xf32>
    %c0_23 = arith.constant 0 : index
    %c0_24 = arith.constant 0 : index
    %c0_25 = arith.constant 0 : index
    %13 = vector.load %arg11[%c0_23, %c0_24, %c0_25] : memref<16x16x24xf32, #tpu.memory_space<vmem>>, vector<16x16x8xf32>
    tpu.vector_store %arg11[%c0_23, %c0_24, %c0_25], %12 {strides = array<i32>} : memref<16x16x24xf32, #tpu.memory_space<vmem>>, vector<16x16x8xf32>,
    %c0_26 = arith.constant 0 : index
    %c1_27 = arith.constant 1 : index
    %c0_28 = arith.constant 0 : index
    %14 = vector.load %arg9[%c0_26, %c1_27, %c0_28] : memref<18x18x8xf32, #tpu.memory_space<vmem>>, vector<16x16x8xf32>
    %c0_29 = arith.constant 0 : index
    %c0_30 = arith.constant 0 : index
    %c8 = arith.constant 8 : index
    %15 = vector.load %arg11[%c0_29, %c0_30, %c8] : memref<16x16x24xf32, #tpu.memory_space<vmem>>, vector<16x16x8xf32>
    tpu.vector_store %arg11[%c0_29, %c0_30, %c8], %14 {strides = array<i32>} : memref<16x16x24xf32, #tpu.memory_space<vmem>>, vector<16x16x8xf32>,
    %c0_31 = arith.constant 0 : index
    %c2 = arith.constant 2 : index
    %c0_32 = arith.constant 0 : index
    %16 = vector.load %arg9[%c0_31, %c2, %c0_32] : memref<18x18x8xf32, #tpu.memory_space<vmem>>, vector<16x16x8xf32>
    %c0_33 = arith.constant 0 : index
    %c0_34 = arith.constant 0 : index
    %c16 = arith.constant 16 : index
    %17 = vector.load %arg11[%c0_33, %c0_34, %c16] : memref<16x16x24xf32, #tpu.memory_space<vmem>>, vector<16x16x8xf32>
    tpu.vector_store %arg11[%c0_33, %c0_34, %c16], %16 {strides = array<i32>} : memref<16x16x24xf32, #tpu.memory_space<vmem>>, vector<16x16x8xf32>,
    %c0_35 = arith.constant 0 : index
    %c0_36 = arith.constant 0 : index
    %c0_37 = arith.constant 0 : index
    %18 = vector.load %arg11[%c0_35, %c0_36, %c0_37] : memref<16x16x24xf32, #tpu.memory_space<vmem>>, vector<16x16x24xf32>
    %19 = vector.shape_cast %18 : vector<16x16x24xf32> to vector<256x24xf32>
    %c0_38 = arith.constant 0 : index
    %c0_39 = arith.constant 0 : index
    %c0_40 = arith.constant 0 : index
    %20 = vector.load %arg2[%c0_38, %c0_39, %c0_40] : memref<3x24x8xf32, #tpu.memory_space<vmem>>, vector<1x24x8xf32>
    %21 = vector.shape_cast %20 : vector<1x24x8xf32> to vector<24x8xf32>
    %cst_41 = arith.constant dense<0.000000e+00> : vector<256x8xf32>
    %22 = tpu.matmul %19, %21, %cst_41 {dimension_numbers = #tpu.dot_dimension_numbers<[1], [0], [0], [1], [0, 0, 1, 1], [], []>} : vector<256x24xf32>, vector<24x8xf32>, vector<256x8xf32> -> vector<256x8xf32>
    %23 = arith.addf %11, %22 : vector<256x8xf32>
    %c1_42 = arith.constant 1 : index
    %c0_43 = arith.constant 0 : index
    %c0_44 = arith.constant 0 : index
    %24 = vector.load %arg9[%c1_42, %c0_43, %c0_44] : memref<18x18x8xf32, #tpu.memory_space<vmem>>, vector<16x16x8xf32>
    %c0_45 = arith.constant 0 : index
    %c0_46 = arith.constant 0 : index
    %c0_47 = arith.constant 0 : index
    %25 = vector.load %arg11[%c0_45, %c0_46, %c0_47] : memref<16x16x24xf32, #tpu.memory_space<vmem>>, vector<16x16x8xf32>
    tpu.vector_store %arg11[%c0_45, %c0_46, %c0_47], %24 {strides = array<i32>} : memref<16x16x24xf32, #tpu.memory_space<vmem>>, vector<16x16x8xf32>,
    %c1_48 = arith.constant 1 : index
    %c1_49 = arith.constant 1 : index
    %c0_50 = arith.constant 0 : index
    %26 = vector.load %arg9[%c1_48, %c1_49, %c0_50] : memref<18x18x8xf32, #tpu.memory_space<vmem>>, vector<16x16x8xf32>
    %c0_51 = arith.constant 0 : index
    %c0_52 = arith.constant 0 : index
    %c8_53 = arith.constant 8 : index
    %27 = vector.load %arg11[%c0_51, %c0_52, %c8_53] : memref<16x16x24xf32, #tpu.memory_space<vmem>>, vector<16x16x8xf32>
    tpu.vector_store %arg11[%c0_51, %c0_52, %c8_53], %26 {strides = array<i32>} : memref<16x16x24xf32, #tpu.memory_space<vmem>>, vector<16x16x8xf32>,
    %c1_54 = arith.constant 1 : index
    %c2_55 = arith.constant 2 : index
    %c0_56 = arith.constant 0 : index
    %28 = vector.load %arg9[%c1_54, %c2_55, %c0_56] : memref<18x18x8xf32, #tpu.memory_space<vmem>>, vector<16x16x8xf32>
    %c0_57 = arith.constant 0 : index
    %c0_58 = arith.constant 0 : index
    %c16_59 = arith.constant 16 : index
    %29 = vector.load %arg11[%c0_57, %c0_58, %c16_59] : memref<16x16x24xf32, #tpu.memory_space<vmem>>, vector<16x16x8xf32>
    tpu.vector_store %arg11[%c0_57, %c0_58, %c16_59], %28 {strides = array<i32>} : memref<16x16x24xf32, #tpu.memory_space<vmem>>, vector<16x16x8xf32>,
    %c0_60 = arith.constant 0 : index
    %c0_61 = arith.constant 0 : index
    %c0_62 = arith.constant 0 : index
    %30 = vector.load %arg11[%c0_60, %c0_61, %c0_62] : memref<16x16x24xf32, #tpu.memory_space<vmem>>, vector<16x16x24xf32>
    %31 = vector.shape_cast %30 : vector<16x16x24xf32> to vector<256x24xf32>
    %c1_63 = arith.constant 1 : index
    %c0_64 = arith.constant 0 : index
    %c0_65 = arith.constant 0 : index
    %32 = vector.load %arg2[%c1_63, %c0_64, %c0_65] : memref<3x24x8xf32, #tpu.memory_space<vmem>>, vector<1x24x8xf32>
    %33 = vector.shape_cast %32 : vector<1x24x8xf32> to vector<24x8xf32>
    %cst_66 = arith.constant dense<0.000000e+00> : vector<256x8xf32>
    %34 = tpu.matmul %31, %33, %cst_66 {dimension_numbers = #tpu.dot_dimension_numbers<[1], [0], [0], [1], [0, 0, 1, 1], [], []>} : vector<256x24xf32>, vector<24x8xf32>, vector<256x8xf32> -> vector<256x8xf32>
    %35 = arith.addf %23, %34 : vector<256x8xf32>
    %c2_67 = arith.constant 2 : index
    %c0_68 = arith.constant 0 : index
    %c0_69 = arith.constant 0 : index
    %36 = vector.load %arg9[%c2_67, %c0_68, %c0_69] : memref<18x18x8xf32, #tpu.memory_space<vmem>>, vector<16x16x8xf32>
    %c0_70 = arith.constant 0 : index
    %c0_71 = arith.constant 0 : index
    %c0_72 = arith.constant 0 : index
    %37 = vector.load %arg11[%c0_70, %c0_71, %c0_72] : memref<16x16x24xf32, #tpu.memory_space<vmem>>, vector<16x16x8xf32>
    tpu.vector_store %arg11[%c0_70, %c0_71, %c0_72], %36 {strides = array<i32>} : memref<16x16x24xf32, #tpu.memory_space<vmem>>, vector<16x16x8xf32>,
    %c2_73 = arith.constant 2 : index
    %c1_74 = arith.constant 1 : index
    %c0_75 = arith.constant 0 : index
    %38 = vector.load %arg9[%c2_73, %c1_74, %c0_75] : memref<18x18x8xf32, #tpu.memory_space<vmem>>, vector<16x16x8xf32>
    %c0_76 = arith.constant 0 : index
    %c0_77 = arith.constant 0 : index
    %c8_78 = arith.constant 8 : index
    %39 = vector.load %arg11[%c0_76, %c0_77, %c8_78] : memref<16x16x24xf32, #tpu.memory_space<vmem>>, vector<16x16x8xf32>
    tpu.vector_store %arg11[%c0_76, %c0_77, %c8_78], %38 {strides = array<i32>} : memref<16x16x24xf32, #tpu.memory_space<vmem>>, vector<16x16x8xf32>,
    %c2_79 = arith.constant 2 : index
    %c2_80 = arith.constant 2 : index
    %c0_81 = arith.constant 0 : index
    %40 = vector.load %arg9[%c2_79, %c2_80, %c0_81] : memref<18x18x8xf32, #tpu.memory_space<vmem>>, vector<16x16x8xf32>
    %c0_82 = arith.constant 0 : index
    %c0_83 = arith.constant 0 : index
    %c16_84 = arith.constant 16 : index
    %41 = vector.load %arg11[%c0_82, %c0_83, %c16_84] : memref<16x16x24xf32, #tpu.memory_space<vmem>>, vector<16x16x8xf32>
    tpu.vector_store %arg11[%c0_82, %c0_83, %c16_84], %40 {strides = array<i32>} : memref<16x16x24xf32, #tpu.memory_space<vmem>>, vector<16x16x8xf32>,
    %c0_85 = arith.constant 0 : index
    %c0_86 = arith.constant 0 : index
    %c0_87 = arith.constant 0 : index
    %42 = vector.load %arg11[%c0_85, %c0_86, %c0_87] : memref<16x16x24xf32, #tpu.memory_space<vmem>>, vector<16x16x24xf32>
    %43 = vector.shape_cast %42 : vector<16x16x24xf32> to vector<256x24xf32>
    %c2_88 = arith.constant 2 : index
    %c0_89 = arith.constant 0 : index
    %c0_90 = arith.constant 0 : index
    %44 = vector.load %arg2[%c2_88, %c0_89, %c0_90] : memref<3x24x8xf32, #tpu.memory_space<vmem>>, vector<1x24x8xf32>
    %45 = vector.shape_cast %44 : vector<1x24x8xf32> to vector<24x8xf32>
    %cst_91 = arith.constant dense<0.000000e+00> : vector<256x8xf32>
    %46 = tpu.matmul %43, %45, %cst_91 {dimension_numbers = #tpu.dot_dimension_numbers<[1], [0], [0], [1], [0, 0, 1, 1], [], []>} : vector<256x24xf32>, vector<24x8xf32>, vector<256x8xf32> -> vector<256x8xf32>
    %47 = arith.addf %35, %46 : vector<256x8xf32>
    %c0_92 = arith.constant 0 : index
    %c0_93 = arith.constant 0 : index
    %48 = vector.load %arg3[%c0_92, %c0_93] : memref<1x8xf32, #tpu.memory_space<vmem>>, vector<1x8xf32>
    %49 = vector.shape_cast %48 : vector<1x8xf32> to vector<8xf32>
    %50 = vector.shape_cast %49 : vector<8xf32> to vector<1x8xf32>
    %51 = vector.broadcast %50 : vector<1x8xf32> to vector<256x8xf32>
    %52 = arith.mulf %47, %51 : vector<256x8xf32>
    %c0_94 = arith.constant 0 : index
    %c0_95 = arith.constant 0 : index
    %53 = vector.load %arg4[%c0_94, %c0_95] : memref<1x8xf32, #tpu.memory_space<vmem>>, vector<1x8xf32>
    %54 = vector.shape_cast %53 : vector<1x8xf32> to vector<8xf32>
    %55 = vector.shape_cast %54 : vector<8xf32> to vector<1x8xf32>
    %56 = vector.broadcast %55 : vector<1x8xf32> to vector<256x8xf32>
    %57 = arith.addf %52, %56 : vector<256x8xf32>
    %cst_96 = arith.constant 0.000000e+00 : f32
    %58 = vector.broadcast %cst_96 : f32 to vector<256x8xf32>
    %59 = arith.maximumf %57, %58 : vector<256x8xf32>
    %cst_97 = arith.constant 0.000000e+00 : f32
    %60 = vector.broadcast %cst_97 : f32 to vector<1x18x8xf32>
    %c0_98 = arith.constant 0 : index
    %c0_99 = arith.constant 0 : index
    %c0_100 = arith.constant 0 : index
    %61 = vector.load %arg10[%c0_98, %c0_99, %c0_100] : memref<18x18x8xf32, #tpu.memory_space<vmem>>, vector<1x18x8xf32>
    tpu.vector_store %arg10[%c0_98, %c0_99, %c0_100], %60 {strides = array<i32>} : memref<18x18x8xf32, #tpu.memory_space<vmem>>, vector<1x18x8xf32>,
    %cst_101 = arith.constant 0.000000e+00 : f32
    %62 = vector.broadcast %cst_101 : f32 to vector<1x18x8xf32>
    %c17_102 = arith.constant 17 : index
    %c0_103 = arith.constant 0 : index
    %c0_104 = arith.constant 0 : index
    %63 = vector.load %arg10[%c17_102, %c0_103, %c0_104] : memref<18x18x8xf32, #tpu.memory_space<vmem>>, vector<1x18x8xf32>
    tpu.vector_store %arg10[%c17_102, %c0_103, %c0_104], %62 {strides = array<i32>} : memref<18x18x8xf32, #tpu.memory_space<vmem>>, vector<1x18x8xf32>,
    %cst_105 = arith.constant 0.000000e+00 : f32
    %64 = vector.broadcast %cst_105 : f32 to vector<18x1x8xf32>
    %c0_106 = arith.constant 0 : index
    %c0_107 = arith.constant 0 : index
    %c0_108 = arith.constant 0 : index
    %65 = vector.load %arg10[%c0_106, %c0_107, %c0_108] : memref<18x18x8xf32, #tpu.memory_space<vmem>>, vector<18x1x8xf32>
    tpu.vector_store %arg10[%c0_106, %c0_107, %c0_108], %64 {strides = array<i32>} : memref<18x18x8xf32, #tpu.memory_space<vmem>>, vector<18x1x8xf32>,
    %cst_109 = arith.constant 0.000000e+00 : f32
    %66 = vector.broadcast %cst_109 : f32 to vector<18x1x8xf32>
    %c0_110 = arith.constant 0 : index
    %c17_111 = arith.constant 17 : index
    %c0_112 = arith.constant 0 : index
    %67 = vector.load %arg10[%c0_110, %c17_111, %c0_112] : memref<18x18x8xf32, #tpu.memory_space<vmem>>, vector<18x1x8xf32>
    tpu.vector_store %arg10[%c0_110, %c17_111, %c0_112], %66 {strides = array<i32>} : memref<18x18x8xf32, #tpu.memory_space<vmem>>, vector<18x1x8xf32>,
    %68 = vector.shape_cast %59 : vector<256x8xf32> to vector<16x16x8xf32>
    %c1_113 = arith.constant 1 : index
    %c1_114 = arith.constant 1 : index
    %c0_115 = arith.constant 0 : index
    %69 = vector.load %arg10[%c1_113, %c1_114, %c0_115] : memref<18x18x8xf32, #tpu.memory_space<vmem>>, vector<16x16x8xf32>
    tpu.vector_store %arg10[%c1_113, %c1_114, %c0_115], %68 {strides = array<i32>} : memref<18x18x8xf32, #tpu.memory_space<vmem>>, vector<16x16x8xf32>,
    %cst_116 = arith.constant 0.000000e+00 : f32
    %70 = vector.broadcast %cst_116 : f32 to vector<256x8xf32>
    %c0_117 = arith.constant 0 : index
    %c0_118 = arith.constant 0 : index
    %c0_119 = arith.constant 0 : index
    %71 = vector.load %arg10[%c0_117, %c0_118, %c0_119] : memref<18x18x8xf32, #tpu.memory_space<vmem>>, vector<16x16x8xf32>
    %c0_120 = arith.constant 0 : index
    %c0_121 = arith.constant 0 : index
    %c0_122 = arith.constant 0 : index
    %72 = vector.load %arg11[%c0_120, %c0_121, %c0_122] : memref<16x16x24xf32, #tpu.memory_space<vmem>>, vector<16x16x8xf32>
    tpu.vector_store %arg11[%c0_120, %c0_121, %c0_122], %71 {strides = array<i32>} : memref<16x16x24xf32, #tpu.memory_space<vmem>>, vector<16x16x8xf32>,
    %c0_123 = arith.constant 0 : index
    %c1_124 = arith.constant 1 : index
    %c0_125 = arith.constant 0 : index
    %73 = vector.load %arg10[%c0_123, %c1_124, %c0_125] : memref<18x18x8xf32, #tpu.memory_space<vmem>>, vector<16x16x8xf32>
    %c0_126 = arith.constant 0 : index
    %c0_127 = arith.constant 0 : index
    %c8_128 = arith.constant 8 : index
    %74 = vector.load %arg11[%c0_126, %c0_127, %c8_128] : memref<16x16x24xf32, #tpu.memory_space<vmem>>, vector<16x16x8xf32>
    tpu.vector_store %arg11[%c0_126, %c0_127, %c8_128], %73 {strides = array<i32>} : memref<16x16x24xf32, #tpu.memory_space<vmem>>, vector<16x16x8xf32>,
    %c0_129 = arith.constant 0 : index
    %c2_130 = arith.constant 2 : index
    %c0_131 = arith.constant 0 : index
    %75 = vector.load %arg10[%c0_129, %c2_130, %c0_131] : memref<18x18x8xf32, #tpu.memory_space<vmem>>, vector<16x16x8xf32>
    %c0_132 = arith.constant 0 : index
    %c0_133 = arith.constant 0 : index
    %c16_134 = arith.constant 16 : index
    %76 = vector.load %arg11[%c0_132, %c0_133, %c16_134] : memref<16x16x24xf32, #tpu.memory_space<vmem>>, vector<16x16x8xf32>
    tpu.vector_store %arg11[%c0_132, %c0_133, %c16_134], %75 {strides = array<i32>} : memref<16x16x24xf32, #tpu.memory_space<vmem>>, vector<16x16x8xf32>,
    %c0_135 = arith.constant 0 : index
    %c0_136 = arith.constant 0 : index
    %c0_137 = arith.constant 0 : index
    %77 = vector.load %arg11[%c0_135, %c0_136, %c0_137] : memref<16x16x24xf32, #tpu.memory_space<vmem>>, vector<16x16x24xf32>
    %78 = vector.shape_cast %77 : vector<16x16x24xf32> to vector<256x24xf32>
    %c0_138 = arith.constant 0 : index
    %c0_139 = arith.constant 0 : index
    %c0_140 = arith.constant 0 : index
    %79 = vector.load %arg5[%c0_138, %c0_139, %c0_140] : memref<3x24x8xf32, #tpu.memory_space<vmem>>, vector<1x24x8xf32>
    %80 = vector.shape_cast %79 : vector<1x24x8xf32> to vector<24x8xf32>
    %cst_141 = arith.constant dense<0.000000e+00> : vector<256x8xf32>
    %81 = tpu.matmul %78, %80, %cst_141 {dimension_numbers = #tpu.dot_dimension_numbers<[1], [0], [0], [1], [0, 0, 1, 1], [], []>} : vector<256x24xf32>, vector<24x8xf32>, vector<256x8xf32> -> vector<256x8xf32>
    %82 = arith.addf %70, %81 : vector<256x8xf32>
    %c1_142 = arith.constant 1 : index
    %c0_143 = arith.constant 0 : index
    %c0_144 = arith.constant 0 : index
    %83 = vector.load %arg10[%c1_142, %c0_143, %c0_144] : memref<18x18x8xf32, #tpu.memory_space<vmem>>, vector<16x16x8xf32>
    %c0_145 = arith.constant 0 : index
    %c0_146 = arith.constant 0 : index
    %c0_147 = arith.constant 0 : index
    %84 = vector.load %arg11[%c0_145, %c0_146, %c0_147] : memref<16x16x24xf32, #tpu.memory_space<vmem>>, vector<16x16x8xf32>
    tpu.vector_store %arg11[%c0_145, %c0_146, %c0_147], %83 {strides = array<i32>} : memref<16x16x24xf32, #tpu.memory_space<vmem>>, vector<16x16x8xf32>,
    %c1_148 = arith.constant 1 : index
    %c1_149 = arith.constant 1 : index
    %c0_150 = arith.constant 0 : index
    %85 = vector.load %arg10[%c1_148, %c1_149, %c0_150] : memref<18x18x8xf32, #tpu.memory_space<vmem>>, vector<16x16x8xf32>
    %c0_151 = arith.constant 0 : index
    %c0_152 = arith.constant 0 : index
    %c8_153 = arith.constant 8 : index
    %86 = vector.load %arg11[%c0_151, %c0_152, %c8_153] : memref<16x16x24xf32, #tpu.memory_space<vmem>>, vector<16x16x8xf32>
    tpu.vector_store %arg11[%c0_151, %c0_152, %c8_153], %85 {strides = array<i32>} : memref<16x16x24xf32, #tpu.memory_space<vmem>>, vector<16x16x8xf32>,
    %c1_154 = arith.constant 1 : index
    %c2_155 = arith.constant 2 : index
    %c0_156 = arith.constant 0 : index
    %87 = vector.load %arg10[%c1_154, %c2_155, %c0_156] : memref<18x18x8xf32, #tpu.memory_space<vmem>>, vector<16x16x8xf32>
    %c0_157 = arith.constant 0 : index
    %c0_158 = arith.constant 0 : index
    %c16_159 = arith.constant 16 : index
    %88 = vector.load %arg11[%c0_157, %c0_158, %c16_159] : memref<16x16x24xf32, #tpu.memory_space<vmem>>, vector<16x16x8xf32>
    tpu.vector_store %arg11[%c0_157, %c0_158, %c16_159], %87 {strides = array<i32>} : memref<16x16x24xf32, #tpu.memory_space<vmem>>, vector<16x16x8xf32>,
    %c0_160 = arith.constant 0 : index
    %c0_161 = arith.constant 0 : index
    %c0_162 = arith.constant 0 : index
    %89 = vector.load %arg11[%c0_160, %c0_161, %c0_162] : memref<16x16x24xf32, #tpu.memory_space<vmem>>, vector<16x16x24xf32>
    %90 = vector.shape_cast %89 : vector<16x16x24xf32> to vector<256x24xf32>
    %c1_163 = arith.constant 1 : index
    %c0_164 = arith.constant 0 : index
    %c0_165 = arith.constant 0 : index
    %91 = vector.load %arg5[%c1_163, %c0_164, %c0_165] : memref<3x24x8xf32, #tpu.memory_space<vmem>>, vector<1x24x8xf32>
    %92 = vector.shape_cast %91 : vector<1x24x8xf32> to vector<24x8xf32>
    %cst_166 = arith.constant dense<0.000000e+00> : vector<256x8xf32>
    %93 = tpu.matmul %90, %92, %cst_166 {dimension_numbers = #tpu.dot_dimension_numbers<[1], [0], [0], [1], [0, 0, 1, 1], [], []>} : vector<256x24xf32>, vector<24x8xf32>, vector<256x8xf32> -> vector<256x8xf32>
    %94 = arith.addf %82, %93 : vector<256x8xf32>
    %c2_167 = arith.constant 2 : index
    %c0_168 = arith.constant 0 : index
    %c0_169 = arith.constant 0 : index
    %95 = vector.load %arg10[%c2_167, %c0_168, %c0_169] : memref<18x18x8xf32, #tpu.memory_space<vmem>>, vector<16x16x8xf32>
    %c0_170 = arith.constant 0 : index
    %c0_171 = arith.constant 0 : index
    %c0_172 = arith.constant 0 : index
    %96 = vector.load %arg11[%c0_170, %c0_171, %c0_172] : memref<16x16x24xf32, #tpu.memory_space<vmem>>, vector<16x16x8xf32>
    tpu.vector_store %arg11[%c0_170, %c0_171, %c0_172], %95 {strides = array<i32>} : memref<16x16x24xf32, #tpu.memory_space<vmem>>, vector<16x16x8xf32>,
    %c2_173 = arith.constant 2 : index
    %c1_174 = arith.constant 1 : index
    %c0_175 = arith.constant 0 : index
    %97 = vector.load %arg10[%c2_173, %c1_174, %c0_175] : memref<18x18x8xf32, #tpu.memory_space<vmem>>, vector<16x16x8xf32>
    %c0_176 = arith.constant 0 : index
    %c0_177 = arith.constant 0 : index
    %c8_178 = arith.constant 8 : index
    %98 = vector.load %arg11[%c0_176, %c0_177, %c8_178] : memref<16x16x24xf32, #tpu.memory_space<vmem>>, vector<16x16x8xf32>
    tpu.vector_store %arg11[%c0_176, %c0_177, %c8_178], %97 {strides = array<i32>} : memref<16x16x24xf32, #tpu.memory_space<vmem>>, vector<16x16x8xf32>,
    %c2_179 = arith.constant 2 : index
    %c2_180 = arith.constant 2 : index
    %c0_181 = arith.constant 0 : index
    %99 = vector.load %arg10[%c2_179, %c2_180, %c0_181] : memref<18x18x8xf32, #tpu.memory_space<vmem>>, vector<16x16x8xf32>
    %c0_182 = arith.constant 0 : index
    %c0_183 = arith.constant 0 : index
    %c16_184 = arith.constant 16 : index
    %100 = vector.load %arg11[%c0_182, %c0_183, %c16_184] : memref<16x16x24xf32, #tpu.memory_space<vmem>>, vector<16x16x8xf32>
    tpu.vector_store %arg11[%c0_182, %c0_183, %c16_184], %99 {strides = array<i32>} : memref<16x16x24xf32, #tpu.memory_space<vmem>>, vector<16x16x8xf32>,
    %c0_185 = arith.constant 0 : index
    %c0_186 = arith.constant 0 : index
    %c0_187 = arith.constant 0 : index
    %101 = vector.load %arg11[%c0_185, %c0_186, %c0_187] : memref<16x16x24xf32, #tpu.memory_space<vmem>>, vector<16x16x24xf32>
    %102 = vector.shape_cast %101 : vector<16x16x24xf32> to vector<256x24xf32>
    %c2_188 = arith.constant 2 : index
    %c0_189 = arith.constant 0 : index
    %c0_190 = arith.constant 0 : index
    %103 = vector.load %arg5[%c2_188, %c0_189, %c0_190] : memref<3x24x8xf32, #tpu.memory_space<vmem>>, vector<1x24x8xf32>
    %104 = vector.shape_cast %103 : vector<1x24x8xf32> to vector<24x8xf32>
    %cst_191 = arith.constant dense<0.000000e+00> : vector<256x8xf32>
    %105 = tpu.matmul %102, %104, %cst_191 {dimension_numbers = #tpu.dot_dimension_numbers<[1], [0], [0], [1], [0, 0, 1, 1], [], []>} : vector<256x24xf32>, vector<24x8xf32>, vector<256x8xf32> -> vector<256x8xf32>
    %106 = arith.addf %94, %105 : vector<256x8xf32>
    %c0_192 = arith.constant 0 : index
    %c0_193 = arith.constant 0 : index
    %107 = vector.load %arg6[%c0_192, %c0_193] : memref<1x8xf32, #tpu.memory_space<vmem>>, vector<1x8xf32>
    %108 = vector.shape_cast %107 : vector<1x8xf32> to vector<8xf32>
    %109 = vector.shape_cast %108 : vector<8xf32> to vector<1x8xf32>
    %110 = vector.broadcast %109 : vector<1x8xf32> to vector<256x8xf32>
    %111 = arith.mulf %106, %110 : vector<256x8xf32>
    %c0_194 = arith.constant 0 : index
    %c0_195 = arith.constant 0 : index
    %112 = vector.load %arg7[%c0_194, %c0_195] : memref<1x8xf32, #tpu.memory_space<vmem>>, vector<1x8xf32>
    %113 = vector.shape_cast %112 : vector<1x8xf32> to vector<8xf32>
    %114 = vector.shape_cast %113 : vector<8xf32> to vector<1x8xf32>
    %115 = vector.broadcast %114 : vector<1x8xf32> to vector<256x8xf32>
    %116 = arith.addf %111, %115 : vector<256x8xf32>
    %117 = vector.shape_cast %1 : vector<16x16x8xf32> to vector<256x8xf32>
    %118 = arith.addf %116, %117 : vector<256x8xf32>
    %cst_196 = arith.constant 0.000000e+00 : f32
    %119 = vector.broadcast %cst_196 : f32 to vector<256x8xf32>
    %120 = arith.maximumf %118, %119 : vector<256x8xf32>
    %121 = vector.shape_cast %120 : vector<256x8xf32> to vector<16x16x8xf32>
    %c0_197 = arith.constant 0 : index
    %c0_198 = arith.constant 0 : index
    %c0_199 = arith.constant 0 : index
    %c0_200 = arith.constant 0 : index
    %122 = vector.load %arg8[%c0_197, %c0_198, %c0_199, %c0_200] : memref<1x16x16x8xf32, #tpu.memory_space<vmem>>, vector<1x16x16x8xf32>
    %123 = vector.shape_cast %122 : vector<1x16x16x8xf32> to vector<16x16x8xf32>
    %124 = vector.shape_cast %121 : vector<16x16x8xf32> to vector<1x16x16x8xf32>
    tpu.vector_store %arg8[%c0_197, %c0_198, %c0_199, %c0_200], %124 {strides = array<i32>} : memref<1x16x16x8xf32, #tpu.memory_space<vmem>>, vector<1x16x16x8xf32>,
    return
  }
  func.func @transform_0(%arg0: i32) -> (i32, i32, i32, i32) {
    %c0_i32 = arith.constant 0 : i32
    %c0_i32_0 = arith.constant 0 : i32
    %c0_i32_1 = arith.constant 0 : i32
    %c0_i32_2 = arith.constant 0 : i32
    return %arg0, %c0_i32, %c0_i32_0, %c0_i32_1 : i32, i32, i32, i32
  }
  func.func @transform_1(%arg0: i32) -> (i32, i32, i32) {
    %c0_i32 = arith.constant 0 : i32
    %c0_i32_0 = arith.constant 0 : i32
    %c0_i32_1 = arith.constant 0 : i32
    %c0_i32_2 = arith.constant 0 : i32
    return %c0_i32, %c0_i32_0, %c0_i32_1 : i32, i32, i32
  }
  func.func @transform_2(%arg0: i32) -> (i32, i32) {
    %c0_i32 = arith.constant 0 : i32
    %c0_i32_0 = arith.constant 0 : i32
    %c0_i32_1 = arith.constant 0 : i32
    return %c0_i32, %c0_i32_0 : i32, i32
  }
  func.func @transform_3(%arg0: i32) -> (i32, i32) {
    %c0_i32 = arith.constant 0 : i32
    %c0_i32_0 = arith.constant 0 : i32
    %c0_i32_1 = arith.constant 0 : i32
    return %c0_i32, %c0_i32_0 : i32, i32
  }
  func.func @transform_4(%arg0: i32) -> (i32, i32, i32) {
    %c0_i32 = arith.constant 0 : i32
    %c0_i32_0 = arith.constant 0 : i32
    %c0_i32_1 = arith.constant 0 : i32
    %c0_i32_2 = arith.constant 0 : i32
    return %c0_i32, %c0_i32_0, %c0_i32_1 : i32, i32, i32
  }
  func.func @transform_5(%arg0: i32) -> (i32, i32) {
    %c0_i32 = arith.constant 0 : i32
    %c0_i32_0 = arith.constant 0 : i32
    %c0_i32_1 = arith.constant 0 : i32
    return %c0_i32, %c0_i32_0 : i32, i32
  }
  func.func @transform_6(%arg0: i32) -> (i32, i32) {
    %c0_i32 = arith.constant 0 : i32
    %c0_i32_0 = arith.constant 0 : i32
    %c0_i32_1 = arith.constant 0 : i32
    return %c0_i32, %c0_i32_0 : i32, i32
  }
  func.func @transform_7(%arg0: i32) -> (i32, i32, i32, i32) {
    %c0_i32 = arith.constant 0 : i32
    %c0_i32_0 = arith.constant 0 : i32
    %c0_i32_1 = arith.constant 0 : i32
    %c0_i32_2 = arith.constant 0 : i32
    return %arg0, %c0_i32, %c0_i32_0, %c0_i32_1 : i32, i32, i32, i32
  }
}

</mosaic_0001>

<bundles_post_ra>
// kernel: tpu_custom_call.1
= control target key start
LH: loop header
LB: loop body
LE: loop exit
PB: predicated region body
PF: predicated region fallthrough
CT: control target
= control target key end

     0   :  { %s6671_s24 = smov 0   ;;  %s9300_s0 = inlined_call_operand.vmem [shape: f32[2,16,16,8], index: 0, kind: input, shape index: {}]   ;;  %s9301_s1 = inlined_call_operand.vmem [shape: f32[3,24,8], index: 1, kind: input, shape index: {}]   ;;  %s9302_s2 = inlined_call_operand.vmem [shape: f32[1,8], index: 2, kind: input, shape index: {}]   ;;  %s9303_s3 = inlined_call_operand.vmem [shape: f32[1,8], index: 3, kind: input, shape index: {}]   ;;  %s9304_s4 = inlined_call_operand.vmem [shape: f32[3,24,8], index: 4, kind: input, shape index: {}]   ;;  %s9305_s5 = inlined_call_operand.vmem [shape: f32[1,8], index: 5, kind: input, shape index: {}]   ;;  %s9306_s6 = inlined_call_operand.vmem [shape: f32[1,8], index: 6, kind: input, shape index: {}]   ;;  %s9307_s7 = inlined_call_operand.vmem [shape: f32[2,16,16,8], index: 7, kind: output, shape index: {}]  }
   0x1 LB: > { %s5702_s25 = sadd.s32 4294967295, %s6626_s24   ;;  %p5706_p0 = scmp.ge.s32.totalorder %s6626_s24, 1  ;;  %s6626_s24 = sphi %s6671_s24, %s17_s24  }
   0x2   : > { %p237_p1 = scmp.lt.s32.totalorder %s6626_s24, 3 }
   0x4   : > { %p238_p2 = pnand %p5706_p0, %p237_p1 }
   0x6   : > { %241 = sbr.rel (%p238_p2) target bundleno = 1446 (0x5a6), region = 48 }
   0xd   : > { %vm311_vm0 = vcmask 64512   ;;  %vm320_vm1 = vcmask 57344   ;;  %vm314_vm2 = vcmask 58368   ;;  %v6628_v0 = vmov 0.0   ;;  %p269_p3 = scmp.lt.s32.totalorder %s5702_s25, 1  ;;  %s6629_s30 = smov 8  }
   0xe   : > { %312 = vst.msk [vmem:[#allocation2] sm:$0xff] %vm311_vm0, %v6628_v0  ;;  %313 = vst.msk [vmem:[#allocation2 + $0x8] sm:$0xff] %vm311_vm0, %v6628_v0  ;;  %s6630_s8 = smov 16   ;;  %v5711_v41 = vld [vmem:[%s9301_s1 + $0x18] sm:$0xff]  ;;  %v5712_v42 = vld [vmem:[%s9301_s1 + $0x20] sm:$0xff]  ;;  %vm614_vm3 = vcmask 130112  }
   0xf   : > { %317 = vst.msk [vmem:[#allocation2 + $0x198] sm:$0xff] %vm311_vm0, %v6628_v0  ;;  %318 = vst.msk [vmem:[#allocation2 + $0x1a0] sm:$0xff] %vm311_vm0, %v6628_v0  ;;  %s9439_s25 = smov (!%p269_p3, %s5702_s25), 1  ;;  %v6457_v44 = vpack.c.bf16 %v5712_v42, %v5711_v41  ;;  %v5713_v45 = vld [vmem:[%s9301_s1 + $0x28] sm:$0xff]  ;;  %vm807_vm4 = vcmask 195712   ;;  %vm1359_vm5 = vcmask 195584  }
  0x10   : > { %322 = vst.msk [vmem:[#allocation2 + $0x18] sm:$0x1] %vm320_vm1, %v6628_v0  ;;  %323 = vst.msk [vmem:[#allocation2 + $0x30] sm:$0x1] %vm320_vm1, %v6628_v0  ;;  %s5921_s26 = sshll.u32 %s9439_s25, 8 }
  0x11   : > { %324 = vst.msk [vmem:[#allocation2 + $0x48] sm:$0x1] %vm320_vm1, %v6628_v0  ;;  %325 = vst.msk [vmem:[#allocation2 + $0x60] sm:$0x1] %vm320_vm1, %v6628_v0  ;;  %s6859_s29 = scalar_lea.vmem %s9300_s0, %s5921_s26  ;;  %6458 = vmatprep.subr.bf16.mxu0 %v6457_v44  ;;  %s9141_s17 = scalar_lea.vmem %s9307_s7, %s5921_s26 }
  0x12   : > { %326 = vst.msk [vmem:[#allocation2 + $0x78] sm:$0x1] %vm320_vm1, %v6628_v0  ;;  %327 = vst.msk [vmem:[#allocation2 + $0x90] sm:$0x1] %vm320_vm1, %v6628_v0  ;;  %v6862_v1 = vld [vmem:[%s6859_s29] sm:$0xff]  ;;  %v6865_v2 = vld [vmem:[%s6859_s29 + $0x8] sm:$0xff]  ;;  %6460 = vmatpush3.bf16.msra.mxu0 %v6457_v44 }
  0x13   : > { %328 = vst.msk [vmem:[#allocation2 + $0xa8] sm:$0x1] %vm320_vm1, %v6628_v0  ;;  %329 = vst.msk [vmem:[#allocation2 + $0xc0] sm:$0x1] %vm320_vm1, %v6628_v0  ;;  %v6868_v3 = vld [vmem:[%s6859_s29 + $0x10] sm:$0xff]  ;;  %v6879_v8 = vld [vmem:[%s6859_s29 + $0x18] sm:$0xff]  ;;  %6137 = vmatprep.subr.mxu0 %v5713_v45 }
  0x14   : > { %330 = vst.msk [vmem:[#allocation2 + $0xd8] sm:$0x1] %vm320_vm1, %v6628_v0  ;;  %331 = vst.msk [vmem:[#allocation2 + $0xf0] sm:$0x1] %vm320_vm1, %v6628_v0  ;;  %v6882_v9 = vld [vmem:[%s6859_s29 + $0x20] sm:$0xff]  ;;  %v6889_v10 = vld [vmem:[%s6859_s29 + $0x28] sm:$0xff] }
  0x15   : > { %332 = vst.msk [vmem:[#allocation2 + $0x108] sm:$0x1] %vm320_vm1, %v6628_v0  ;;  %333 = vst.msk [vmem:[#allocation2 + $0x120] sm:$0x1] %vm320_vm1, %v6628_v0  ;;  %v454_v4 = vld [vmem:[#allocation2 + $0x1] sm:$0xff]  ;;  %v6892_v11 = vld [vmem:[%s6859_s29 + $0x30] sm:$0xff] }
  0x16   : > { %334 = vst.msk [vmem:[#allocation2 + $0x138] sm:$0x1] %vm320_vm1, %v6628_v0  ;;  %335 = vst.msk [vmem:[#allocation2 + $0x150] sm:$0x1] %vm320_vm1, %v6628_v0  ;;  %v647_v5 = vld [vmem:[#allocation2 + $0x2] sm:$0xff]  ;;  %518 = vrot.lane.b32.xlu0 %v454_v4, %s6629_s30  ;;  %v6895_v12 = vld [vmem:[%s6859_s29 + $0x38] sm:$0xff]  ;;  %6138 = vmatpush3.msra.mxu0 %v5713_v45 }
  0x17   : > { %336 = vst.msk [vmem:[#allocation2 + $0x168] sm:$0x1] %vm320_vm1, %v6628_v0  ;;  %337 = vst.msk [vmem:[#allocation2 + $0x180] sm:$0x1] %vm320_vm1, %v6628_v0  ;;  %711 = vrot.lane.b32.xlu1 %v647_v5, %s6630_s8  ;;  %v6904_v13 = vld [vmem:[%s6859_s29 + $0x40] sm:$0xff]  ;;  %v6907_v14 = vld [vmem:[%s6859_s29 + $0x48] sm:$0xff] }
  0x18   : > { %340 = vst.msk [vmem:[#allocation2 + $0x29] sm:$0x1] %vm320_vm1, %v6628_v0  ;;  %341 = vst.msk [vmem:[#allocation2 + $0x41] sm:$0x1] %vm320_vm1, %v6628_v0  ;;  %v6910_v15 = vld [vmem:[%s6859_s29 + $0x50] sm:$0xff]  ;;  %v6919_v16 = vld [vmem:[%s6859_s29 + $0x58] sm:$0xff] }
  0x19   : > { %342 = vst.msk [vmem:[#allocation2 + $0x59] sm:$0x1] %vm320_vm1, %v6628_v0  ;;  %343 = vst.msk [vmem:[#allocation2 + $0x71] sm:$0x1] %vm320_vm1, %v6628_v0  ;;  %v6922_v17 = vld [vmem:[%s6859_s29 + $0x60] sm:$0xff]  ;;  %v6925_v18 = vld [vmem:[%s6859_s29 + $0x68] sm:$0xff] }
  0x1a   : > { %344 = vst.msk [vmem:[#allocation2 + $0x89] sm:$0x1] %vm320_vm1, %v6628_v0  ;;  %345 = vst.msk [vmem:[#allocation2 + $0xa1] sm:$0x1] %vm320_vm1, %v6628_v0  ;;  %v6936_v19 = vld [vmem:[%s6859_s29 + $0x70] sm:$0xff]  ;;  %v6939_v20 = vld [vmem:[%s6859_s29 + $0x78] sm:$0xff] }
  0x1b   : > { %346 = vst.msk [vmem:[#allocation2 + $0xb9] sm:$0x1] %vm320_vm1, %v6628_v0  ;;  %347 = vst.msk [vmem:[#allocation2 + $0xd1] sm:$0x1] %vm320_vm1, %v6628_v0  ;;  %v391_v22 = vld [vmem:[#allocation2 + $0x8] sm:$0xff]  ;;  %v6947_v23 = vld [vmem:[%s6859_s29 + $0x80] sm:$0xff] }
  0x1c   : > { %348 = vst.msk [vmem:[#allocation2 + $0xe9] sm:$0x1] %vm320_vm1, %v6628_v0  ;;  %349 = vst.msk [vmem:[#allocation2 + $0x101] sm:$0x1] %vm320_vm1, %v6628_v0  ;;  %v6950_v24 = vld [vmem:[%s6859_s29 + $0x88] sm:$0xff]  ;;  %v6980_v37 = vld [vmem:[%s6859_s29 + $0x90] sm:$0xff] }
  0x1d   : > { %350 = vst.msk [vmem:[#allocation2 + $0x119] sm:$0x1] %vm320_vm1, %v6628_v0  ;;  %351 = vst.msk [vmem:[#allocation2 + $0x131] sm:$0x1] %vm320_vm1, %v6628_v0  ;;  %v6991_v39 = vld [vmem:[%s6859_s29 + $0x98] sm:$0xff]  ;;  %v7006_v43 = vld [vmem:[%s6859_s29 + $0xa0] sm:$0xff] }
  0x1e   : > { %352 = vst.msk [vmem:[#allocation2 + $0x149] sm:$0x1] %vm320_vm1, %v6628_v0  ;;  %353 = vst.msk [vmem:[#allocation2 + $0x161] sm:$0x1] %vm320_vm1, %v6628_v0  ;;  %v7016_v46 = vld [vmem:[%s6859_s29 + $0xa8] sm:$0xff]  ;;  %v7035_v53 = vld [vmem:[%s6859_s29 + $0xb0] sm:$0xff] }
  0x1f   : > { %354 = vst.msk [vmem:[#allocation2 + $0x179] sm:$0x1] %vm320_vm1, %v6628_v0  ;;  %355 = vst.msk [vmem:[#allocation2 + $0x191] sm:$0x1] %vm320_vm1, %v6628_v0  ;;  %v7042_v54 = vld [vmem:[%s6859_s29 + $0xb8] sm:$0xff]  ;;  %v7061_v61 = vld [vmem:[%s6859_s29 + $0xc0] sm:$0xff] }
  0x20   : > { %2950 = vst.msk [vmem:[#allocation3] sm:$0xff] %vm311_vm0, %v6628_v0  ;;  %2951 = vst.msk [vmem:[#allocation3 + $0x8] sm:$0xff] %vm311_vm0, %v6628_v0  ;;  %v7068_v62 = vld [vmem:[%s6859_s29 + $0xc8] sm:$0xff] }
  0x21   : > { %2954 = vst.msk [vmem:[#allocation3 + $0x198] sm:$0xff] %vm311_vm0, %v6628_v0  ;;  %2955 = vst.msk [vmem:[#allocation3 + $0x1a0] sm:$0xff] %vm311_vm0, %v6628_v0 }
  0x22   : > { %2958 = vst.msk [vmem:[#allocation3 + $0x18] sm:$0x1] %vm320_vm1, %v6628_v0  ;;  %2959 = vst.msk [vmem:[#allocation3 + $0x30] sm:$0x1] %vm320_vm1, %v6628_v0 }
  0x23   : > { %2960 = vst.msk [vmem:[#allocation3 + $0x48] sm:$0x1] %vm320_vm1, %v6628_v0  ;;  %2961 = vst.msk [vmem:[#allocation3 + $0x60] sm:$0x1] %vm320_vm1, %v6628_v0 }
  0x24   : > { %2962 = vst.msk [vmem:[#allocation3 + $0x78] sm:$0x1] %vm320_vm1, %v6628_v0  ;;  %2963 = vst.msk [vmem:[#allocation3 + $0x90] sm:$0x1] %vm320_vm1, %v6628_v0 }
  0x25   : > { %2964 = vst.msk [vmem:[#allocation3 + $0xa8] sm:$0x1] %vm320_vm1, %v6628_v0  ;;  %2965 = vst.msk [vmem:[#allocation3 + $0xc0] sm:$0x1] %vm320_vm1, %v6628_v0 }
  0x26   : > { %2966 = vst.msk [vmem:[#allocation3 + $0xd8] sm:$0x1] %vm320_vm1, %v6628_v0  ;;  %2967 = vst.msk [vmem:[#allocation3 + $0xf0] sm:$0x1] %vm320_vm1, %v6628_v0 }
  0x27   : > { %2968 = vst.msk [vmem:[#allocation3 + $0x108] sm:$0x1] %vm320_vm1, %v6628_v0  ;;  %2969 = vst.msk [vmem:[#allocation3 + $0x120] sm:$0x1] %vm320_vm1, %v6628_v0 }
  0x28   : > { %2970 = vst.msk [vmem:[#allocation3 + $0x138] sm:$0x1] %vm320_vm1, %v6628_v0  ;;  %2971 = vst.msk [vmem:[#allocation3 + $0x150] sm:$0x1] %vm320_vm1, %v6628_v0 }
  0x29   : > { %2972 = vst.msk [vmem:[#allocation3 + $0x168] sm:$0x1] %vm320_vm1, %v6628_v0  ;;  %2973 = vst.msk [vmem:[#allocation3 + $0x180] sm:$0x1] %vm320_vm1, %v6628_v0 }
  0x2a   : > { %2976 = vst.msk [vmem:[#allocation3 + $0x29] sm:$0x1] %vm320_vm1, %v6628_v0  ;;  %2977 = vst.msk [vmem:[#allocation3 + $0x41] sm:$0x1] %vm320_vm1, %v6628_v0 }
  0x2b   : > { %2978 = vst.msk [vmem:[#allocation3 + $0x59] sm:$0x1] %vm320_vm1, %v6628_v0  ;;  %2979 = vst.msk [vmem:[#allocation3 + $0x71] sm:$0x1] %vm320_vm1, %v6628_v0 }
  0x2c   : > { %2980 = vst.msk [vmem:[#allocation3 + $0x89] sm:$0x1] %vm320_vm1, %v6628_v0  ;;  %2981 = vst.msk [vmem:[#allocation3 + $0xa1] sm:$0x1] %vm320_vm1, %v6628_v0 }
  0x2d   : > { %2982 = vst.msk [vmem:[#allocation3 + $0xb9] sm:$0x1] %vm320_vm1, %v6628_v0  ;;  %2983 = vst.msk [vmem:[#allocation3 + $0xd1] sm:$0x1] %vm320_vm1, %v6628_v0 }
  0x2e   : > { %2984 = vst.msk [vmem:[#allocation3 + $0xe9] sm:$0x1] %vm320_vm1, %v6628_v0  ;;  %2985 = vst.msk [vmem:[#allocation3 + $0x101] sm:$0x1] %vm320_vm1, %v6628_v0 }
  0x2f   : > { %2986 = vst.msk [vmem:[#allocation3 + $0x119] sm:$0x1] %vm320_vm1, %v6628_v0  ;;  %2987 = vst.msk [vmem:[#allocation3 + $0x131] sm:$0x1] %vm320_vm1, %v6628_v0 }
  0x30   : > { %2988 = vst.msk [vmem:[#allocation3 + $0x149] sm:$0x1] %vm320_vm1, %v6628_v0  ;;  %2989 = vst.msk [vmem:[#allocation3 + $0x161] sm:$0x1] %vm320_vm1, %v6628_v0 }
  0x31   : > { %2990 = vst.msk [vmem:[#allocation3 + $0x179] sm:$0x1] %vm320_vm1, %v6628_v0  ;;  %2991 = vst.msk [vmem:[#allocation3 + $0x191] sm:$0x1] %vm320_vm1, %v6628_v0 }
  0x32   : > { %315 = vst.msk [vmem:[#allocation2 + $0x10] sm:$0x3] %vm314_vm2, %v6628_v0  ;;  %319 = vst.msk [vmem:[#allocation2 + $0x1a8] sm:$0x3] %vm314_vm2, %v6628_v0 }
  0x33   : > { %2952 = vst.msk [vmem:[#allocation3 + $0x10] sm:$0x3] %vm314_vm2, %v6628_v0  ;;  %2956 = vst.msk [vmem:[#allocation3 + $0x1a8] sm:$0x3] %vm314_vm2, %v6628_v0 }
  0x34   : > { %321 = vst.msk [vmem:[#allocation2] sm:$0x1] %vm320_vm1, %v6628_v0  ;;  %338 = vst.msk [vmem:[#allocation2 + $0x198] sm:$0x1] %vm320_vm1, %v6628_v0 }
  0x35   : > { %2957 = vst.msk [vmem:[#allocation3] sm:$0x1] %vm320_vm1, %v6628_v0  ;;  %2974 = vst.msk [vmem:[#allocation3 + $0x198] sm:$0x1] %vm320_vm1, %v6628_v0 }
  0x36   : > { %339 = vst.msk [vmem:[#allocation2 + $0x11] sm:$0x1] %vm320_vm1, %v6628_v0  ;;  %356 = vst.msk [vmem:[#allocation2 + $0x1a9] sm:$0x1] %vm320_vm1, %v6628_v0 }
  0x37   : > { %2975 = vst.msk [vmem:[#allocation3 + $0x11] sm:$0x1] %vm320_vm1, %v6628_v0  ;;  %2992 = vst.msk [vmem:[#allocation3 + $0x1a9] sm:$0x1] %vm320_vm1, %v6628_v0 }
  0x38   : > { %9340 = vst [vmem:[#allocation5_spill] sm:$0xff] %v6862_v1  ;;  %9341 = vst [vmem:[#allocation6_spill] sm:$0xff] %v6865_v2 }
  0x39   : > { %9342 = vst [vmem:[#allocation7_spill] sm:$0xff] %v6868_v3  ;;  %v455_v6 = vld [vmem:[#allocation2 + $0x9] sm:$0xff]  ;;  %358 = vst.msk [vmem:[#allocation2 + $0x19] sm:$0xff] %vm311_vm0, %v6862_v1 }
  0x3a   : > { %359 = vst.msk [vmem:[#allocation2 + $0x21] sm:$0xff] %vm311_vm0, %v6865_v2  ;;  %360 = vst.msk [vmem:[#allocation2 + $0x31] sm:$0xff] %vm311_vm0, %v6868_v3  ;;  %520 = vrot.lane.b32.xlu0 %v455_v6, %s6629_s30 }
  0x3b   : > { %9343 = vst [vmem:[#allocation8_spill] sm:$0xff] %v6879_v8  ;;  %9344 = vst [vmem:[#allocation9_spill] sm:$0xff] %v6882_v9  ;;  %v390_v21 = vld [vmem:[#allocation2] sm:$0xff] }
  0x3c   : > { %361 = vst.msk [vmem:[#allocation2 + $0x39] sm:$0xff] %vm311_vm0, %v6879_v8  ;;  %362 = vst.msk [vmem:[#allocation2 + $0x49] sm:$0xff] %vm311_vm0, %v6882_v9 }
  0x3d   : > { %v648_v7 = vld [vmem:[#allocation2 + $0xa] sm:$0xff]  ;;  %9345 = vst [vmem:[#allocation10_spill] sm:$0xff] %v6889_v10  ;;  %9346 = vst [vmem:[#allocation11_spill] sm:$0xff] %v6892_v11 }
  0x3e   : > { %9347 = vst [vmem:[#allocation12_spill] sm:$0xff] %v6895_v12  ;;  %363 = vst.msk [vmem:[#allocation2 + $0x51] sm:$0xff] %vm311_vm0, %v6889_v10  ;;  %713 = vrot.lane.b32.xlu1 %v648_v7, %s6630_s8 }
  0x3f   : > { %364 = vst.msk [vmem:[#allocation2 + $0x61] sm:$0xff] %vm311_vm0, %v6892_v11  ;;  %365 = vst.msk [vmem:[#allocation2 + $0x69] sm:$0xff] %vm311_vm0, %v6895_v12 }
  0x40   : > { %9348 = vst [vmem:[#allocation13_spill] sm:$0xff] %v6904_v13  ;;  %9349 = vst [vmem:[#allocation14_spill] sm:$0xff] %v6907_v14  ;;  %v456_v25 = vld [vmem:[#allocation2 + $0x19] sm:$0xff] }
  0x41   : > { %9350 = vst [vmem:[#allocation15_spill] sm:$0xff] %v6910_v15  ;;  %366 = vst.msk [vmem:[#allocation2 + $0x79] sm:$0xff] %vm311_vm0, %v6904_v13  ;;  %v457_v26 = vld [vmem:[#allocation2 + $0x21] sm:$0xff]  ;;  %v6957_v27 = vld [vmem:[#allocation2 + $0x18] sm:$0xff]  ;;  %522 = vrot.lane.b32.xlu0 %v456_v25, %s6629_s30 }
  0x42   : > { %367 = vst.msk [vmem:[#allocation2 + $0x81] sm:$0xff] %vm311_vm0, %v6907_v14  ;;  %368 = vst.msk [vmem:[#allocation2 + $0x91] sm:$0xff] %vm311_vm0, %v6910_v15  ;;  %524 = vrot.lane.b32.xlu1 %v457_v26, %s6629_s30  ;;  %v649_v28 = vld [vmem:[#allocation2 + $0x1a] sm:$0xff]  ;;  %v650_v29 = vld [vmem:[#allocation2 + $0x22] sm:$0xff] }
  0x43   : > { %9351 = vst [vmem:[#allocation16_spill] sm:$0xff] %v6919_v16  ;;  %9352 = vst [vmem:[#allocation17_spill] sm:$0xff] %v6922_v17  ;;  %v458_v30 = vld [vmem:[#allocation2 + $0x31] sm:$0xff]  ;;  %v459_v31 = vld [vmem:[#allocation2 + $0x39] sm:$0xff] }
  0x44   : > { %9353 = vst [vmem:[#allocation18_spill] sm:$0xff] %v6925_v18  ;;  %369 = vst.msk [vmem:[#allocation2 + $0x99] sm:$0xff] %vm311_vm0, %v6919_v16  ;;  %v651_v32 = vld [vmem:[#allocation2 + $0x32] sm:$0xff]  ;;  %v652_v33 = vld [vmem:[#allocation2 + $0x3a] sm:$0xff] }
  0x45   : > { %370 = vst.msk [vmem:[#allocation2 + $0xa9] sm:$0xff] %vm311_vm0, %v6922_v17  ;;  %371 = vst.msk [vmem:[#allocation2 + $0xb1] sm:$0xff] %vm311_vm0, %v6925_v18  ;;  %715 = vrot.lane.b32.xlu0 %v649_v28, %s6630_s8  ;;  %v6967_v34 = vld [vmem:[#allocation2 + $0x20] sm:$0xff]  ;;  %v6971_v35 = vld [vmem:[#allocation2 + $0x30] sm:$0xff] }
  0x46   : > { %9354 = vst [vmem:[#allocation19_spill] sm:$0xff] %v6936_v19  ;;  %9355 = vst [vmem:[#allocation20_spill] sm:$0xff] %v6939_v20  ;;  %717 = vrot.lane.b32.xlu1 %v650_v29, %s6630_s8  ;;  %v6973_v36 = vld [vmem:[#allocation2 + $0x38] sm:$0xff]  ;;  %v6982_v38 = vld [vmem:[#allocation2 + $0x48] sm:$0xff] }
  0x47   : > { %372 = vst.msk [vmem:[#allocation2 + $0xc1] sm:$0xff] %vm311_vm0, %v6936_v19  ;;  %373 = vst.msk [vmem:[#allocation2 + $0xc9] sm:$0xff] %vm311_vm0, %v6939_v20  ;;  %v6993_v40 = vld [vmem:[#allocation2 + $0x50] sm:$0xff]  ;;  %v7022_v49 = vld [vmem:[#allocation2 + $0x60] sm:$0xff] }
  0x48   : > { %422 = vst.msk [vmem:[#allocation4] sm:$0xff] %vm311_vm0, %v390_v21  ;;  %9356 = vst [vmem:[#allocation21_spill] sm:$0xff] %v6947_v23  ;;  %v460_v47 = vld [vmem:[#allocation2 + $0x49] sm:$0xff]  ;;  %v461_v48 = vld [vmem:[#allocation2 + $0x51] sm:$0xff] }
  0x49   : > { %9357 = vst [vmem:[#allocation22_spill] sm:$0xff] %v6950_v24  ;;  %423 = vst.msk [vmem:[#allocation4 + $0x8] sm:$0xff] %vm311_vm0, %v391_v22  ;;  %526 = vrot.lane.b32.xlu0 %v458_v30, %s6629_s30  ;;  %v653_v50 = vld [vmem:[#allocation2 + $0x4a] sm:$0xff]  ;;  %v654_v51 = vld [vmem:[#allocation2 + $0x52] sm:$0xff] }
  0x4a   : > { %374 = vst.msk [vmem:[#allocation2 + $0xd9] sm:$0xff] %vm311_vm0, %v6947_v23  ;;  %375 = vst.msk [vmem:[#allocation2 + $0xe1] sm:$0xff] %vm311_vm0, %v6950_v24  ;;  %528 = vrot.lane.b32.xlu1 %v459_v31, %s6629_s30  ;;  %v7028_v52 = vld [vmem:[#allocation2 + $0x68] sm:$0xff]  ;;  %v7048_v57 = vld [vmem:[#allocation2 + $0x78] sm:$0xff] }
  0x4b   : > { %424 = vst.msk [vmem:[#allocation4 + $0x10] sm:$0xff] %vm311_vm0, %v6957_v27  ;;  %425 = vst.msk [vmem:[#allocation4 + $0x18] sm:$0xff] %vm311_vm0, %v6967_v34  ;;  %v462_v55 = vld [vmem:[#allocation2 + $0x61] sm:$0xff]  ;;  %v463_v56 = vld [vmem:[#allocation2 + $0x69] sm:$0xff] }
  0x4c   : > { %426 = vst.msk [vmem:[#allocation4 + $0x20] sm:$0xff] %vm311_vm0, %v6971_v35  ;;  %427 = vst.msk [vmem:[#allocation4 + $0x28] sm:$0xff] %vm311_vm0, %v6973_v36  ;;  %v655_v58 = vld [vmem:[#allocation2 + $0x62] sm:$0xff]  ;;  %v656_v59 = vld [vmem:[#allocation2 + $0x6a] sm:$0xff] }
  0x4d   : > { %9358 = vst [vmem:[#allocation23_spill] sm:$0xff] %v6980_v37  ;;  %719 = vrot.lane.b32.xlu0 %v651_v32, %s6630_s8  ;;  %376 = vst.msk [vmem:[#allocation2 + $0xf1] sm:$0xff] %vm311_vm0, %v6980_v37  ;;  %v7054_v60 = vld [vmem:[#allocation2 + $0x80] sm:$0xff]  ;;  %v7074_v4 = vld [vmem:[#allocation2 + $0x90] sm:$0xff] }
  0x4e   : > { %721 = vrot.lane.b32.xlu1 %v652_v33, %s6630_s8  ;;  %428 = vst.msk [vmem:[#allocation4 + $0x30] sm:$0xff] %vm311_vm0, %v6982_v38  ;;  %9359 = vst [vmem:[#allocation24_spill] sm:$0xff] %v6991_v39  ;;  %v464_v63 = vld [vmem:[#allocation2 + $0x79] sm:$0xff]  ;;  %v465_v0 = vld [vmem:[#allocation2 + $0x81] sm:$0xff] }
  0x4f   : > { %377 = vst.msk [vmem:[#allocation2 + $0xf9] sm:$0xff] %vm311_vm0, %v6991_v39  ;;  %429 = vst.msk [vmem:[#allocation4 + $0x38] sm:$0xff] %vm311_vm0, %v6993_v40  ;;  %v657_v5 = vld [vmem:[#allocation2 + $0x7a] sm:$0xff]  ;;  %v658_v6 = vld [vmem:[#allocation2 + $0x82] sm:$0xff] }
  0x50   : > { %9360 = vst [vmem:[#allocation25_spill] sm:$0xff] %v7006_v43  ;;  %378 = vst.msk [vmem:[#allocation2 + $0x109] sm:$0xff] %vm311_vm0, %v7006_v43  ;;  %v7080_v7 = vld [vmem:[#allocation2 + $0x98] sm:$0xff]  ;;  %v7087_v21 = vld [vmem:[%s6859_s29 + $0xd0] sm:$0xff] }
  0x51   : > { %1003 = vrot.lane.b32.xlu0 %v456_v25, %s6629_s30  ;;  %9361 = vst [vmem:[#allocation26_spill] sm:$0xff] %v7016_v46  ;;  %379 = vst.msk [vmem:[#allocation2 + $0x111] sm:$0xff] %vm311_vm0, %v7016_v46  ;;  %v7094_v22 = vld [vmem:[%s6859_s29 + $0xd8] sm:$0xff]  ;;  %v468_v41 = vld [vmem:[#allocation2 + $0xa9] sm:$0xff] }
  0x52   : > { %1005 = vrot.lane.b32.xlu1 %v457_v26, %s6629_s30  ;;  %430 = vst.msk [vmem:[#allocation4 + $0x40] sm:$0xff] %vm311_vm0, %v7022_v49  ;;  %431 = vst.msk [vmem:[#allocation4 + $0x48] sm:$0xff] %vm311_vm0, %v7028_v52  ;;  %v466_v25 = vld [vmem:[#allocation2 + $0x91] sm:$0xff]  ;;  %v467_v26 = vld [vmem:[#allocation2 + $0x99] sm:$0xff] }
  0x53   : > { %9362 = vst [vmem:[#allocation27_spill] sm:$0xff] %v7035_v53  ;;  %380 = vst.msk [vmem:[#allocation2 + $0x121] sm:$0xff] %vm311_vm0, %v7035_v53  ;;  %v469_v42 = vld [vmem:[#allocation2 + $0xb1] sm:$0xff]  ;;  %v7126_v44 = vld [vmem:[#allocation2 + $0xc0] sm:$0xff] }
  0x54   : > { %9363 = vst [vmem:[#allocation28_spill] sm:$0xff] %v7042_v54  ;;  %381 = vst.msk [vmem:[#allocation2 + $0x129] sm:$0xff] %vm311_vm0, %v7042_v54  ;;  %v661_v45 = vld [vmem:[#allocation2 + $0xaa] sm:$0xff] }
  0x55   : > { %1195 = vrot.lane.b32.xlu0 %v649_v28, %s6630_s8  ;;  %432 = vst.msk [vmem:[#allocation4 + $0x50] sm:$0xff] %vm311_vm0, %v7048_v57  ;;  %433 = vst.msk [vmem:[#allocation4 + $0x58] sm:$0xff] %vm311_vm0, %v7054_v60  ;;  %v7100_v28 = vld [vmem:[#allocation2 + $0xa8] sm:$0xff] }
  0x56   : > { %530 = vrot.lane.b32.xlu1 %v460_v47, %s6629_s30  ;;  %9364 = vst [vmem:[#allocation29_spill] sm:$0xff] %v7061_v61  ;;  %382 = vst.msk [vmem:[#allocation2 + $0x139] sm:$0xff] %vm311_vm0, %v7061_v61 }
  0x57   : > { %9365 = vst [vmem:[#allocation30_spill] sm:$0xff] %v7068_v62  ;;  %383 = vst.msk [vmem:[#allocation2 + $0x141] sm:$0xff] %vm311_vm0, %v7068_v62 }
  0x58   : > { %434 = vst.msk [vmem:[#allocation4 + $0x60] sm:$0xff] %vm311_vm0, %v7074_v4  ;;  %435 = vst.msk [vmem:[#allocation4 + $0x68] sm:$0xff] %vm311_vm0, %v7080_v7 }
  0x59   : > { %1197 = vrot.lane.b32.xlu0 %v650_v29, %s6630_s8  ;;  %9366 = vst [vmem:[#allocation31_spill] sm:$0xff] %v7087_v21  ;;  %384 = vst.msk [vmem:[#allocation2 + $0x151] sm:$0xff] %vm311_vm0, %v7087_v21  ;;  %v659_v29 = vld [vmem:[#allocation2 + $0x92] sm:$0xff] }
  0x5a   : > { %532 = vrot.lane.b32.xlu1 %v461_v48, %s6629_s30  ;;  %9367 = vst [vmem:[#allocation32_spill] sm:$0xff] %v7094_v22  ;;  %385 = vst.msk [vmem:[#allocation2 + $0x159] sm:$0xff] %vm311_vm0, %v7094_v22  ;;  %v7296_v22 = vld [vmem:[#allocation2 + $0x120] sm:$0xff] }
  0x5b   : > { %436 = vst.msk [vmem:[#allocation4 + $0x70] sm:$0xff] %vm311_vm0, %v7100_v28  ;;  %438 = vst.msk [vmem:[#allocation4 + $0x80] sm:$0xff] %vm311_vm0, %v7126_v44 }
  0x5c   : > { %446 = vst.msk [vmem:[#allocation4 + $0xc0] sm:$0xff] %vm311_vm0, %v7296_v22 }
  0x5d   : > { %723 = vrot.lane.b32.xlu0 %v653_v50, %s6630_s8  ;;  %v7346_v62 = vld [vmem:[#allocation2 + $0x138] sm:$0xff] }
  0x5e   : > { %725 = vrot.lane.b32.xlu1 %v654_v51, %s6630_s8  ;;  %448 = vst.msk [vmem:[#allocation4 + $0xd0] sm:$0xff] %vm311_vm0, %v7346_v62 }
  0x60   : > { %v7402_v43 = vld [vmem:[#allocation2 + $0x150] sm:$0xff] }
  0x61   : > { %1007 = vrot.lane.b32.xlu0 %v458_v30, %s6629_s30  ;;  %v660_v30 = vld [vmem:[#allocation2 + $0x9a] sm:$0xff]  ;;  %450 = vst.msk [vmem:[#allocation4 + $0xe0] sm:$0xff] %vm311_vm0, %v7402_v43 }
  0x62   : > { %1009 = vrot.lane.b32.xlu1 %v459_v31, %s6629_s30  ;;  %v7106_v31 = vld [vmem:[#allocation2 + $0xb0] sm:$0xff] }
  0x63   : > { %437 = vst.msk [vmem:[#allocation4 + $0x78] sm:$0xff] %vm311_vm0, %v7106_v31 }
  0x65   : > { %1199 = vrot.lane.b32.xlu0 %v651_v32, %s6630_s8  ;;  %v7113_v32 = vld [vmem:[%s6859_s29 + $0xe0] sm:$0xff] }
  0x66   : > { %534 = vrot.lane.b32.xlu1 %v462_v55, %s6629_s30  ;;  %9368 = vst [vmem:[#allocation33_spill] sm:$0xff] %v7113_v32  ;;  %386 = vst.msk [vmem:[#allocation2 + $0x169] sm:$0xff] %vm311_vm0, %v7113_v32 }
  0x69   : > { %1201 = vrot.lane.b32.xlu0 %v652_v33, %s6630_s8  ;;  %v7120_v33 = vld [vmem:[%s6859_s29 + $0xe8] sm:$0xff] }
  0x6a   : > { %536 = vrot.lane.b32.xlu1 %v463_v56, %s6629_s30  ;;  %9369 = vst [vmem:[#allocation34_spill] sm:$0xff] %v7120_v33  ;;  %387 = vst.msk [vmem:[#allocation2 + $0x171] sm:$0xff] %vm311_vm0, %v7120_v33 }
  0x6d   : > { %727 = vrot.lane.b32.xlu0 %v655_v58, %s6630_s8  ;;  %v7452_v19 = vld [vmem:[#allocation2 + $0x168] sm:$0xff] }
  0x6e   : > { %729 = vrot.lane.b32.xlu1 %v656_v59, %s6630_s8  ;;  %452 = vst.msk [vmem:[#allocation4 + $0xf0] sm:$0xff] %vm311_vm0, %v7452_v19 }
  0x71   : > { %1011 = vrot.lane.b32.xlu0 %v460_v47, %s6629_s30  ;;  %v662_v47 = vld [vmem:[#allocation2 + $0xb2] sm:$0xff] }
  0x72   : > { %1013 = vrot.lane.b32.xlu1 %v461_v48, %s6629_s30  ;;  %v7132_v48 = vld [vmem:[#allocation2 + $0xc8] sm:$0xff]  ;;  %v7517_v16 = vld [vmem:[#allocation2 + $0x172] sm:$0xff] }
  0x73   : > { %439 = vst.msk [vmem:[#allocation4 + $0x88] sm:$0xff] %vm311_vm0, %v7132_v48 }
  0x75   : > { %1203 = vrot.lane.b32.xlu0 %v653_v50, %s6630_s8  ;;  %v7140_v50 = vld [vmem:[#allocation2 + $0xc1] sm:$0xff] }
  0x76   : > { %538 = vrot.lane.b32.xlu1 %v464_v63, %s6629_s30 }
  0x79   : > { %1205 = vrot.lane.b32.xlu0 %v654_v51, %s6630_s8  ;;  %v7145_v51 = vld [vmem:[#allocation2 + $0xc9] sm:$0xff] }
  0x7a   : > { %540 = vrot.lane.b32.xlu1 %v465_v0, %s6629_s30 }
  0x7d   : > { %731 = vrot.lane.b32.xlu0 %v657_v5, %s6630_s8 }
  0x7e   : > { %733 = vrot.lane.b32.xlu1 %v658_v6, %s6630_s8 }
  0x81   : > { %1015 = vrot.lane.b32.xlu0 %v462_v55, %s6629_s30  ;;  %v7147_v55 = vld [vmem:[#allocation2 + $0xd8] sm:$0xff] }
  0x82   : > { %1017 = vrot.lane.b32.xlu1 %v463_v56, %s6629_s30  ;;  %440 = vst.msk [vmem:[#allocation4 + $0x90] sm:$0xff] %vm311_vm0, %v7147_v55  ;;  %v7152_v56 = vld [vmem:[%s6859_s29 + $0xf0] sm:$0xff] }
  0x83   : > { %9370 = vst [vmem:[#allocation35_spill] sm:$0xff] %v7152_v56  ;;  %388 = vst.msk [vmem:[#allocation2 + $0x181] sm:$0xff] %vm311_vm0, %v7152_v56 }
  0x85   : > { %1207 = vrot.lane.b32.xlu0 %v655_v58, %s6630_s8  ;;  %v7160_v58 = vld [vmem:[%s6859_s29 + $0xf8] sm:$0xff] }
  0x86   : > { %542 = vrot.lane.b32.xlu1 %v466_v25, %s6629_s30  ;;  %9371 = vst [vmem:[#allocation36_spill] sm:$0xff] %v7160_v58  ;;  %389 = vst.msk [vmem:[#allocation2 + $0x189] sm:$0xff] %vm311_vm0, %v7160_v58 }
  0x89   : > { %1209 = vrot.lane.b32.xlu0 %v656_v59, %s6630_s8  ;;  %v663_v59 = vld [vmem:[#allocation2 + $0xc2] sm:$0xff] }
  0x8a   : > { %544 = vrot.lane.b32.xlu1 %v467_v26, %s6629_s30 }
  0x8d   : > { %735 = vrot.lane.b32.xlu0 %v659_v29, %s6630_s8 }
  0x8e   : > { %737 = vrot.lane.b32.xlu1 %v660_v30, %s6630_s8 }
  0x91   : > { %1019 = vrot.lane.b32.xlu0 %v464_v63, %s6629_s30  ;;  %v7162_v63 = vld [vmem:[#allocation2 + $0xca] sm:$0xff] }
  0x92   : > { %1021 = vrot.lane.b32.xlu1 %v465_v0, %s6629_s30  ;;  %v519_v0 = vpop.permute.xlu0 %518 }
  0x93   : > { %615 = vst.msk [vmem:[#allocation4] sm:$0xff] %vm614_vm3, %v519_v0 }
  0x95   : > { %1211 = vrot.lane.b32.xlu0 %v657_v5, %s6630_s8  ;;  %v712_v5 = vpop.permute.xlu1 %711 }
  0x96   : > { %546 = vrot.lane.b32.xlu1 %v468_v41, %s6629_s30  ;;  %808 = vst.msk [vmem:[#allocation4] sm:$0xff] %vm807_vm4, %v712_v5 }
  0x99   : > { %1213 = vrot.lane.b32.xlu0 %v658_v6, %s6630_s8  ;;  %v7166_v6 = vld [vmem:[#allocation2 + $0xe0] sm:$0xff] }
  0x9a   : > { %548 = vrot.lane.b32.xlu1 %v469_v42, %s6629_s30  ;;  %441 = vst.msk [vmem:[#allocation4 + $0x98] sm:$0xff] %vm311_vm0, %v7166_v6 }
  0x9d   : > { %739 = vrot.lane.b32.xlu0 %v661_v45, %s6630_s8  ;;  %v7183_v5 = vld [vmem:[#allocation4] sm:$0xff] }
  0x9e   : > { %741 = vrot.lane.b32.xlu1 %v662_v47, %s6630_s8  ;;  %907 = vst.msk [vmem:[#allocation4] sm:$0xff] %vm311_vm0, %v6957_v27  ;;  %v7205_v27 = vld [vmem:[#allocation2 + $0xda] sm:$0xff] }
  0xa1   : > { %1023 = vrot.lane.b32.xlu0 %v466_v25, %s6629_s30 }
  0xa2   : > { %1025 = vrot.lane.b32.xlu1 %v467_v26, %s6629_s30 }
  0xa5   : > { %1215 = vrot.lane.b32.xlu0 %v659_v29, %s6630_s8  ;;  %v7179_v29 = vld [vmem:[#allocation2 + $0xd9] sm:$0xff] }
  0xa6   : > { %550 = vrot.lane.b32.xlu1 %v7140_v50, %s6629_s30 }
  0xa9   : > { %1217 = vrot.lane.b32.xlu0 %v660_v30, %s6630_s8 }
  0xaa   : > { %552 = vrot.lane.b32.xlu1 %v7145_v51, %s6629_s30 }
  0xac   : > { %v521_v25 = vpop.permute.xlu0 %520 }
  0xad   : > { %743 = vrot.lane.b32.xlu0 %v663_v59, %s6630_s8  ;;  %616 = vst.msk [vmem:[#allocation4 + $0x8] sm:$0xff] %vm614_vm3, %v521_v25 }
  0xae   : > { %745 = vrot.lane.b32.xlu1 %v7162_v63, %s6630_s8 }
  0xb0   : > { %v714_v26 = vpop.permute.xlu1 %713 }
  0xb1   : > { %809 = vst.msk [vmem:[#allocation4 + $0x8] sm:$0xff] %vm807_vm4, %v714_v26  ;;  %1027 = vrot.lane.b32.xlu0 %v468_v41, %s6629_s30  ;;  %v7190_v41 = vld [vmem:[#allocation2 + $0xe1] sm:$0xff]  ;;  %v7192_v26 = vld [vmem:[#allocation2 + $0xf0] sm:$0xff] }
  0xb2   : > { %1029 = vrot.lane.b32.xlu1 %v469_v42, %s6629_s30  ;;  %442 = vst.msk [vmem:[#allocation4 + $0xa0] sm:$0xff] %vm311_vm0, %v7192_v26 }
  0xb3   : > { %v523_v30 = vpop.permute.xlu0 %522 }
  0xb4   : > { %v525_v0 = vpop.permute.xlu1 %524  ;;  %617 = vst.msk [vmem:[#allocation4 + $0x10] sm:$0xff] %vm614_vm3, %v523_v30 }
  0xb5   : > { %618 = vst.msk [vmem:[#allocation4 + $0x18] sm:$0xff] %vm614_vm3, %v525_v0  ;;  %1219 = vrot.lane.b32.xlu0 %v661_v45, %s6630_s8  ;;  %v7207_v45 = vld [vmem:[#allocation2 + $0xe2] sm:$0xff] }
  0xb6   : > { %554 = vrot.lane.b32.xlu1 %v7179_v29, %s6629_s30 }
  0xb7   : > { %v716_v42 = vpop.permute.xlu0 %715 }
  0xb8   : > { %v718_v25 = vpop.permute.xlu1 %717  ;;  %810 = vst.msk [vmem:[#allocation4 + $0x10] sm:$0xff] %vm807_vm4, %v716_v42  ;;  %v7196_v30 = vld [vmem:[#allocation4 + $0x8] sm:$0xff] }
  0xb9   : > { %811 = vst.msk [vmem:[#allocation4 + $0x18] sm:$0xff] %vm807_vm4, %v718_v25  ;;  %1221 = vrot.lane.b32.xlu0 %v662_v47, %s6630_s8  ;;  %v7209_v25 = vld [vmem:[#allocation2 + $0xf8] sm:$0xff] }
  0xba   : > { %556 = vrot.lane.b32.xlu1 %v7190_v41, %s6629_s30  ;;  %908 = vst.msk [vmem:[#allocation4 + $0x8] sm:$0xff] %vm311_vm0, %v6967_v34  ;;  %443 = vst.msk [vmem:[#allocation4 + $0xa8] sm:$0xff] %vm311_vm0, %v7209_v25 }
  0xbb   : > { %v527_v0 = vpop.permute.xlu0 %526 }
  0xbc   : > { %v529_v42 = vpop.permute.xlu1 %528  ;;  %619 = vst.msk [vmem:[#allocation4 + $0x20] sm:$0xff] %vm614_vm3, %v527_v0  ;;  %v7233_v0 = vld [vmem:[#allocation2 + $0xf1] sm:$0xff] }
  0xbd   : > { %620 = vst.msk [vmem:[#allocation4 + $0x28] sm:$0xff] %vm614_vm3, %v529_v42  ;;  %747 = vrot.lane.b32.xlu0 %v7205_v27, %s6630_s8 }
  0xbe   : > { %749 = vrot.lane.b32.xlu1 %v7207_v45, %s6630_s8 }
  0xbf   : > { %v720_v34 = vpop.permute.xlu0 %719  ;;  %v7219_v56 = vld [vmem:[#allocation4 + $0x10] sm:$0xff] }
  0xc0   : > { %v722_v47 = vpop.permute.xlu1 %721  ;;  %v7221_v58 = vld [vmem:[#allocation4 + $0x18] sm:$0xff]  ;;  %812 = vst.msk [vmem:[#allocation4 + $0x20] sm:$0xff] %vm807_vm4, %v720_v34 }
  0xc1   : > { %813 = vst.msk [vmem:[#allocation4 + $0x28] sm:$0xff] %vm807_vm4, %v722_v47  ;;  %1031 = vrot.lane.b32.xlu0 %v7140_v50, %s6629_s30  ;;  %v7246_v47 = vld [vmem:[#allocation2 + $0x108] sm:$0xff] }
  0xc2   : > { %909 = vst.msk [vmem:[#allocation4 + $0x10] sm:$0xff] %vm311_vm0, %v6971_v35  ;;  %910 = vst.msk [vmem:[#allocation4 + $0x18] sm:$0xff] %vm311_vm0, %v6973_v36  ;;  %1033 = vrot.lane.b32.xlu1 %v7145_v51, %s6629_s30  ;;  %v7240_v35 = vld [vmem:[#allocation2 + $0xf9] sm:$0xff] }
  0xc3   : > { %v1004_v42 = vpop.permute.xlu0 %1003  ;;  %444 = vst.msk [vmem:[#allocation4 + $0xb0] sm:$0xff] %vm311_vm0, %v7246_v47 }
  0xc4   : > { %v1006_v32 = vpop.permute.xlu1 %1005  ;;  %1099 = vst.msk [vmem:[#allocation4] sm:$0xff] %vm614_vm3, %v1004_v42 }
  0xc5   : > { %1100 = vst.msk [vmem:[#allocation4 + $0x8] sm:$0xff] %vm614_vm3, %v1006_v32  ;;  %1223 = vrot.lane.b32.xlu0 %v663_v59, %s6630_s8  ;;  %v7260_v32 = vld [vmem:[#allocation2 + $0xf2] sm:$0xff]  ;;  %v7262_v59 = vld [vmem:[#allocation2 + $0xfa] sm:$0xff] }
  0xc6   : > { %558 = vrot.lane.b32.xlu1 %v7233_v0, %s6629_s30 }
  0xc7   : > { %v1196_v36 = vpop.permute.xlu0 %1195  ;;  %v7242_v34 = vld [vmem:[#allocation4 + $0x20] sm:$0xff] }
  0xc8   : > { %v531_v50 = vpop.permute.xlu1 %530  ;;  %v7244_v51 = vld [vmem:[#allocation4 + $0x28] sm:$0xff]  ;;  %1291 = vst.msk [vmem:[#allocation4] sm:$0xff] %vm807_vm4, %v1196_v36 }
  0xc9   : > { %621 = vst.msk [vmem:[#allocation4 + $0x30] sm:$0xff] %vm614_vm3, %v531_v50  ;;  %1225 = vrot.lane.b32.xlu0 %v7162_v63, %s6630_s8  ;;  %v7264_v50 = vld [vmem:[#allocation2 + $0x110] sm:$0xff] }
  0xca   : > { %911 = vst.msk [vmem:[#allocation4 + $0x20] sm:$0xff] %vm311_vm0, %v6982_v38  ;;  %912 = vst.msk [vmem:[#allocation4 + $0x28] sm:$0xff] %vm311_vm0, %v6993_v40  ;;  %560 = vrot.lane.b32.xlu1 %v7240_v35, %s6629_s30 }
  0xcb   : > { %v1198_v42 = vpop.permute.xlu0 %1197  ;;  %445 = vst.msk [vmem:[#allocation4 + $0xb8] sm:$0xff] %vm311_vm0, %v7264_v50 }
  0xcc   : > { %v533_v36 = vpop.permute.xlu1 %532  ;;  %1292 = vst.msk [vmem:[#allocation4 + $0x8] sm:$0xff] %vm807_vm4, %v1198_v42  ;;  %v7281_v42 = vld [vmem:[#allocation2 + $0x109] sm:$0xff] }
  0xcd   : > { %622 = vst.msk [vmem:[#allocation4 + $0x38] sm:$0xff] %vm614_vm3, %v533_v36  ;;  %751 = vrot.lane.b32.xlu0 %v7260_v32, %s6630_s8 }
  0xce   : > { %753 = vrot.lane.b32.xlu1 %v7262_v59, %s6630_s8 }
  0xcf   : > { %v724_v38 = vpop.permute.xlu0 %723  ;;  %v1323_v63 = vld [vmem:[#allocation4] sm:$0xff] }
  0xd0   : > { %v726_v40 = vpop.permute.xlu1 %725  ;;  %814 = vst.msk [vmem:[#allocation4 + $0x30] sm:$0xff] %vm807_vm4, %v724_v38  ;;  %6139 = vmatprep.mubr.msk.f32.mxu0 %vm1359_vm5, %v1323_v63 }
  0xd1   : > { %815 = vst.msk [vmem:[#allocation4 + $0x38] sm:$0xff] %vm807_vm4, %v726_v40  ;;  %1035 = vrot.lane.b32.xlu0 %v7179_v29, %s6629_s30  ;;  %v7290_v29 = vld [vmem:[#allocation2 + $0x111] sm:$0xff] }
  0xd2   : > { %1037 = vrot.lane.b32.xlu1 %v7190_v41, %s6629_s30 }
  0xd3   : > { %v1008_v36 = vpop.permute.xlu0 %1007  ;;  %v1324_v21 = vld [vmem:[#allocation4 + $0x8] sm:$0xff] }
  0xd4   : > { %v1010_v33 = vpop.permute.xlu1 %1009  ;;  %1101 = vst.msk [vmem:[#allocation4 + $0x10] sm:$0xff] %vm614_vm3, %v1008_v36  ;;  %6140 = vmatmul.mubr.msk.f32.vlgmr.msra.gmra.mrb[0].mxu0 %vm1359_vm5, %v1324_v21  ;;  %v7310_v21 = vld [vmem:[#allocation2 + $0x10a] sm:$0xff] }
  0xd5   : > { %1102 = vst.msk [vmem:[#allocation4 + $0x18] sm:$0xff] %vm614_vm3, %v1010_v33  ;;  %1227 = vrot.lane.b32.xlu0 %v7205_v27, %s6630_s8  ;;  %v7312_v33 = vld [vmem:[#allocation2 + $0x112] sm:$0xff] }
  0xd6   : > { %562 = vrot.lane.b32.xlu1 %v7281_v42, %s6629_s30 }
  0xd7   : > { %v1200_v41 = vpop.permute.xlu0 %1199  ;;  %v7292_v40 = vld [vmem:[#allocation4 + $0x30] sm:$0xff] }
  0xd8   : > { %v535_v38 = vpop.permute.xlu1 %534  ;;  %v7294_v63 = vld [vmem:[#allocation4 + $0x38] sm:$0xff]  ;;  %1293 = vst.msk [vmem:[#allocation4 + $0x10] sm:$0xff] %vm807_vm4, %v1200_v41  ;;  %v7314_v41 = vld [vmem:[#allocation2 + $0x128] sm:$0xff] }
  0xd9   : > { %623 = vst.msk [vmem:[#allocation4 + $0x40] sm:$0xff] %vm614_vm3, %v535_v38  ;;  %1229 = vrot.lane.b32.xlu0 %v7207_v45, %s6630_s8  ;;  %v7331_v38 = vld [vmem:[#allocation2 + $0x121] sm:$0xff] }
  0xda   : > { %913 = vst.msk [vmem:[#allocation4 + $0x30] sm:$0xff] %vm311_vm0, %v7022_v49  ;;  %914 = vst.msk [vmem:[#allocation4 + $0x38] sm:$0xff] %vm311_vm0, %v7028_v52  ;;  %564 = vrot.lane.b32.xlu1 %v7290_v29, %s6629_s30 }
  0xdb   : > { %v1202_v27 = vpop.permute.xlu0 %1201  ;;  %447 = vst.msk [vmem:[#allocation4 + $0xc8] sm:$0xff] %vm311_vm0, %v7314_v41 }
  0xdc   : > { %v537_v36 = vpop.permute.xlu1 %536  ;;  %1294 = vst.msk [vmem:[#allocation4 + $0x18] sm:$0xff] %vm807_vm4, %v1202_v27 }
  0xdd   : > { %624 = vst.msk [vmem:[#allocation4 + $0x48] sm:$0xff] %vm614_vm3, %v537_v36  ;;  %755 = vrot.lane.b32.xlu0 %v7310_v21, %s6630_s8 }
  0xde   : > { %757 = vrot.lane.b32.xlu1 %v7312_v33, %s6630_s8 }
  0xdf   : > { %v728_v49 = vpop.permute.xlu0 %727  ;;  %v1325_v45 = vld [vmem:[#allocation4 + $0x10] sm:$0xff] }
  0xe0   : > { %v730_v52 = vpop.permute.xlu1 %729  ;;  %816 = vst.msk [vmem:[#allocation4 + $0x40] sm:$0xff] %vm807_vm4, %v728_v49  ;;  %6142 = vmatprep.mubr.msk.f32.mxu0 %vm1359_vm5, %v1325_v45 }
  0xe1   : > { %817 = vst.msk [vmem:[#allocation4 + $0x48] sm:$0xff] %vm807_vm4, %v730_v52  ;;  %1039 = vrot.lane.b32.xlu0 %v7233_v0, %s6629_s30  ;;  %v7340_v0 = vld [vmem:[#allocation2 + $0x129] sm:$0xff] }
  0xe2   : > { %1041 = vrot.lane.b32.xlu1 %v7240_v35, %s6629_s30 }
  0xe3   : > { %v1012_v27 = vpop.permute.xlu0 %1011  ;;  %v1326_v61 = vld [vmem:[#allocation4 + $0x18] sm:$0xff] }
  0xe4   : > { %v1014_v36 = vpop.permute.xlu1 %1013  ;;  %1103 = vst.msk [vmem:[#allocation4 + $0x20] sm:$0xff] %vm614_vm3, %v1012_v27  ;;  %6143 = vmatmul.mubr.msk.f32.gmra.mrb[2].mxu0 %vm1359_vm5, %v1326_v61  ;;  %v7360_v61 = vld [vmem:[#allocation2 + $0x122] sm:$0xff] }
  0xe5   : > { %1104 = vst.msk [vmem:[#allocation4 + $0x28] sm:$0xff] %vm614_vm3, %v1014_v36  ;;  %1231 = vrot.lane.b32.xlu0 %v7260_v32, %s6630_s8  ;;  %v7362_v32 = vld [vmem:[#allocation2 + $0x12a] sm:$0xff] }
  0xe6   : > { %566 = vrot.lane.b32.xlu1 %v7331_v38, %s6629_s30 }
  0xe7   : > { %v1204_v35 = vpop.permute.xlu0 %1203  ;;  %v7342_v52 = vld [vmem:[#allocation4 + $0x40] sm:$0xff] }
  0xe8   : > { %v539_v49 = vpop.permute.xlu1 %538  ;;  %v7344_v45 = vld [vmem:[#allocation4 + $0x48] sm:$0xff]  ;;  %1295 = vst.msk [vmem:[#allocation4 + $0x20] sm:$0xff] %vm807_vm4, %v1204_v35  ;;  %v7364_v35 = vld [vmem:[#allocation2 + $0x140] sm:$0xff] }
  0xe9   : > { %625 = vst.msk [vmem:[#allocation4 + $0x50] sm:$0xff] %vm614_vm3, %v539_v49  ;;  %1233 = vrot.lane.b32.xlu0 %v7262_v59, %s6630_s8  ;;  %v7381_v49 = vld [vmem:[#allocation2 + $0x139] sm:$0xff] }
  0xea   : > { %915 = vst.msk [vmem:[#allocation4 + $0x40] sm:$0xff] %vm311_vm0, %v7048_v57  ;;  %916 = vst.msk [vmem:[#allocation4 + $0x48] sm:$0xff] %vm311_vm0, %v7054_v60  ;;  %568 = vrot.lane.b32.xlu1 %v7340_v0, %s6629_s30 }
  0xeb   : > { %v1206_v27 = vpop.permute.xlu0 %1205  ;;  %449 = vst.msk [vmem:[#allocation4 + $0xd8] sm:$0xff] %vm311_vm0, %v7364_v35 }
  0xec   : > { %v541_v36 = vpop.permute.xlu1 %540  ;;  %1296 = vst.msk [vmem:[#allocation4 + $0x28] sm:$0xff] %vm807_vm4, %v1206_v27 }
  0xed   : > { %626 = vst.msk [vmem:[#allocation4 + $0x58] sm:$0xff] %vm614_vm3, %v541_v36  ;;  %759 = vrot.lane.b32.xlu0 %v7360_v61, %s6630_s8 }
  0xee   : > { %761 = vrot.lane.b32.xlu1 %v7362_v32, %s6630_s8 }
  0xef   : > { %v732_v57 = vpop.permute.xlu0 %731  ;;  %v1327_v59 = vld [vmem:[#allocation4 + $0x20] sm:$0xff] }
  0xf0   : > { %v734_v60 = vpop.permute.xlu1 %733  ;;  %818 = vst.msk [vmem:[#allocation4 + $0x50] sm:$0xff] %vm807_vm4, %v732_v57  ;;  %6145 = vmatprep.mubr.msk.f32.mxu0 %vm1359_vm5, %v1327_v59  ;;  %v872_v57 = vld [vmem:[%s9301_s1] sm:$0xff] }
  0xf1   : > { %819 = vst.msk [vmem:[#allocation4 + $0x58] sm:$0xff] %vm807_vm4, %v734_v60  ;;  %1043 = vrot.lane.b32.xlu0 %v7281_v42, %s6629_s30  ;;  %v873_v42 = vld [vmem:[%s9301_s1 + $0x8] sm:$0xff] }
  0xf2   : > { %1045 = vrot.lane.b32.xlu1 %v7290_v29, %s6629_s30  ;;  %v6461_v60 = vpack.c.bf16 %v873_v42, %v872_v57  ;;  %v7396_v59 = vld [vmem:[#allocation2 + $0x141] sm:$0xff] }
  0xf3   : > { %v1016_v27 = vpop.permute.xlu0 %1015  ;;  %v1328_v53 = vld [vmem:[#allocation4 + $0x28] sm:$0xff]  ;;  %v7416_v57 = vld [vmem:[#allocation2 + $0x13a] sm:$0xff] }
  0xf4   : > { %v1018_v36 = vpop.permute.xlu1 %1017  ;;  %1105 = vst.msk [vmem:[#allocation4 + $0x30] sm:$0xff] %vm614_vm3, %v1016_v27  ;;  %6146 = vmatmul.mubr.msk.f32.gmra.mrb[4].mxu0 %vm1359_vm5, %v1328_v53  ;;  %6462 = vmatprep.subr.bf16.mxu0 %v6461_v60  ;;  %v7418_v42 = vld [vmem:[#allocation2 + $0x142] sm:$0xff] }
  0xf5   : > { %1106 = vst.msk [vmem:[#allocation4 + $0x38] sm:$0xff] %vm614_vm3, %v1018_v36  ;;  %1235 = vrot.lane.b32.xlu0 %v7310_v21, %s6630_s8  ;;  %6464 = vmatpush3.bf16.msra.mxu0 %v6461_v60 }
  0xf6   : > { %570 = vrot.lane.b32.xlu1 %v7381_v49, %s6629_s30 }
  0xf7   : > { %v1208_v27 = vpop.permute.xlu0 %1207  ;;  %v7398_v53 = vld [vmem:[#allocation4 + $0x50] sm:$0xff] }
  0xf8   : > { %v543_v36 = vpop.permute.xlu1 %542  ;;  %v7400_v54 = vld [vmem:[#allocation4 + $0x58] sm:$0xff]  ;;  %1297 = vst.msk [vmem:[#allocation4 + $0x30] sm:$0xff] %vm807_vm4, %v1208_v27 }
  0xf9   : > { %627 = vst.msk [vmem:[#allocation4 + $0x60] sm:$0xff] %vm614_vm3, %v543_v36  ;;  %1237 = vrot.lane.b32.xlu0 %v7312_v33, %s6630_s8 }
  0xfa   : > { %917 = vst.msk [vmem:[#allocation4 + $0x50] sm:$0xff] %vm311_vm0, %v7074_v4  ;;  %918 = vst.msk [vmem:[#allocation4 + $0x58] sm:$0xff] %vm311_vm0, %v7080_v7  ;;  %572 = vrot.lane.b32.xlu1 %v7396_v59, %s6629_s30  ;;  %v7420_v4 = vld [vmem:[#allocation2 + $0x158] sm:$0xff] }
  0xfb   : > { %v1210_v27 = vpop.permute.xlu0 %1209  ;;  %451 = vst.msk [vmem:[#allocation4 + $0xe8] sm:$0xff] %vm311_vm0, %v7420_v4 }
  0xfc   : > { %v545_v36 = vpop.permute.xlu1 %544  ;;  %1298 = vst.msk [vmem:[#allocation4 + $0x38] sm:$0xff] %vm807_vm4, %v1210_v27  ;;  %v7437_v27 = vld [vmem:[#allocation2 + $0x151] sm:$0xff] }
  0xfd   : > { %628 = vst.msk [vmem:[#allocation4 + $0x68] sm:$0xff] %vm614_vm3, %v545_v36  ;;  %763 = vrot.lane.b32.xlu0 %v7416_v57, %s6630_s8 }
  0xfe   : > { %765 = vrot.lane.b32.xlu1 %v7418_v42, %s6630_s8 }
  0xff   : > { %v736_v7 = vpop.permute.xlu0 %735  ;;  %v1329_v46 = vld [vmem:[#allocation4 + $0x30] sm:$0xff] }
 0x100   : > { %v738_v60 = vpop.permute.xlu1 %737  ;;  %820 = vst.msk [vmem:[#allocation4 + $0x60] sm:$0xff] %vm807_vm4, %v736_v7  ;;  %6148 = vmatprep.mubr.msk.f32.mxu0 %vm1359_vm5, %v1329_v46  ;;  %v7446_v46 = vld [vmem:[#allocation2 + $0x159] sm:$0xff] }
 0x101   : > { %821 = vst.msk [vmem:[#allocation4 + $0x68] sm:$0xff] %vm807_vm4, %v738_v60  ;;  %1047 = vrot.lane.b32.xlu0 %v7331_v38, %s6629_s30 }
 0x102   : > { %1049 = vrot.lane.b32.xlu1 %v7340_v0, %s6629_s30 }
 0x103   : > { %v1020_v36 = vpop.permute.xlu0 %1019  ;;  %v1330_v39 = vld [vmem:[#allocation4 + $0x38] sm:$0xff] }
 0x104   : > { %v1022_v37 = vpop.permute.xlu1 %1021  ;;  %1107 = vst.msk [vmem:[#allocation4 + $0x40] sm:$0xff] %vm614_vm3, %v1020_v36  ;;  %6149 = vmatmul.mubr.msk.f32.gmra.mrb[6].mxu0 %vm1359_vm5, %v1330_v39  ;;  %v7468_v39 = vld [vmem:[#allocation2 + $0x15a] sm:$0xff] }
 0x105   : > { %1108 = vst.msk [vmem:[#allocation4 + $0x48] sm:$0xff] %vm614_vm3, %v1022_v37  ;;  %1239 = vrot.lane.b32.xlu0 %v7360_v61, %s6630_s8  ;;  %v7466_v37 = vld [vmem:[#allocation2 + $0x152] sm:$0xff] }
 0x106   : > { %574 = vrot.lane.b32.xlu1 %v7437_v27, %s6629_s30 }
 0x107   : > { %v1212_v7 = vpop.permute.xlu0 %1211  ;;  %v7448_v23 = vld [vmem:[#allocation4 + $0x60] sm:$0xff] }
 0x108   : > { %v547_v60 = vpop.permute.xlu1 %546  ;;  %v7450_v24 = vld [vmem:[#allocation4 + $0x68] sm:$0xff]  ;;  %1299 = vst.msk [vmem:[#allocation4 + $0x40] sm:$0xff] %vm807_vm4, %v1212_v7 }
 0x109   : > { %629 = vst.msk [vmem:[#allocation4 + $0x70] sm:$0xff] %vm614_vm3, %v547_v60  ;;  %1241 = vrot.lane.b32.xlu0 %v7362_v32, %s6630_s8  ;;  %v7470_v60 = vld [vmem:[#allocation2 + $0x170] sm:$0xff] }
 0x10a   : > { %919 = vst.msk [vmem:[#allocation4 + $0x60] sm:$0xff] %vm311_vm0, %v7100_v28  ;;  %920 = vst.msk [vmem:[#allocation4 + $0x68] sm:$0xff] %vm311_vm0, %v7106_v31  ;;  %576 = vrot.lane.b32.xlu1 %v7446_v46, %s6629_s30 }
 0x10b   : > { %v1214_v36 = vpop.permute.xlu0 %1213  ;;  %453 = vst.msk [vmem:[#allocation4 + $0xf8] sm:$0xff] %vm311_vm0, %v7470_v60 }
 0x10c   : > { %v549_v7 = vpop.permute.xlu1 %548  ;;  %1300 = vst.msk [vmem:[#allocation4 + $0x48] sm:$0xff] %vm807_vm4, %v1214_v36  ;;  %v7487_v36 = vld [vmem:[#allocation2 + $0x169] sm:$0xff] }
 0x10d   : > { %630 = vst.msk [vmem:[#allocation4 + $0x78] sm:$0xff] %vm614_vm3, %v549_v7  ;;  %767 = vrot.lane.b32.xlu0 %v7466_v37, %s6630_s8 }
 0x10e   : > { %769 = vrot.lane.b32.xlu1 %v7468_v39, %s6630_s8 }
 0x10f   : > { %v740_v28 = vpop.permute.xlu0 %739  ;;  %v1331_v20 = vld [vmem:[#allocation4 + $0x40] sm:$0xff] }
 0x110   : > { %v742_v31 = vpop.permute.xlu1 %741  ;;  %822 = vst.msk [vmem:[#allocation4 + $0x70] sm:$0xff] %vm807_vm4, %v740_v28  ;;  %6151 = vmatprep.mubr.msk.f32.mxu0 %vm1359_vm5, %v1331_v20  ;;  %v874_v20 = vld [vmem:[%s9301_s1 + $0x10] sm:$0xff] }
 0x111   : > { %823 = vst.msk [vmem:[#allocation4 + $0x78] sm:$0xff] %vm807_vm4, %v742_v31  ;;  %1051 = vrot.lane.b32.xlu0 %v7381_v49, %s6629_s30  ;;  %v7499_v28 = vld [vmem:[#allocation2 + $0x171] sm:$0xff]  ;;  %6191 = vmatprep.subr.mxu0 %v874_v20 }
 0x112   : > { %1053 = vrot.lane.b32.xlu1 %v7396_v59, %s6629_s30  ;;  %6192 = vmatpush3.msra.mxu0 %v874_v20 }
 0x113   : > { %v1024_v7 = vpop.permute.xlu0 %1023  ;;  %v1332_v18 = vld [vmem:[#allocation4 + $0x48] sm:$0xff] }
 0x114   : > { %v1026_v17 = vpop.permute.xlu1 %1025  ;;  %1109 = vst.msk [vmem:[#allocation4 + $0x50] sm:$0xff] %vm614_vm3, %v1024_v7  ;;  %6152 = vmatmul.mubr.msk.f32.gmra.mrb[8].mxu0 %vm1359_vm5, %v1332_v18  ;;  %v7515_v18 = vld [vmem:[#allocation2 + $0x16a] sm:$0xff] }
 0x115   : > { %1110 = vst.msk [vmem:[#allocation4 + $0x58] sm:$0xff] %vm614_vm3, %v1026_v17  ;;  %1243 = vrot.lane.b32.xlu0 %v7416_v57, %s6630_s8 }
 0x116   : > { %578 = vrot.lane.b32.xlu1 %v7487_v36, %s6629_s30 }
 0x117   : > { %v1216_v31 = vpop.permute.xlu0 %1215  ;;  %v7501_v7 = vld [vmem:[#allocation4 + $0x70] sm:$0xff] }
 0x118   : > { %v551_v15 = vpop.permute.xlu1 %550  ;;  %v7503_v17 = vld [vmem:[#allocation4 + $0x78] sm:$0xff]  ;;  %1301 = vst.msk [vmem:[#allocation4 + $0x50] sm:$0xff] %vm807_vm4, %v1216_v31 }
 0x119   : > { %631 = vst.msk [vmem:[#allocation4 + $0x80] sm:$0xff] %vm614_vm3, %v551_v15  ;;  %1245 = vrot.lane.b32.xlu0 %v7418_v42, %s6630_s8 }
 0x11a   : > { %921 = vst.msk [vmem:[#allocation4 + $0x70] sm:$0xff] %vm311_vm0, %v7126_v44  ;;  %922 = vst.msk [vmem:[#allocation4 + $0x78] sm:$0xff] %vm311_vm0, %v7132_v48  ;;  %580 = vrot.lane.b32.xlu1 %v7499_v28, %s6629_s30 }
 0x11b   : > { %v1218_v20 = vpop.permute.xlu0 %1217 }
 0x11c   : > { %v553_v31 = vpop.permute.xlu1 %552  ;;  %1302 = vst.msk [vmem:[#allocation4 + $0x58] sm:$0xff] %vm807_vm4, %v1218_v20 }
 0x11d   : > { %632 = vst.msk [vmem:[#allocation4 + $0x88] sm:$0xff] %vm614_vm3, %v553_v31  ;;  %771 = vrot.lane.b32.xlu0 %v7515_v18, %s6630_s8 }
 0x11e   : > { %773 = vrot.lane.b32.xlu1 %v7517_v16, %s6630_s8 }
 0x11f   : > { %v744_v15 = vpop.permute.xlu0 %743  ;;  %v1333_v48 = vld [vmem:[#allocation4 + $0x50] sm:$0xff] }
 0x120   : > { %v746_v44 = vpop.permute.xlu1 %745  ;;  %824 = vst.msk [vmem:[#allocation4 + $0x80] sm:$0xff] %vm807_vm4, %v744_v15  ;;  %6154 = vmatprep.mubr.msk.f32.mxu0 %vm1359_vm5, %v1333_v48 }
 0x121   : > { %825 = vst.msk [vmem:[#allocation4 + $0x88] sm:$0xff] %vm807_vm4, %v746_v44  ;;  %1055 = vrot.lane.b32.xlu0 %v7437_v27, %s6629_s30 }
 0x122   : > { %1057 = vrot.lane.b32.xlu1 %v7446_v46, %s6629_s30 }
 0x123   : > { %v1028_v20 = vpop.permute.xlu0 %1027  ;;  %v1334_v13 = vld [vmem:[#allocation4 + $0x58] sm:$0xff] }
 0x124   : > { %v1030_v31 = vpop.permute.xlu1 %1029  ;;  %1111 = vst.msk [vmem:[#allocation4 + $0x60] sm:$0xff] %vm614_vm3, %v1028_v20  ;;  %6155 = vmatmul.mubr.msk.f32.gmra.mrb[10].mxu0 %vm1359_vm5, %v1334_v13  ;;  %v2003_v13 = vld [vmem:[#allocation2 + $0x30] sm:$0xff] }
 0x125   : > { %1112 = vst.msk [vmem:[#allocation4 + $0x68] sm:$0xff] %vm614_vm3, %v1030_v31  ;;  %1247 = vrot.lane.b32.xlu0 %v7466_v37, %s6630_s8 }
 0x126   : > { %1249 = vrot.lane.b32.xlu1 %v7468_v39, %s6630_s8  ;;  %2035 = vst.msk [vmem:[#allocation4] sm:$0xff] %vm311_vm0, %v2003_v13 }
 0x127   : > { %v1220_v15 = vpop.permute.xlu0 %1219  ;;  %v7539_v48 = vld [vmem:[#allocation4 + $0x80] sm:$0xff] }
 0x128   : > { %v555_v44 = vpop.permute.xlu1 %554  ;;  %9372 = vst [vmem:[#allocation37_spill] sm:$0xff] %v7539_v48  ;;  %v7541_v14 = vld [vmem:[#allocation4 + $0x88] sm:$0xff]  ;;  %1303 = vst.msk [vmem:[#allocation4 + $0x60] sm:$0xff] %vm807_vm4, %v1220_v15  ;;  %v2004_v15 = vld [vmem:[#allocation2 + $0x38] sm:$0xff] }
 0x129   : > { %9373 = vst [vmem:[#allocation38_spill] sm:$0xff] %v7541_v14  ;;  %633 = vst.msk [vmem:[#allocation4 + $0x90] sm:$0xff] %vm614_vm3, %v555_v44  ;;  %1059 = vrot.lane.b32.xlu0 %v7487_v36, %s6629_s30 }
 0x12a   : > { %923 = vst.msk [vmem:[#allocation4 + $0x80] sm:$0xff] %vm311_vm0, %v7147_v55  ;;  %924 = vst.msk [vmem:[#allocation4 + $0x88] sm:$0xff] %vm311_vm0, %v7166_v6  ;;  %1061 = vrot.lane.b32.xlu1 %v7499_v28, %s6629_s30  ;;  %v7561_v55 = vld [vmem:[#allocation2 + $0x181] sm:$0xff]  ;;  %v7563_v6 = vld [vmem:[#allocation2 + $0x189] sm:$0xff] }
 0x12b   : > { %v1222_v20 = vpop.permute.xlu0 %1221  ;;  %2036 = vst.msk [vmem:[#allocation4 + $0x8] sm:$0xff] %vm311_vm0, %v2004_v15  ;;  %v2005_v15 = vld [vmem:[#allocation2 + $0x48] sm:$0xff] }
 0x12c   : > { %v557_v31 = vpop.permute.xlu1 %556  ;;  %1304 = vst.msk [vmem:[#allocation4 + $0x68] sm:$0xff] %vm807_vm4, %v1222_v20  ;;  %v7572_v20 = vld [vmem:[#allocation2 + $0x182] sm:$0xff] }
 0x12d   : > { %634 = vst.msk [vmem:[#allocation4 + $0x98] sm:$0xff] %vm614_vm3, %v557_v31  ;;  %1251 = vrot.lane.b32.xlu0 %v7515_v18, %s6630_s8  ;;  %v7574_v31 = vld [vmem:[#allocation2 + $0x18a] sm:$0xff] }
 0x12e   : > { %1253 = vrot.lane.b32.xlu1 %v7517_v16, %s6630_s8  ;;  %2037 = vst.msk [vmem:[#allocation4 + $0x10] sm:$0xff] %vm311_vm0, %v2005_v15 }
 0x12f   : > { %v748_v44 = vpop.permute.xlu0 %747  ;;  %v1335_v13 = vld [vmem:[#allocation4 + $0x60] sm:$0xff] }
 0x130   : > { %v750_v11 = vpop.permute.xlu1 %749  ;;  %826 = vst.msk [vmem:[#allocation4 + $0x90] sm:$0xff] %vm807_vm4, %v748_v44  ;;  %6157 = vmatprep.mubr.msk.f32.mxu0 %vm1359_vm5, %v1335_v13  ;;  %v5778_v44 = vld [vmem:[%s9301_s1 + $0x30] sm:$0xff]  ;;  %v5779_v13 = vld [vmem:[%s9301_s1 + $0x38] sm:$0xff] }
 0x131   : > { %827 = vst.msk [vmem:[#allocation4 + $0x98] sm:$0xff] %vm807_vm4, %v750_v11  ;;  %1063 = vrot.lane.b32.xlu0 %v7561_v55, %s6629_s30  ;;  %v2006_v11 = vld [vmem:[#allocation2 + $0x50] sm:$0xff] }
 0x132   : > { %1065 = vrot.lane.b32.xlu1 %v7563_v6, %s6629_s30  ;;  %2038 = vst.msk [vmem:[#allocation4 + $0x18] sm:$0xff] %vm311_vm0, %v2006_v11  ;;  %v2259_v11 = vld [vmem:[#allocation2 + $0x32] sm:$0xff] }
 0x133   : > { %v1032_v12 = vpop.permute.xlu0 %1031  ;;  %v1336_v10 = vld [vmem:[#allocation4 + $0x68] sm:$0xff] }
 0x134   : > { %v1034_v9 = vpop.permute.xlu1 %1033  ;;  %1113 = vst.msk [vmem:[#allocation4 + $0x70] sm:$0xff] %vm614_vm3, %v1032_v12  ;;  %6158 = vmatmul.mubr.msk.f32.gmra.mrb[12].mxu0 %vm1359_vm5, %v1336_v10  ;;  %v2067_v10 = vld [vmem:[#allocation2 + $0x31] sm:$0xff]  ;;  %v2068_v12 = vld [vmem:[#allocation2 + $0x39] sm:$0xff] }
 0x135   : > { %1114 = vst.msk [vmem:[#allocation4 + $0x78] sm:$0xff] %vm614_vm3, %v1034_v9  ;;  %1255 = vrot.lane.b32.xlu0 %v7572_v20, %s6630_s8  ;;  %v7591_v9 = vpack.c.bf16 %v5779_v13, %v5778_v44  ;;  %v2260_v44 = vld [vmem:[#allocation2 + $0x3a] sm:$0xff] }
 0x136   : > { %1257 = vrot.lane.b32.xlu1 %v7574_v31, %s6630_s8  ;;  %v2007_v13 = vld [vmem:[#allocation2 + $0x60] sm:$0xff] }
 0x137   : > { %v1224_v15 = vpop.permute.xlu0 %1223  ;;  %v7593_v8 = vld [vmem:[#allocation4 + $0x90] sm:$0xff]  ;;  %6466 = vmatprep.subr.bf16.mxu0 %v7591_v9  ;;  %2039 = vst.msk [vmem:[#allocation4 + $0x20] sm:$0xff] %vm311_vm0, %v2007_v13 }
 0x138   : > { %v559_v3 = vpop.permute.xlu1 %558  ;;  %9374 = vst [vmem:[#allocation39_spill] sm:$0xff] %v7593_v8  ;;  %v7595_v1 = vld [vmem:[#allocation4 + $0x98] sm:$0xff]  ;;  %1305 = vst.msk [vmem:[#allocation4 + $0x70] sm:$0xff] %vm807_vm4, %v1224_v15 }
 0x139   : > { %9375 = vst [vmem:[#allocation40_spill] sm:$0xff] %v7595_v1  ;;  %635 = vst.msk [vmem:[#allocation4 + $0xa0] sm:$0xff] %vm614_vm3, %v559_v3  ;;  %2131 = vrot.lane.b32.xlu0 %v2067_v10, %s6629_s30  ;;  %v2008_v3 = vld [vmem:[#allocation2 + $0x68] sm:$0xff] }
 0x13a   : > { %925 = vst.msk [vmem:[#allocation4 + $0x90] sm:$0xff] %vm311_vm0, %v7192_v26  ;;  %926 = vst.msk [vmem:[#allocation4 + $0x98] sm:$0xff] %vm311_vm0, %v7209_v25  ;;  %2133 = vrot.lane.b32.xlu1 %v2068_v12, %s6629_s30  ;;  %v2069_v10 = vld [vmem:[#allocation2 + $0x49] sm:$0xff]  ;;  %v2070_v12 = vld [vmem:[#allocation2 + $0x51] sm:$0xff] }
 0x13b   : > { %v1226_v2 = vpop.permute.xlu0 %1225  ;;  %2040 = vst.msk [vmem:[#allocation4 + $0x28] sm:$0xff] %vm311_vm0, %v2008_v3 }
 0x13c   : > { %v561_v1 = vpop.permute.xlu1 %560  ;;  %1306 = vst.msk [vmem:[#allocation4 + $0x78] sm:$0xff] %vm807_vm4, %v1226_v2  ;;  %v2262_v2 = vld [vmem:[#allocation2 + $0x52] sm:$0xff] }
 0x13d   : > { %636 = vst.msk [vmem:[#allocation4 + $0xa8] sm:$0xff] %vm614_vm3, %v561_v1  ;;  %2323 = vrot.lane.b32.xlu0 %v2259_v11, %s6630_s8  ;;  %v2261_v1 = vld [vmem:[#allocation2 + $0x4a] sm:$0xff]  ;;  %v2009_v11 = vld [vmem:[#allocation2 + $0x78] sm:$0xff] }
 0x13e   : > { %2325 = vrot.lane.b32.xlu1 %v2260_v44, %s6630_s8  ;;  %2041 = vst.msk [vmem:[#allocation4 + $0x30] sm:$0xff] %vm311_vm0, %v2009_v11 }
 0x13f   : > { %v752_v15 = vpop.permute.xlu0 %751  ;;  %v1337_v14 = vld [vmem:[#allocation4 + $0x70] sm:$0xff] }
 0x140   : > { %v754_v8 = vpop.permute.xlu1 %753  ;;  %828 = vst.msk [vmem:[#allocation4 + $0xa0] sm:$0xff] %vm807_vm4, %v752_v15  ;;  %6160 = vmatprep.mubr.msk.f32.mxu0 %vm1359_vm5, %v1337_v14  ;;  %v2071_v14 = vld [vmem:[#allocation2 + $0x61] sm:$0xff] }
 0x141   : > { %829 = vst.msk [vmem:[#allocation4 + $0xa8] sm:$0xff] %vm807_vm4, %v754_v8  ;;  %2135 = vrot.lane.b32.xlu0 %v2069_v10, %s6629_s30  ;;  %v2010_v8 = vld [vmem:[#allocation2 + $0x80] sm:$0xff]  ;;  %v2072_v10 = vld [vmem:[#allocation2 + $0x69] sm:$0xff] }
 0x142   : > { %2137 = vrot.lane.b32.xlu1 %v2070_v12, %s6629_s30  ;;  %2042 = vst.msk [vmem:[#allocation4 + $0x38] sm:$0xff] %vm311_vm0, %v2010_v8  ;;  %v2012_v8 = vld [vmem:[#allocation2 + $0x98] sm:$0xff] }
 0x143   : > { %v1036_v44 = vpop.permute.xlu0 %1035  ;;  %v1338_v3 = vld [vmem:[#allocation4 + $0x78] sm:$0xff]  ;;  %2044 = vst.msk [vmem:[#allocation4 + $0x48] sm:$0xff] %vm311_vm0, %v2012_v8 }
 0x144   : > { %v1038_v13 = vpop.permute.xlu1 %1037  ;;  %1115 = vst.msk [vmem:[#allocation4 + $0x80] sm:$0xff] %vm614_vm3, %v1036_v44  ;;  %6161 = vmatmul.mubr.msk.f32.gmra.mrb[14].mxu0 %vm1359_vm5, %v1338_v3  ;;  %v2011_v44 = vld [vmem:[#allocation2 + $0x90] sm:$0xff] }
 0x145   : > { %1116 = vst.msk [vmem:[#allocation4 + $0x88] sm:$0xff] %vm614_vm3, %v1038_v13  ;;  %2327 = vrot.lane.b32.xlu0 %v2261_v1, %s6630_s8  ;;  %v2263_v1 = vld [vmem:[#allocation2 + $0x62] sm:$0xff] }
 0x146   : > { %2329 = vrot.lane.b32.xlu1 %v2262_v2, %s6630_s8  ;;  %v2264_v2 = vld [vmem:[#allocation2 + $0x6a] sm:$0xff]  ;;  %2043 = vst.msk [vmem:[#allocation4 + $0x40] sm:$0xff] %vm311_vm0, %v2011_v44 }
 0x147   : > { %v1228_v12 = vpop.permute.xlu0 %1227  ;;  %v7624_v48 = vld [vmem:[#allocation4 + $0xa0] sm:$0xff]  ;;  %v2013_v44 = vld [vmem:[#allocation2 + $0xa8] sm:$0xff] }
 0x148   : > { %v563_v15 = vpop.permute.xlu1 %562  ;;  %v7626_v11 = vld [vmem:[#allocation4 + $0xa8] sm:$0xff]  ;;  %1307 = vst.msk [vmem:[#allocation4 + $0x80] sm:$0xff] %vm807_vm4, %v1228_v12 }
 0x149   : > { %9376 = vst [vmem:[#allocation41_spill] sm:$0xff] %v7626_v11  ;;  %637 = vst.msk [vmem:[#allocation4 + $0xb0] sm:$0xff] %vm614_vm3, %v563_v15  ;;  %2139 = vrot.lane.b32.xlu0 %v2071_v14, %s6629_s30  ;;  %v2073_v14 = vld [vmem:[#allocation2 + $0x79] sm:$0xff] }
 0x14a   : > { %927 = vst.msk [vmem:[#allocation4 + $0xa0] sm:$0xff] %vm311_vm0, %v7246_v47  ;;  %928 = vst.msk [vmem:[#allocation4 + $0xa8] sm:$0xff] %vm311_vm0, %v7264_v50  ;;  %2141 = vrot.lane.b32.xlu1 %v2072_v10, %s6629_s30  ;;  %v2074_v10 = vld [vmem:[#allocation2 + $0x81] sm:$0xff] }
 0x14b   : > { %v1230_v13 = vpop.permute.xlu0 %1229  ;;  %2045 = vst.msk [vmem:[#allocation4 + $0x50] sm:$0xff] %vm311_vm0, %v2013_v44 }
 0x14c   : > { %v565_v3 = vpop.permute.xlu1 %564  ;;  %1308 = vst.msk [vmem:[#allocation4 + $0x88] sm:$0xff] %vm807_vm4, %v1230_v13 }
 0x14d   : > { %638 = vst.msk [vmem:[#allocation4 + $0xb8] sm:$0xff] %vm614_vm3, %v565_v3  ;;  %2331 = vrot.lane.b32.xlu0 %v2263_v1, %s6630_s8  ;;  %v2265_v1 = vld [vmem:[#allocation2 + $0x7a] sm:$0xff] }
 0x14e   : > { %2333 = vrot.lane.b32.xlu1 %v2264_v2, %s6630_s8  ;;  %v2266_v2 = vld [vmem:[#allocation2 + $0x82] sm:$0xff] }
 0x14f   : > { %v756_v12 = vpop.permute.xlu0 %755  ;;  %v1339_v11 = vld [vmem:[#allocation4 + $0x80] sm:$0xff] }
 0x150   : > { %v758_v15 = vpop.permute.xlu1 %757  ;;  %830 = vst.msk [vmem:[#allocation4 + $0xb0] sm:$0xff] %vm807_vm4, %v756_v12  ;;  %6163 = vmatprep.mubr.msk.f32.mxu0 %vm1359_vm5, %v1339_v11  ;;  %v2014_v11 = vld [vmem:[#allocation2 + $0xb0] sm:$0xff] }
 0x151   : > { %831 = vst.msk [vmem:[#allocation4 + $0xb8] sm:$0xff] %vm807_vm4, %v758_v15  ;;  %2143 = vrot.lane.b32.xlu0 %v2073_v14, %s6629_s30  ;;  %v2076_v14 = vld [vmem:[#allocation2 + $0x99] sm:$0xff] }
 0x152   : > { %2051 = vst.msk [vmem:[#allocation4 + $0x80] sm:$0xff] %vm311_vm0, %v7192_v26  ;;  %2145 = vrot.lane.b32.xlu1 %v2074_v10, %s6629_s30  ;;  %2046 = vst.msk [vmem:[#allocation4 + $0x58] sm:$0xff] %vm311_vm0, %v2014_v11  ;;  %v2075_v26 = vld [vmem:[#allocation2 + $0x91] sm:$0xff]  ;;  %v2077_v11 = vld [vmem:[#allocation2 + $0xa9] sm:$0xff] }
 0x153   : > { %v1040_v13 = vpop.permute.xlu0 %1039  ;;  %v1340_v8 = vld [vmem:[#allocation4 + $0x88] sm:$0xff] }
 0x154   : > { %v1042_v3 = vpop.permute.xlu1 %1041  ;;  %1117 = vst.msk [vmem:[#allocation4 + $0x90] sm:$0xff] %vm614_vm3, %v1040_v13  ;;  %6164 = vmatmul.mubr.msk.f32.gmra.mrb[16].mxu0 %vm1359_vm5, %v1340_v8  ;;  %v2016_v8 = vld [vmem:[#allocation2 + $0xc8] sm:$0xff] }
 0x155   : > { %1118 = vst.msk [vmem:[#allocation4 + $0x98] sm:$0xff] %vm614_vm3, %v1042_v3  ;;  %2335 = vrot.lane.b32.xlu0 %v2265_v1, %s6630_s8  ;;  %v2268_v1 = vld [vmem:[#allocation2 + $0x9a] sm:$0xff] }
 0x156   : > { %2052 = vst.msk [vmem:[#allocation4 + $0x88] sm:$0xff] %vm311_vm0, %v7209_v25  ;;  %2337 = vrot.lane.b32.xlu1 %v2266_v2, %s6630_s8  ;;  %v2267_v25 = vld [vmem:[#allocation2 + $0x92] sm:$0xff]  ;;  %v2015_v2 = vld [vmem:[#allocation2 + $0xc0] sm:$0xff]  ;;  %2048 = vst.msk [vmem:[#allocation4 + $0x68] sm:$0xff] %vm311_vm0, %v2016_v8 }
 0x157   : > { %v1232_v10 = vpop.permute.xlu0 %1231  ;;  %v7658_v15 = vld [vmem:[#allocation4 + $0xb0] sm:$0xff]  ;;  %2047 = vst.msk [vmem:[#allocation4 + $0x60] sm:$0xff] %vm311_vm0, %v2015_v2  ;;  %v2017_v2 = vld [vmem:[#allocation2 + $0xd8] sm:$0xff] }
 0x158   : > { %v567_v12 = vpop.permute.xlu1 %566  ;;  %v7660_v44 = vld [vmem:[#allocation4 + $0xb8] sm:$0xff]  ;;  %1309 = vst.msk [vmem:[#allocation4 + $0x90] sm:$0xff] %vm807_vm4, %v1232_v10 }
 0x159   : > { %639 = vst.msk [vmem:[#allocation4 + $0xc0] sm:$0xff] %vm614_vm3, %v567_v12  ;;  %2147 = vrot.lane.b32.xlu0 %v2075_v26, %s6629_s30  ;;  %v2078_v26 = vld [vmem:[#allocation2 + $0xb1] sm:$0xff] }
 0x15a   : > { %929 = vst.msk [vmem:[#allocation4 + $0xb0] sm:$0xff] %vm311_vm0, %v7296_v22  ;;  %930 = vst.msk [vmem:[#allocation4 + $0xb8] sm:$0xff] %vm311_vm0, %v7314_v41  ;;  %2149 = vrot.lane.b32.xlu1 %v2076_v14, %s6629_s30 }
 0x15b   : > { %v1234_v13 = vpop.permute.xlu0 %1233  ;;  %2049 = vst.msk [vmem:[#allocation4 + $0x70] sm:$0xff] %vm311_vm0, %v2017_v2 }
 0x15c   : > { %v569_v3 = vpop.permute.xlu1 %568  ;;  %1310 = vst.msk [vmem:[#allocation4 + $0x98] sm:$0xff] %vm807_vm4, %v1234_v13 }
 0x15d   : > { %640 = vst.msk [vmem:[#allocation4 + $0xc8] sm:$0xff] %vm614_vm3, %v569_v3  ;;  %2339 = vrot.lane.b32.xlu0 %v2267_v25, %s6630_s8  ;;  %v2269_v25 = vld [vmem:[#allocation2 + $0xaa] sm:$0xff] }
 0x15e   : > { %2341 = vrot.lane.b32.xlu1 %v2268_v1, %s6630_s8  ;;  %v2270_v1 = vld [vmem:[#allocation2 + $0xb2] sm:$0xff] }
 0x15f   : > { %v760_v14 = vpop.permute.xlu0 %759  ;;  %v1341_v12 = vld [vmem:[#allocation4 + $0x90] sm:$0xff] }
 0x160   : > { %v762_v10 = vpop.permute.xlu1 %761  ;;  %832 = vst.msk [vmem:[#allocation4 + $0xc0] sm:$0xff] %vm807_vm4, %v760_v14  ;;  %6166 = vmatprep.mubr.msk.f32.mxu0 %vm1359_vm5, %v1341_v12  ;;  %v2018_v14 = vld [vmem:[#allocation2 + $0xe0] sm:$0xff] }
 0x161   : > { %833 = vst.msk [vmem:[#allocation4 + $0xc8] sm:$0xff] %vm807_vm4, %v762_v10  ;;  %2151 = vrot.lane.b32.xlu0 %v2077_v11, %s6629_s30  ;;  %v2080_v11 = vld [vmem:[#allocation2 + $0xc9] sm:$0xff] }
 0x162   : > { %2053 = vst.msk [vmem:[#allocation4 + $0x90] sm:$0xff] %vm311_vm0, %v7246_v47  ;;  %2153 = vrot.lane.b32.xlu1 %v2078_v26, %s6629_s30  ;;  %2050 = vst.msk [vmem:[#allocation4 + $0x78] sm:$0xff] %vm311_vm0, %v2018_v14  ;;  %v2079_v47 = vld [vmem:[#allocation2 + $0xc1] sm:$0xff] }
 0x163   : > { %v1044_v13 = vpop.permute.xlu0 %1043  ;;  %v1342_v8 = vld [vmem:[#allocation4 + $0x98] sm:$0xff] }
 0x164   : > { %v1046_v3 = vpop.permute.xlu1 %1045  ;;  %1119 = vst.msk [vmem:[#allocation4 + $0xa0] sm:$0xff] %vm614_vm3, %v1044_v13  ;;  %6167 = vmatmul.mubr.msk.f32.gmra.mrb[18].mxu0 %vm1359_vm5, %v1342_v8  ;;  %v2082_v8 = vld [vmem:[#allocation2 + $0xe1] sm:$0xff] }
 0x165   : > { %1120 = vst.msk [vmem:[#allocation4 + $0xa8] sm:$0xff] %vm614_vm3, %v1046_v3  ;;  %2343 = vrot.lane.b32.xlu0 %v2269_v25, %s6630_s8  ;;  %v2272_v25 = vld [vmem:[#allocation2 + $0xca] sm:$0xff]  ;;  %v2081_v3 = vld [vmem:[#allocation2 + $0xd9] sm:$0xff] }
 0x166   : > { %2054 = vst.msk [vmem:[#allocation4 + $0x98] sm:$0xff] %vm311_vm0, %v7264_v50  ;;  %2345 = vrot.lane.b32.xlu1 %v2270_v1, %s6630_s8  ;;  %v2271_v50 = vld [vmem:[#allocation2 + $0xc2] sm:$0xff] }
 0x167   : > { %v1236_v26 = vpop.permute.xlu0 %1235  ;;  %v7692_v12 = vld [vmem:[#allocation4 + $0xc0] sm:$0xff] }
 0x168   : > { %v571_v10 = vpop.permute.xlu1 %570  ;;  %v7694_v2 = vld [vmem:[#allocation4 + $0xc8] sm:$0xff]  ;;  %1311 = vst.msk [vmem:[#allocation4 + $0xa0] sm:$0xff] %vm807_vm4, %v1236_v26 }
 0x169   : > { %641 = vst.msk [vmem:[#allocation4 + $0xd0] sm:$0xff] %vm614_vm3, %v571_v10  ;;  %2155 = vrot.lane.b32.xlu0 %v2079_v47, %s6629_s30  ;;  %v2273_v47 = vld [vmem:[#allocation2 + $0xda] sm:$0xff] }
 0x16a   : > { %931 = vst.msk [vmem:[#allocation4 + $0xc0] sm:$0xff] %vm311_vm0, %v7346_v62  ;;  %932 = vst.msk [vmem:[#allocation4 + $0xc8] sm:$0xff] %vm311_vm0, %v7364_v35  ;;  %2157 = vrot.lane.b32.xlu1 %v2080_v11, %s6629_s30  ;;  %v2274_v11 = vld [vmem:[#allocation2 + $0xe2] sm:$0xff] }
 0x16b   : > { %v1238_v1 = vpop.permute.xlu0 %1237 }
 0x16c   : > { %v573_v13 = vpop.permute.xlu1 %572  ;;  %1312 = vst.msk [vmem:[#allocation4 + $0xa8] sm:$0xff] %vm807_vm4, %v1238_v1 }
 0x16d   : > { %642 = vst.msk [vmem:[#allocation4 + $0xd8] sm:$0xff] %vm614_vm3, %v573_v13  ;;  %2347 = vrot.lane.b32.xlu0 %v2271_v50, %s6630_s8  ;;  %v2084_v13 = vld [vmem:[#allocation2 + $0xf9] sm:$0xff] }
 0x16e   : > { %2349 = vrot.lane.b32.xlu1 %v2272_v25, %s6630_s8 }
 0x16f   : > { %v764_v14 = vpop.permute.xlu0 %763  ;;  %v1343_v10 = vld [vmem:[#allocation4 + $0xa0] sm:$0xff] }
 0x170   : > { %v766_v26 = vpop.permute.xlu1 %765  ;;  %834 = vst.msk [vmem:[#allocation4 + $0xd0] sm:$0xff] %vm807_vm4, %v764_v14  ;;  %6169 = vmatprep.mubr.msk.f32.mxu0 %vm1359_vm5, %v1343_v10  ;;  %v2276_v10 = vld [vmem:[#allocation2 + $0xfa] sm:$0xff] }
 0x171   : > { %835 = vst.msk [vmem:[#allocation4 + $0xd8] sm:$0xff] %vm807_vm4, %v766_v26  ;;  %2159 = vrot.lane.b32.xlu0 %v2081_v3, %s6629_s30 }
 0x172   : > { %2055 = vst.msk [vmem:[#allocation4 + $0xa0] sm:$0xff] %vm311_vm0, %v7296_v22  ;;  %2161 = vrot.lane.b32.xlu1 %v2082_v8, %s6629_s30  ;;  %v2083_v22 = vld [vmem:[#allocation2 + $0xf1] sm:$0xff] }
 0x173   : > { %v1048_v50 = vpop.permute.xlu0 %1047  ;;  %v1344_v1 = vld [vmem:[#allocation4 + $0xa8] sm:$0xff] }
 0x174   : > { %v1050_v25 = vpop.permute.xlu1 %1049  ;;  %1121 = vst.msk [vmem:[#allocation4 + $0xb0] sm:$0xff] %vm614_vm3, %v1048_v50  ;;  %6170 = vmatmul.mubr.msk.f32.gmra.mrb[20].mxu0 %vm1359_vm5, %v1344_v1  ;;  %v2085_v50 = vld [vmem:[#allocation2 + $0x109] sm:$0xff] }
 0x175   : > { %1122 = vst.msk [vmem:[#allocation4 + $0xb8] sm:$0xff] %vm614_vm3, %v1050_v25  ;;  %2351 = vrot.lane.b32.xlu0 %v2273_v47, %s6630_s8 }
 0x176   : > { %2056 = vst.msk [vmem:[#allocation4 + $0xa8] sm:$0xff] %vm311_vm0, %v7314_v41  ;;  %2353 = vrot.lane.b32.xlu1 %v2274_v11, %s6630_s8  ;;  %v2275_v41 = vld [vmem:[#allocation2 + $0xf2] sm:$0xff] }
 0x177   : > { %v1240_v3 = vpop.permute.xlu0 %1239  ;;  %v7722_v14 = vld [vmem:[#allocation4 + $0xd0] sm:$0xff] }
 0x178   : > { %v575_v8 = vpop.permute.xlu1 %574  ;;  %v7724_v26 = vld [vmem:[#allocation4 + $0xd8] sm:$0xff]  ;;  %1313 = vst.msk [vmem:[#allocation4 + $0xb0] sm:$0xff] %vm807_vm4, %v1240_v3 }
 0x179   : > { %643 = vst.msk [vmem:[#allocation4 + $0xe0] sm:$0xff] %vm614_vm3, %v575_v8  ;;  %2163 = vrot.lane.b32.xlu0 %v2083_v22, %s6629_s30 }
 0x17a   : > { %933 = vst.msk [vmem:[#allocation4 + $0xd0] sm:$0xff] %vm311_vm0, %v7402_v43  ;;  %934 = vst.msk [vmem:[#allocation4 + $0xd8] sm:$0xff] %vm311_vm0, %v7420_v4  ;;  %2165 = vrot.lane.b32.xlu1 %v2084_v13, %s6629_s30 }
 0x17b   : > { %v1242_v47 = vpop.permute.xlu0 %1241 }
 0x17c   : > { %v577_v11 = vpop.permute.xlu1 %576  ;;  %1314 = vst.msk [vmem:[#allocation4 + $0xb8] sm:$0xff] %vm807_vm4, %v1242_v47 }
 0x17d   : > { %644 = vst.msk [vmem:[#allocation4 + $0xe8] sm:$0xff] %vm614_vm3, %v577_v11  ;;  %2355 = vrot.lane.b32.xlu0 %v2275_v41, %s6630_s8 }
 0x17e   : > { %2357 = vrot.lane.b32.xlu1 %v2276_v10, %s6630_s8 }
 0x17f   : > { %v768_v25 = vpop.permute.xlu0 %767  ;;  %v1345_v3 = vld [vmem:[#allocation4 + $0xb0] sm:$0xff] }
 0x180   : > { %v770_v1 = vpop.permute.xlu1 %769  ;;  %836 = vst.msk [vmem:[#allocation4 + $0xe0] sm:$0xff] %vm807_vm4, %v768_v25  ;;  %6172 = vmatprep.mubr.msk.f32.mxu0 %vm1359_vm5, %v1345_v3 }
 0x181   : > { %837 = vst.msk [vmem:[#allocation4 + $0xe8] sm:$0xff] %vm807_vm4, %v770_v1  ;;  %2167 = vrot.lane.b32.xlu0 %v2085_v50, %s6629_s30 }
 0x182   : > { %2057 = vst.msk [vmem:[#allocation4 + $0xb0] sm:$0xff] %vm311_vm0, %v7346_v62  ;;  %2169 = vrot.lane.b32.xlu1 %v7290_v29, %s6629_s30 }
 0x183   : > { %v1052_v22 = vpop.permute.xlu0 %1051  ;;  %v1346_v8 = vld [vmem:[#allocation4 + $0xb8] sm:$0xff] }
 0x184   : > { %v1054_v13 = vpop.permute.xlu1 %1053  ;;  %1123 = vst.msk [vmem:[#allocation4 + $0xc0] sm:$0xff] %vm614_vm3, %v1052_v22  ;;  %6173 = vmatmul.mubr.msk.f32.gmra.mrb[22].mxu0 %vm1359_vm5, %v1346_v8 }
 0x185   : > { %1124 = vst.msk [vmem:[#allocation4 + $0xc8] sm:$0xff] %vm614_vm3, %v1054_v13  ;;  %2359 = vrot.lane.b32.xlu0 %v7310_v21, %s6630_s8 }
 0x186   : > { %2058 = vst.msk [vmem:[#allocation4 + $0xb8] sm:$0xff] %vm311_vm0, %v7364_v35  ;;  %2361 = vrot.lane.b32.xlu1 %v7312_v33, %s6630_s8 }
 0x187   : > { %v1244_v62 = vpop.permute.xlu0 %1243  ;;  %v7755_v41 = vld [vmem:[#allocation4 + $0xe0] sm:$0xff] }
 0x188   : > { %v579_v29 = vpop.permute.xlu1 %578  ;;  %v7757_v10 = vld [vmem:[#allocation4 + $0xe8] sm:$0xff]  ;;  %1315 = vst.msk [vmem:[#allocation4 + $0xc0] sm:$0xff] %vm807_vm4, %v1244_v62 }
 0x189   : > { %645 = vst.msk [vmem:[#allocation4 + $0xf0] sm:$0xff] %vm614_vm3, %v579_v29  ;;  %2171 = vrot.lane.b32.xlu0 %v7331_v38, %s6629_s30 }
 0x18a   : > { %935 = vst.msk [vmem:[#allocation4 + $0xe0] sm:$0xff] %vm311_vm0, %v7452_v19  ;;  %936 = vst.msk [vmem:[#allocation4 + $0xe8] sm:$0xff] %vm311_vm0, %v7470_v60  ;;  %2173 = vrot.lane.b32.xlu1 %v7340_v0, %s6629_s30 }
 0x18b   : > { %v1246_v21 = vpop.permute.xlu0 %1245 }
 0x18c   : > { %v581_v33 = vpop.permute.xlu1 %580  ;;  %1316 = vst.msk [vmem:[#allocation4 + $0xc8] sm:$0xff] %vm807_vm4, %v1246_v21 }
 0x18d   : > { %646 = vst.msk [vmem:[#allocation4 + $0xf8] sm:$0xff] %vm614_vm3, %v581_v33  ;;  %2363 = vrot.lane.b32.xlu0 %v7360_v61, %s6630_s8  ;;  %v2290_v33 = vld [vmem:[#allocation2 + $0x1a2] sm:$0xff] }
 0x18e   : > { %2365 = vrot.lane.b32.xlu1 %v7362_v32, %s6630_s8  ;;  %v906_v32 = vld [vmem:[#allocation2 + $0x188] sm:$0xff] }
 0x18f   : > { %v772_v35 = vpop.permute.xlu0 %771  ;;  %v1347_v11 = vld [vmem:[#allocation4 + $0xc0] sm:$0xff] }
 0x190   : > { %v774_v47 = vpop.permute.xlu1 %773  ;;  %838 = vst.msk [vmem:[#allocation4 + $0xf0] sm:$0xff] %vm807_vm4, %v772_v35  ;;  %6175 = vmatprep.mubr.msk.f32.mxu0 %vm1359_vm5, %v1347_v11  ;;  %v5780_v35 = vld [vmem:[%s9301_s1 + $0x40] sm:$0xff] }
 0x191   : > { %839 = vst.msk [vmem:[#allocation4 + $0xf8] sm:$0xff] %vm807_vm4, %v774_v47  ;;  %2175 = vrot.lane.b32.xlu0 %v7381_v49, %s6629_s30 }
 0x192   : > { %2059 = vst.msk [vmem:[#allocation4 + $0xc0] sm:$0xff] %vm311_vm0, %v7402_v43  ;;  %2177 = vrot.lane.b32.xlu1 %v7396_v59, %s6629_s30  ;;  %v905_v43 = vld [vmem:[#allocation2 + $0x180] sm:$0xff] }
 0x193   : > { %v1056_v38 = vpop.permute.xlu0 %1055  ;;  %v1348_v61 = vld [vmem:[#allocation4 + $0xc8] sm:$0xff] }
 0x194   : > { %v1058_v0 = vpop.permute.xlu1 %1057  ;;  %1125 = vst.msk [vmem:[#allocation4 + $0xd0] sm:$0xff] %vm614_vm3, %v1056_v38  ;;  %6176 = vmatmul.mubr.msk.f32.gmra.mrb[24].mxu0 %vm1359_vm5, %v1348_v61  ;;  %v3091_v38 = vld [vmem:[#allocation3 + $0x9] sm:$0xff] }
 0x195   : > { %1126 = vst.msk [vmem:[#allocation4 + $0xd8] sm:$0xff] %vm614_vm3, %v1058_v0  ;;  %2367 = vrot.lane.b32.xlu0 %v7416_v57, %s6630_s8  ;;  %v3283_v0 = vld [vmem:[#allocation3 + $0xa] sm:$0xff] }
 0x196   : > { %2060 = vst.msk [vmem:[#allocation4 + $0xc8] sm:$0xff] %vm311_vm0, %v7420_v4  ;;  %2369 = vrot.lane.b32.xlu1 %v7418_v42, %s6630_s8 }
 0x197   : > { %v1248_v49 = vpop.permute.xlu0 %1247  ;;  %v7793_v50 = vld [vmem:[#allocation4 + $0xf0] sm:$0xff] }
 0x198   : > { %v1250_v59 = vpop.permute.xlu1 %1249  ;;  %v7795_v25 = vld [vmem:[#allocation4 + $0xf8] sm:$0xff]  ;;  %1317 = vst.msk [vmem:[#allocation4 + $0xd0] sm:$0xff] %vm807_vm4, %v1248_v49 }
 0x199   : > { %1318 = vst.msk [vmem:[#allocation4 + $0xd8] sm:$0xff] %vm807_vm4, %v1250_v59  ;;  %2179 = vrot.lane.b32.xlu0 %v7437_v27, %s6629_s30 }
 0x19a   : > { %937 = vst.msk [vmem:[#allocation4 + $0xf0] sm:$0xff] %vm311_vm0, %v905_v43  ;;  %938 = vst.msk [vmem:[#allocation4 + $0xf8] sm:$0xff] %vm311_vm0, %v906_v32  ;;  %2181 = vrot.lane.b32.xlu1 %v7446_v46, %s6629_s30 }
 0x19b   : > { %v1060_v57 = vpop.permute.xlu0 %1059 }
 0x19c   : > { %v1062_v42 = vpop.permute.xlu1 %1061  ;;  %1127 = vst.msk [vmem:[#allocation4 + $0xe0] sm:$0xff] %vm614_vm3, %v1060_v57 }
 0x19d   : > { %1128 = vst.msk [vmem:[#allocation4 + $0xe8] sm:$0xff] %vm614_vm3, %v1062_v42  ;;  %2371 = vrot.lane.b32.xlu0 %v7466_v37, %s6630_s8 }
 0x19e   : > { %2373 = vrot.lane.b32.xlu1 %v7468_v39, %s6630_s8 }
 0x19f   : > { %v1252_v4 = vpop.permute.xlu0 %1251  ;;  %v1349_v3 = vld [vmem:[#allocation4 + $0xd0] sm:$0xff] }
 0x1a0   : > { %v1254_v1 = vpop.permute.xlu1 %1253  ;;  %v1350_v22 = vld [vmem:[#allocation4 + $0xd8] sm:$0xff]  ;;  %1319 = vst.msk [vmem:[#allocation4 + $0xe0] sm:$0xff] %vm807_vm4, %v1252_v4  ;;  %6178 = vmatprep.mubr.msk.f32.mxu0 %vm1359_vm5, %v1349_v3  ;;  %v9381_v4 = vld [vmem:[#allocation41_spill] sm:$0xff] }
 0x1a1   : > { %1320 = vst.msk [vmem:[#allocation4 + $0xe8] sm:$0xff] %vm807_vm4, %v1254_v1  ;;  %2183 = vrot.lane.b32.xlu0 %v7487_v36, %s6629_s30  ;;  %6179 = vmatmul.mubr.msk.f32.gmra.mrb[26].mxu0 %vm1359_vm5, %v1350_v22 }
 0x1a2   : > { %2061 = vst.msk [vmem:[#allocation4 + $0xd0] sm:$0xff] %vm311_vm0, %v7452_v19  ;;  %2062 = vst.msk [vmem:[#allocation4 + $0xd8] sm:$0xff] %vm311_vm0, %v7470_v60  ;;  %2185 = vrot.lane.b32.xlu1 %v7499_v28, %s6629_s30  ;;  %v2033_v28 = vld [vmem:[#allocation2 + $0x198] sm:$0xff] }
 0x1a3   : > { %v1064_v27 = vpop.permute.xlu0 %1063 }
 0x1a4   : > { %v1066_v46 = vpop.permute.xlu1 %1065  ;;  %1129 = vst.msk [vmem:[#allocation4 + $0xf0] sm:$0xff] %vm614_vm3, %v1064_v27 }
 0x1a5   : > { %1130 = vst.msk [vmem:[#allocation4 + $0xf8] sm:$0xff] %vm614_vm3, %v1066_v46  ;;  %2375 = vrot.lane.b32.xlu0 %v7515_v18, %s6630_s8  ;;  %v2034_v18 = vld [vmem:[#allocation2 + $0x1a0] sm:$0xff] }
 0x1a6   : > { %2377 = vrot.lane.b32.xlu1 %v7517_v16, %s6630_s8 }
 0x1a7   : > { %v1256_v19 = vpop.permute.xlu0 %1255  ;;  %v1351_v39 = vld [vmem:[#allocation4 + $0xe0] sm:$0xff] }
 0x1a8   : > { %v1258_v37 = vpop.permute.xlu1 %1257  ;;  %v1352_v60 = vld [vmem:[#allocation4 + $0xe8] sm:$0xff]  ;;  %1321 = vst.msk [vmem:[#allocation4 + $0xf0] sm:$0xff] %vm807_vm4, %v1256_v19  ;;  %6181 = vmatprep.mubr.msk.f32.mxu0 %vm1359_vm5, %v1351_v39 }
 0x1a9   : > { %1322 = vst.msk [vmem:[#allocation4 + $0xf8] sm:$0xff] %vm807_vm4, %v1258_v37  ;;  %2187 = vrot.lane.b32.xlu0 %v7561_v55, %s6629_s30  ;;  %6182 = vmatmul.mubr.msk.f32.gmra.mrb[28].mxu0 %vm1359_vm5, %v1352_v60  ;;  %v2097_v55 = vld [vmem:[#allocation2 + $0x199] sm:$0xff] }
 0x1aa   : > { %2063 = vst.msk [vmem:[#allocation4 + $0xe0] sm:$0xff] %vm311_vm0, %v905_v43  ;;  %2064 = vst.msk [vmem:[#allocation4 + $0xe8] sm:$0xff] %vm311_vm0, %v906_v32  ;;  %2189 = vrot.lane.b32.xlu1 %v7563_v6, %s6629_s30  ;;  %v2098_v6 = vld [vmem:[#allocation2 + $0x1a1] sm:$0xff] }
 0x1ab   : > { %v2132_v16 = vpop.permute.xlu0 %2131 }
 0x1ac   : > { %v2134_v36 = vpop.permute.xlu1 %2133  ;;  %2227 = vst.msk [vmem:[#allocation4] sm:$0xff] %vm614_vm3, %v2132_v16 }
 0x1ad   : > { %2228 = vst.msk [vmem:[#allocation4 + $0x8] sm:$0xff] %vm614_vm3, %v2134_v36  ;;  %2379 = vrot.lane.b32.xlu0 %v7572_v20, %s6630_s8  ;;  %v2289_v20 = vld [vmem:[#allocation2 + $0x19a] sm:$0xff] }
 0x1ae   : > { %2381 = vrot.lane.b32.xlu1 %v7574_v31, %s6630_s8 }
 0x1af   : > { %v2324_v13 = vpop.permute.xlu0 %2323  ;;  %v1353_v62 = vld [vmem:[#allocation4 + $0xf0] sm:$0xff] }
 0x1b0   : > { %v2326_v8 = vpop.permute.xlu1 %2325  ;;  %v1354_v29 = vld [vmem:[#allocation4 + $0xf8] sm:$0xff]  ;;  %2419 = vst.msk [vmem:[#allocation4] sm:$0xff] %vm807_vm4, %v2324_v13  ;;  %6184 = vmatprep.mubr.msk.f32.mxu0 %vm1359_vm5, %v1353_v62 }
 0x1b1   : > { %2420 = vst.msk [vmem:[#allocation4 + $0x8] sm:$0xff] %vm807_vm4, %v2326_v8  ;;  %2191 = vrot.lane.b32.xlu0 %v2097_v55, %s6629_s30  ;;  %6185 = vmatmul.mubr.msk.f32.gmra.mrb[30].mxu0 %vm1359_vm5, %v1354_v29 }
 0x1b2   : > { %2065 = vst.msk [vmem:[#allocation4 + $0xf0] sm:$0xff] %vm311_vm0, %v2033_v28  ;;  %2066 = vst.msk [vmem:[#allocation4 + $0xf8] sm:$0xff] %vm311_vm0, %v2034_v18  ;;  %2193 = vrot.lane.b32.xlu1 %v2098_v6, %s6629_s30  ;;  %6193 = vmatprep.mubr.msk.f32.mxu0 %vm1359_vm5, %v7183_v5  ;;  %v3090_v5 = vld [vmem:[#allocation3 + $0x1] sm:$0xff] }
 0x1b3   : > { %v2136_v31 = vpop.permute.xlu0 %2135 }
 0x1b4   : > { %v2138_v21 = vpop.permute.xlu1 %2137  ;;  %2229 = vst.msk [vmem:[#allocation4 + $0x10] sm:$0xff] %vm614_vm3, %v2136_v31 }
 0x1b5   : > { %2230 = vst.msk [vmem:[#allocation4 + $0x18] sm:$0xff] %vm614_vm3, %v2138_v21  ;;  %2383 = vrot.lane.b32.xlu0 %v2289_v20, %s6630_s8  ;;  %6194 = vmatmul.mubr.msk.f32.vlgmr.msra.gmra.mrb[0].mxu0 %vm1359_vm5, %v7196_v30  ;;  %v3282_v30 = vld [vmem:[#allocation3 + $0x2] sm:$0xff] }
 0x1b6   : > { %6468 = vmatpush3.bf16.msra.mxu0 %v7591_v9  ;;  %2385 = vrot.lane.b32.xlu1 %v2290_v33, %s6630_s8 }
 0x1b7   : > { %6196 = vmatprep.mubr.msk.f32.mxu0 %vm1359_vm5, %v7219_v56  ;;  %v2328_v47 = vpop.permute.xlu0 %2327  ;;  %6245 = vmatprep.subr.mxu0 %v5780_v35  ;;  %v2451_v46 = vld [vmem:[#allocation4] sm:$0xff] }
 0x1b8   : > { %v2330_v11 = vpop.permute.xlu1 %2329  ;;  %2421 = vst.msk [vmem:[#allocation4 + $0x10] sm:$0xff] %vm807_vm4, %v2328_v47 }
 0x1b9   : > { %2422 = vst.msk [vmem:[#allocation4 + $0x18] sm:$0xff] %vm807_vm4, %v2330_v11  ;;  %6197 = vmatmul.mubr.msk.f32.gmra.mrb[2].mxu0 %vm1359_vm5, %v7221_v58  ;;  %3154 = vrot.lane.b32.xlu0 %v3090_v5, %s6629_s30 }
 0x1ba   : > { %6199 = vmatprep.mubr.msk.f32.mxu0 %vm1359_vm5, %v7242_v34  ;;  %6246 = vmatpush3.msra.mxu0 %v5780_v35 }
 0x1bb   : > { %v2140_v9 = vpop.permute.xlu0 %2139  ;;  %3156 = vrot.lane.b32.xlu1 %v3091_v38, %s6629_s30 }
 0x1bc   : > { %v2142_v56 = vpop.permute.xlu1 %2141  ;;  %2231 = vst.msk [vmem:[#allocation4 + $0x20] sm:$0xff] %vm614_vm3, %v2140_v9 }
 0x1bd   : > { %2232 = vst.msk [vmem:[#allocation4 + $0x28] sm:$0xff] %vm614_vm3, %v2142_v56  ;;  %6200 = vmatmul.mubr.msk.f32.gmra.mrb[4].mxu0 %vm1359_vm5, %v7244_v51  ;;  %3346 = vrot.lane.b32.xlu0 %v3282_v30, %s6630_s8 }
 0x1be   : > { %6202 = vmatprep.mubr.msk.f32.mxu0 %vm1359_vm5, %v7292_v40 }
 0x1bf   : > { %v2332_v58 = vpop.permute.xlu0 %2331  ;;  %3348 = vrot.lane.b32.xlu1 %v3283_v0, %s6630_s8  ;;  %v2453_v37 = vld [vmem:[#allocation4 + $0x10] sm:$0xff] }
 0x1c0   : > { %v2334_v34 = vpop.permute.xlu1 %2333  ;;  %2423 = vst.msk [vmem:[#allocation4 + $0x20] sm:$0xff] %vm807_vm4, %v2332_v58 }
 0x1c1   : > { %2424 = vst.msk [vmem:[#allocation4 + $0x28] sm:$0xff] %vm807_vm4, %v2334_v34  ;;  %6203 = vmatmul.mubr.msk.f32.gmra.mrb[6].mxu0 %vm1359_vm5, %v7294_v63 }
 0x1c2   : > { %6205 = vmatprep.mubr.msk.f32.mxu0 %vm1359_vm5, %v7342_v52 }
 0x1c3   : > { %v2144_v51 = vpop.permute.xlu0 %2143 }
 0x1c4   : > { %v2146_v61 = vpop.permute.xlu1 %2145  ;;  %2233 = vst.msk [vmem:[#allocation4 + $0x30] sm:$0xff] %vm614_vm3, %v2144_v51 }
 0x1c5   : > { %2234 = vst.msk [vmem:[#allocation4 + $0x38] sm:$0xff] %vm614_vm3, %v2146_v61  ;;  %6206 = vmatmul.mubr.msk.f32.gmra.mrb[8].mxu0 %vm1359_vm5, %v7344_v45 }
 0x1c6   : > { %6208 = vmatprep.mubr.msk.f32.mxu0 %vm1359_vm5, %v7398_v53 }
 0x1c7   : > { %v2336_v40 = vpop.permute.xlu0 %2335  ;;  %v2455_v60 = vld [vmem:[#allocation4 + $0x20] sm:$0xff] }
 0x1c8   : > { %v2338_v43 = vpop.permute.xlu1 %2337  ;;  %2425 = vst.msk [vmem:[#allocation4 + $0x30] sm:$0xff] %vm807_vm4, %v2336_v40 }
 0x1c9   : > { %2426 = vst.msk [vmem:[#allocation4 + $0x38] sm:$0xff] %vm807_vm4, %v2338_v43  ;;  %6209 = vmatmul.mubr.msk.f32.gmra.mrb[10].mxu0 %vm1359_vm5, %v7400_v54 }
 0x1ca   : > { %6211 = vmatprep.mubr.msk.f32.mxu0 %vm1359_vm5, %v7448_v23  ;;  %v9377_v23 = vld [vmem:[#allocation37_spill] sm:$0xff] }
 0x1cb   : > { %v2148_v63 = vpop.permute.xlu0 %2147 }
 0x1cc   : > { %v2150_v52 = vpop.permute.xlu1 %2149  ;;  %2235 = vst.msk [vmem:[#allocation4 + $0x40] sm:$0xff] %vm614_vm3, %v2148_v63 }
 0x1cd   : > { %2236 = vst.msk [vmem:[#allocation4 + $0x48] sm:$0xff] %vm614_vm3, %v2150_v52  ;;  %6212 = vmatmul.mubr.msk.f32.gmra.mrb[12].mxu0 %vm1359_vm5, %v7450_v24  ;;  %v9378_v24 = vld [vmem:[#allocation38_spill] sm:$0xff] }
 0x1ce   : > { %6214 = vmatprep.mubr.msk.f32.mxu0 %vm1359_vm5, %v7501_v7  ;;  %v9379_v7 = vld [vmem:[#allocation39_spill] sm:$0xff] }
 0x1cf   : > { %v2340_v45 = vpop.permute.xlu0 %2339  ;;  %v2457_v28 = vld [vmem:[#allocation4 + $0x30] sm:$0xff] }
 0x1d0   : > { %v2342_v53 = vpop.permute.xlu1 %2341  ;;  %2427 = vst.msk [vmem:[#allocation4 + $0x40] sm:$0xff] %vm807_vm4, %v2340_v45  ;;  %v2458_v18 = vld [vmem:[#allocation4 + $0x38] sm:$0xff] }
 0x1d1   : > { %2428 = vst.msk [vmem:[#allocation4 + $0x48] sm:$0xff] %vm807_vm4, %v2342_v53  ;;  %6215 = vmatmul.mubr.msk.f32.gmra.mrb[14].mxu0 %vm1359_vm5, %v7503_v17  ;;  %v9380_v17 = vld [vmem:[#allocation40_spill] sm:$0xff] }
 0x1d2   : > { %6217 = vmatprep.mubr.msk.f32.mxu0 %vm1359_vm5, %v9377_v23 }
 0x1d3   : > { %v2152_v54 = vpop.permute.xlu0 %2151 }
 0x1d4   : > { %v2154_v32 = vpop.permute.xlu1 %2153  ;;  %2237 = vst.msk [vmem:[#allocation4 + $0x50] sm:$0xff] %vm614_vm3, %v2152_v54 }
 0x1d5   : > { %2238 = vst.msk [vmem:[#allocation4 + $0x58] sm:$0xff] %vm614_vm3, %v2154_v32  ;;  %6218 = vmatmul.mubr.msk.f32.gmra.mrb[16].mxu0 %vm1359_vm5, %v9378_v24 }
 0x1d6   : > { %6220 = vmatprep.mubr.msk.f32.mxu0 %vm1359_vm5, %v9379_v7 }
 0x1d7   : > { %v2344_v49 = vpop.permute.xlu0 %2343  ;;  %v2459_v8 = vld [vmem:[#allocation4 + $0x40] sm:$0xff] }
 0x1d8   : > { %v2346_v59 = vpop.permute.xlu1 %2345  ;;  %2429 = vst.msk [vmem:[#allocation4 + $0x50] sm:$0xff] %vm807_vm4, %v2344_v49  ;;  %v2460_v62 = vld [vmem:[#allocation4 + $0x48] sm:$0xff] }
 0x1d9   : > { %2430 = vst.msk [vmem:[#allocation4 + $0x58] sm:$0xff] %vm807_vm4, %v2346_v59  ;;  %6221 = vmatmul.mubr.msk.f32.gmra.mrb[18].mxu0 %vm1359_vm5, %v9380_v17 }
 0x1da   : > { %6223 = vmatprep.mubr.msk.f32.mxu0 %vm1359_vm5, %v7624_v48 }
 0x1db   : > { %v2156_v57 = vpop.permute.xlu0 %2155 }
 0x1dc   : > { %v2158_v42 = vpop.permute.xlu1 %2157  ;;  %2239 = vst.msk [vmem:[#allocation4 + $0x60] sm:$0xff] %vm614_vm3, %v2156_v57 }
 0x1dd   : > { %2240 = vst.msk [vmem:[#allocation4 + $0x68] sm:$0xff] %vm614_vm3, %v2158_v42  ;;  %6224 = vmatmul.mubr.msk.f32.gmra.mrb[20].mxu0 %vm1359_vm5, %v9381_v4 }
 0x1de   : > { %6226 = vmatprep.mubr.msk.f32.mxu0 %vm1359_vm5, %v7658_v15 }
 0x1df   : > { %v2348_v1 = vpop.permute.xlu0 %2347  ;;  %v2461_v20 = vld [vmem:[#allocation4 + $0x50] sm:$0xff] }
 0x1e0   : > { %v2350_v3 = vpop.permute.xlu1 %2349  ;;  %2431 = vst.msk [vmem:[#allocation4 + $0x60] sm:$0xff] %vm807_vm4, %v2348_v1  ;;  %v2462_v31 = vld [vmem:[#allocation4 + $0x58] sm:$0xff] }
 0x1e1   : > { %2432 = vst.msk [vmem:[#allocation4 + $0x68] sm:$0xff] %vm807_vm4, %v2350_v3  ;;  %6227 = vmatmul.mubr.msk.f32.gmra.mrb[22].mxu0 %vm1359_vm5, %v7660_v44 }
 0x1e2   : > { %6229 = vmatprep.mubr.msk.f32.mxu0 %vm1359_vm5, %v7692_v12 }
 0x1e3   : > { %v2160_v48 = vpop.permute.xlu0 %2159 }
 0x1e4   : > { %v2162_v22 = vpop.permute.xlu1 %2161  ;;  %2241 = vst.msk [vmem:[#allocation4 + $0x70] sm:$0xff] %vm614_vm3, %v2160_v48 }
 0x1e5   : > { %2242 = vst.msk [vmem:[#allocation4 + $0x78] sm:$0xff] %vm614_vm3, %v2162_v22  ;;  %6230 = vmatmul.mubr.msk.f32.gmra.mrb[24].mxu0 %vm1359_vm5, %v7694_v2 }
 0x1e6   : > { %6232 = vmatprep.mubr.msk.f32.mxu0 %vm1359_vm5, %v7722_v14 }
 0x1e7   : > { %v2352_v15 = vpop.permute.xlu0 %2351  ;;  %v2463_v35 = vld [vmem:[#allocation4 + $0x60] sm:$0xff] }
 0x1e8   : > { %v2354_v27 = vpop.permute.xlu1 %2353  ;;  %2433 = vst.msk [vmem:[#allocation4 + $0x70] sm:$0xff] %vm807_vm4, %v2352_v15  ;;  %v2464_v5 = vld [vmem:[#allocation4 + $0x68] sm:$0xff] }
 0x1e9   : > { %2434 = vst.msk [vmem:[#allocation4 + $0x78] sm:$0xff] %vm807_vm4, %v2354_v27  ;;  %6233 = vmatmul.mubr.msk.f32.gmra.mrb[26].mxu0 %vm1359_vm5, %v7724_v26  ;;  %v2452_v26 = vld [vmem:[#allocation4 + $0x8] sm:$0xff] }
 0x1ea   : > { %6235 = vmatprep.mubr.msk.f32.mxu0 %vm1359_vm5, %v7755_v41 }
 0x1eb   : > { %v2164_v44 = vpop.permute.xlu0 %2163 }
 0x1ec   : > { %v2166_v12 = vpop.permute.xlu1 %2165  ;;  %2243 = vst.msk [vmem:[#allocation4 + $0x80] sm:$0xff] %vm614_vm3, %v2164_v44 }
 0x1ed   : > { %2244 = vst.msk [vmem:[#allocation4 + $0x88] sm:$0xff] %vm614_vm3, %v2166_v12  ;;  %6236 = vmatmul.mubr.msk.f32.gmra.mrb[28].mxu0 %vm1359_vm5, %v7757_v10  ;;  %v2454_v10 = vld [vmem:[#allocation4 + $0x18] sm:$0xff] }
 0x1ee   : > { %6238 = vmatprep.mubr.msk.f32.mxu0 %vm1359_vm5, %v7793_v50 }
 0x1ef   : > { %v2356_v2 = vpop.permute.xlu0 %2355  ;;  %v2465_v38 = vld [vmem:[#allocation4 + $0x70] sm:$0xff] }
 0x1f0   : > { %v2358_v14 = vpop.permute.xlu1 %2357  ;;  %2435 = vst.msk [vmem:[#allocation4 + $0x80] sm:$0xff] %vm807_vm4, %v2356_v2  ;;  %v2466_v30 = vld [vmem:[#allocation4 + $0x78] sm:$0xff] }
 0x1f1   : > { %2436 = vst.msk [vmem:[#allocation4 + $0x88] sm:$0xff] %vm807_vm4, %v2358_v14  ;;  %6239 = vmatmul.mubr.msk.f32.gmra.mrb[30].mxu0 %vm1359_vm5, %v7795_v25  ;;  %v2456_v25 = vld [vmem:[#allocation4 + $0x28] sm:$0xff]  ;;  %v3027_v2 = vld [vmem:[#allocation3 + $0x8] sm:$0xff]  ;;  %v3026_v14 = vld [vmem:[#allocation3] sm:$0xff] }
 0x1f2   : > { %6247 = vmatprep.mubr.msk.f32.mxu0 %vm1359_vm5, %v2451_v46  ;;  %3059 = vst.msk [vmem:[#allocation4 + $0x8] sm:$0xff] %vm311_vm0, %v3027_v2  ;;  %3058 = vst.msk [vmem:[#allocation4] sm:$0xff] %vm311_vm0, %v3026_v14  ;;  %v5817_v2 = vld [vmem:[%s9304_s4 + $0x28] sm:$0xff] }
 0x1f3   : > { %v2168_v41 = vpop.permute.xlu0 %2167 }
 0x1f4   : > { %v2170_v19 = vpop.permute.xlu1 %2169  ;;  %2245 = vst.msk [vmem:[#allocation4 + $0x90] sm:$0xff] %vm614_vm3, %v2168_v41  ;;  %v8028_v41 = vld [vmem:[%s9302_s2] ss:$0 sm:$0xff] }
 0x1f5   : > { %2246 = vst.msk [vmem:[#allocation4 + $0x98] sm:$0xff] %vm614_vm3, %v2170_v19  ;;  %6248 = vmatmul.mubr.msk.f32.vlgmr.msra.gmra.mrb[0].mxu0 %vm1359_vm5, %v2452_v26 }
 0x1f6   : > { %6250 = vmatprep.mubr.msk.f32.mxu0 %vm1359_vm5, %v2453_v37  ;;  %v8033_v37 = vld [vmem:[%s9303_s3] ss:$0 sm:$0xff] }
 0x1f7   : > { %v2360_v50 = vpop.permute.xlu0 %2359  ;;  %v2467_v0 = vld [vmem:[#allocation4 + $0x80] sm:$0xff] }
 0x1f8   : > { %v2362_v39 = vpop.permute.xlu1 %2361  ;;  %2437 = vst.msk [vmem:[#allocation4 + $0x90] sm:$0xff] %vm807_vm4, %v2360_v50  ;;  %v2468_v58 = vld [vmem:[#allocation4 + $0x88] sm:$0xff] }
 0x1f9   : > { %2438 = vst.msk [vmem:[#allocation4 + $0x98] sm:$0xff] %vm807_vm4, %v2362_v39  ;;  %6251 = vmatmul.mubr.msk.f32.gmra.mrb[2].mxu0 %vm1359_vm5, %v2454_v10 }
 0x1fa   : > { %6253 = vmatprep.mubr.msk.f32.mxu0 %vm1359_vm5, %v2455_v60 }
 0x1fb   : > { %v2172_v16 = vpop.permute.xlu0 %2171 }
 0x1fc   : > { %v2174_v36 = vpop.permute.xlu1 %2173  ;;  %2247 = vst.msk [vmem:[#allocation4 + $0xa0] sm:$0xff] %vm614_vm3, %v2172_v16 }
 0x1fd   : > { %2248 = vst.msk [vmem:[#allocation4 + $0xa8] sm:$0xff] %vm614_vm3, %v2174_v36  ;;  %6254 = vmatmul.mubr.msk.f32.gmra.mrb[4].mxu0 %vm1359_vm5, %v2456_v25 }
 0x1fe   : > { %6256 = vmatprep.mubr.msk.f32.mxu0 %vm1359_vm5, %v2457_v28 }
 0x1ff   : > { %v2364_v55 = vpop.permute.xlu0 %2363  ;;  %v2469_v51 = vld [vmem:[#allocation4 + $0x90] sm:$0xff] }
 0x200   : > { %v2366_v13 = vpop.permute.xlu1 %2365  ;;  %2439 = vst.msk [vmem:[#allocation4 + $0xa0] sm:$0xff] %vm807_vm4, %v2364_v55  ;;  %v2470_v40 = vld [vmem:[#allocation4 + $0x98] sm:$0xff] }
 0x201   : > { %2440 = vst.msk [vmem:[#allocation4 + $0xa8] sm:$0xff] %vm807_vm4, %v2366_v13  ;;  %6257 = vmatmul.mubr.msk.f32.gmra.mrb[6].mxu0 %vm1359_vm5, %v2458_v18 }
 0x202   : > { %6259 = vmatprep.mubr.msk.f32.mxu0 %vm1359_vm5, %v2459_v8 }
 0x203   : > { %v2176_v29 = vpop.permute.xlu0 %2175 }
 0x204   : > { %v2178_v6 = vpop.permute.xlu1 %2177  ;;  %2249 = vst.msk [vmem:[#allocation4 + $0xb0] sm:$0xff] %vm614_vm3, %v2176_v29 }
 0x205   : > { %2250 = vst.msk [vmem:[#allocation4 + $0xb8] sm:$0xff] %vm614_vm3, %v2178_v6  ;;  %6260 = vmatmul.mubr.msk.f32.gmra.mrb[8].mxu0 %vm1359_vm5, %v2460_v62 }
 0x206   : > { %6262 = vmatprep.mubr.msk.f32.mxu0 %vm1359_vm5, %v2461_v20 }
 0x207   : > { %v2368_v21 = vpop.permute.xlu0 %2367  ;;  %v2471_v63 = vld [vmem:[#allocation4 + $0xa0] sm:$0xff] }
 0x208   : > { %v2370_v33 = vpop.permute.xlu1 %2369  ;;  %2441 = vst.msk [vmem:[#allocation4 + $0xb0] sm:$0xff] %vm807_vm4, %v2368_v21  ;;  %v2472_v45 = vld [vmem:[#allocation4 + $0xa8] sm:$0xff] }
 0x209   : > { %2442 = vst.msk [vmem:[#allocation4 + $0xb8] sm:$0xff] %vm807_vm4, %v2370_v33  ;;  %6263 = vmatmul.mubr.msk.f32.gmra.mrb[10].mxu0 %vm1359_vm5, %v2462_v31 }
 0x20a   : > { %6265 = vmatprep.mubr.msk.f32.mxu0 %vm1359_vm5, %v2463_v35 }
 0x20b   : > { %v2180_v47 = vpop.permute.xlu0 %2179 }
 0x20c   : > { %v2182_v11 = vpop.permute.xlu1 %2181  ;;  %2251 = vst.msk [vmem:[#allocation4 + $0xc0] sm:$0xff] %vm614_vm3, %v2180_v47 }
 0x20d   : > { %2252 = vst.msk [vmem:[#allocation4 + $0xc8] sm:$0xff] %vm614_vm3, %v2182_v11  ;;  %6266 = vmatmul.mubr.msk.f32.gmra.mrb[12].mxu0 %vm1359_vm5, %v2464_v5 }
 0x20e   : > { %6268 = vmatprep.mubr.msk.f32.mxu0 %vm1359_vm5, %v2465_v38 }
 0x20f   : > { %v2372_v9 = vpop.permute.xlu0 %2371  ;;  %v2473_v23 = vld [vmem:[#allocation4 + $0xb0] sm:$0xff] }
 0x210   : > { %v2374_v56 = vpop.permute.xlu1 %2373  ;;  %2443 = vst.msk [vmem:[#allocation4 + $0xc0] sm:$0xff] %vm807_vm4, %v2372_v9  ;;  %v2474_v32 = vld [vmem:[#allocation4 + $0xb8] sm:$0xff] }
 0x211   : > { %2444 = vst.msk [vmem:[#allocation4 + $0xc8] sm:$0xff] %vm807_vm4, %v2374_v56  ;;  %6269 = vmatmul.mubr.msk.f32.gmra.mrb[14].mxu0 %vm1359_vm5, %v2466_v30 }
 0x212   : > { %6271 = vmatprep.mubr.msk.f32.mxu0 %vm1359_vm5, %v2467_v0 }
 0x213   : > { %v2184_v34 = vpop.permute.xlu0 %2183 }
 0x214   : > { %2253 = vst.msk [vmem:[#allocation4 + $0xd0] sm:$0xff] %vm614_vm3, %v2184_v34  ;;  %v2186_v61 = vpop.permute.xlu1 %2185 }
 0x215   : > { %2254 = vst.msk [vmem:[#allocation4 + $0xd8] sm:$0xff] %vm614_vm3, %v2186_v61  ;;  %6272 = vmatmul.mubr.msk.f32.gmra.mrb[16].mxu0 %vm1359_vm5, %v2468_v58 }
 0x216   : > { %6274 = vmatprep.mubr.msk.f32.mxu0 %vm1359_vm5, %v2469_v51 }
 0x217   : > { %v2376_v43 = vpop.permute.xlu0 %2375  ;;  %v2475_v7 = vld [vmem:[#allocation4 + $0xc0] sm:$0xff] }
 0x218   : > { %2445 = vst.msk [vmem:[#allocation4 + $0xd0] sm:$0xff] %vm807_vm4, %v2376_v43  ;;  %v2378_v52 = vpop.permute.xlu1 %2377  ;;  %v2476_v59 = vld [vmem:[#allocation4 + $0xc8] sm:$0xff] }
 0x219   : > { %2446 = vst.msk [vmem:[#allocation4 + $0xd8] sm:$0xff] %vm807_vm4, %v2378_v52  ;;  %6275 = vmatmul.mubr.msk.f32.gmra.mrb[18].mxu0 %vm1359_vm5, %v2470_v40 }
 0x21a   : > { %6277 = vmatprep.mubr.msk.f32.mxu0 %vm1359_vm5, %v2471_v63 }
 0x21b   : > { %v2188_v53 = vpop.permute.xlu0 %2187 }
 0x21c   : > { %2255 = vst.msk [vmem:[#allocation4 + $0xe0] sm:$0xff] %vm614_vm3, %v2188_v53  ;;  %v2190_v54 = vpop.permute.xlu1 %2189 }
 0x21d   : > { %2256 = vst.msk [vmem:[#allocation4 + $0xe8] sm:$0xff] %vm614_vm3, %v2190_v54  ;;  %6278 = vmatmul.mubr.msk.f32.gmra.mrb[20].mxu0 %vm1359_vm5, %v2472_v45 }
 0x21e   : > { %6280 = vmatprep.mubr.msk.f32.mxu0 %vm1359_vm5, %v2473_v23 }
 0x21f   : > { %v2380_v24 = vpop.permute.xlu0 %2379  ;;  %v2477_v57 = vld [vmem:[#allocation4 + $0xd0] sm:$0xff] }
 0x220   : > { %2447 = vst.msk [vmem:[#allocation4 + $0xe0] sm:$0xff] %vm807_vm4, %v2380_v24  ;;  %v2382_v49 = vpop.permute.xlu1 %2381  ;;  %v2478_v4 = vld [vmem:[#allocation4 + $0xd8] sm:$0xff] }
 0x221   : > { %2448 = vst.msk [vmem:[#allocation4 + $0xe8] sm:$0xff] %vm807_vm4, %v2382_v49  ;;  %6281 = vmatmul.mubr.msk.f32.gmra.mrb[22].mxu0 %vm1359_vm5, %v2474_v32 }
 0x222   : > { %6283 = vmatprep.mubr.msk.f32.mxu0 %vm1359_vm5, %v2475_v7 }
 0x223   : > { %v2192_v17 = vpop.permute.xlu0 %2191 }
 0x224   : > { %2257 = vst.msk [vmem:[#allocation4 + $0xf0] sm:$0xff] %vm614_vm3, %v2192_v17  ;;  %v2194_v42 = vpop.permute.xlu1 %2193 }
 0x225   : > { %2258 = vst.msk [vmem:[#allocation4 + $0xf8] sm:$0xff] %vm614_vm3, %v2194_v42  ;;  %6284 = vmatmul.mubr.msk.f32.gmra.mrb[24].mxu0 %vm1359_vm5, %v2476_v59  ;;  %v5816_v42 = vld [vmem:[%s9304_s4 + $0x20] sm:$0xff] }
 0x226   : > { %6286 = vmatprep.mubr.msk.f32.mxu0 %vm1359_vm5, %v2477_v57  ;;  %v5815_v57 = vld [vmem:[%s9304_s4 + $0x18] sm:$0xff] }
 0x227   : > { %v2384_v1 = vpop.permute.xlu0 %2383  ;;  %v2479_v3 = vld [vmem:[#allocation4 + $0xe0] sm:$0xff] }
 0x228   : > { %2449 = vst.msk [vmem:[#allocation4 + $0xf0] sm:$0xff] %vm807_vm4, %v2384_v1  ;;  %v2386_v48 = vpop.permute.xlu1 %2385  ;;  %v2480_v22 = vld [vmem:[#allocation4 + $0xe8] sm:$0xff] }
 0x229   : > { %2450 = vst.msk [vmem:[#allocation4 + $0xf8] sm:$0xff] %vm807_vm4, %v2386_v48  ;;  %6287 = vmatmul.mubr.msk.f32.gmra.mrb[26].mxu0 %vm1359_vm5, %v2478_v4 }
 0x22a   : > { %6289 = vmatprep.mubr.msk.f32.mxu0 %vm1359_vm5, %v2479_v3 }
 0x22b   : > { %v3155_v12 = vpop.permute.xlu0 %3154 }
 0x22c   : > { %3250 = vst.msk [vmem:[#allocation4] sm:$0xff] %vm614_vm3, %v3155_v12 }
 0x22d   : > { %6290 = vmatmul.mubr.msk.f32.gmra.mrb[28].mxu0 %vm1359_vm5, %v2480_v22  ;;  %v3157_v44 = vpop.permute.xlu1 %3156  ;;  %v6469_v22 = vpack.c.bf16 %v5816_v42, %v5815_v57 }
 0x22e   : > { %3251 = vst.msk [vmem:[#allocation4 + $0x8] sm:$0xff] %vm614_vm3, %v3157_v44 }
 0x22f   : > { %v2481_v15 = vld [vmem:[#allocation4 + $0xf0] sm:$0xff]  ;;  %v3347_v26 = vpop.permute.xlu0 %3346  ;;  %6470 = vmatprep.subr.bf16.mxu1 %v6469_v22 }
 0x230   : > { %6292 = vmatprep.mubr.msk.f32.mxu0 %vm1359_vm5, %v2481_v15  ;;  %v2482_v27 = vld [vmem:[#allocation4 + $0xf8] sm:$0xff]  ;;  %3442 = vst.msk [vmem:[#allocation4] sm:$0xff] %vm807_vm4, %v3347_v26  ;;  %6472 = vmatpush3.bf16.msra.mxu1 %v6469_v22 }
 0x231   : > { %6293 = vmatmul.mubr.msk.f32.gmra.mrb[30].mxu0 %vm1359_vm5, %v2482_v27  ;;  %v3349_v46 = vpop.permute.xlu1 %3348  ;;  %6299 = vmatprep.subr.mxu1 %v5817_v2 }
 0x232   : > { %3443 = vst.msk [vmem:[#allocation4 + $0x8] sm:$0xff] %vm807_vm4, %v3349_v46 }
 0x234   : > { %6300 = vmatpush3.msra.mxu1 %v5817_v2 }
 0x237   : > { %v8055_v51 = vld [vmem:[#allocation4] sm:$0xff] }
 0x239   : > { %v8052_v9 = vld [vmem:[#allocation4 + $0x8] sm:$0xff] }
 0x2c8   : > { %v6249_v19 = vpop.f32.mrb[0].mxu0 }
 0x2c9   : > { %v2848_v10 = vmul.f32 %v6249_v19, %v8028_v41  ;;  %v2649_v50 = vpop.f32.mrb[1].mxu0 }
 0x2ca   : > { %v2847_v39 = vmul.f32 %v8028_v41, %v2649_v50 }
 0x2cb   : > { %v2887_v60 = vadd.f32 %v8033_v37, %v2848_v10 }
 0x2cc   : > { %v2886_v25 = vadd.f32 %v8033_v37, %v2847_v39  ;;  %v6252_v16 = vpop.f32.mrb[2].mxu0 }
 0x2cd   : > { %v2919_v36 = vmax.f32 %v2887_v60, 0.0  ;;  %v2850_v28 = vmul.f32 %v6252_v16, %v8028_v41  ;;  %v2659_v18 = vpop.f32.mrb[3].mxu0 }
 0x2ce   : > { %v2918_v55 = vmax.f32 %v2886_v25, 0.0  ;;  %v2849_v13 = vmul.f32 %v8028_v41, %v2659_v18 }
 0x2cf   : > { %2995 = vst.msk [vmem:[#allocation3 + $0x21] sm:$0xff] %vm311_vm0, %v2919_v36  ;;  %v2889_v8 = vadd.f32 %v8033_v37, %v2850_v28 }
 0x2d0   : > { %2994 = vst.msk [vmem:[#allocation3 + $0x19] sm:$0xff] %vm311_vm0, %v2918_v55  ;;  %v2888_v62 = vadd.f32 %v8033_v37, %v2849_v13  ;;  %v6255_v29 = vpop.f32.mrb[4].mxu0 }
 0x2d1   : > { %v2921_v6 = vmax.f32 %v2889_v8, 0.0  ;;  %v2852_v20 = vmul.f32 %v6255_v29, %v8028_v41  ;;  %v2669_v31 = vpop.f32.mrb[5].mxu0 }
 0x2d2   : > { %v2920_v21 = vmax.f32 %v2888_v62, 0.0  ;;  %v2851_v33 = vmul.f32 %v8028_v41, %v2669_v31 }
 0x2d3   : > { %2997 = vst.msk [vmem:[#allocation3 + $0x39] sm:$0xff] %vm311_vm0, %v2921_v6  ;;  %v2891_v35 = vadd.f32 %v8033_v37, %v2852_v20 }
 0x2d4   : > { %2996 = vst.msk [vmem:[#allocation3 + $0x31] sm:$0xff] %vm311_vm0, %v2920_v21  ;;  %v2890_v5 = vadd.f32 %v8033_v37, %v2851_v33  ;;  %v6258_v47 = vpop.f32.mrb[6].mxu0 }
 0x2d5   : > { %v2923_v11 = vmax.f32 %v2891_v35, 0.0  ;;  %v2854_v38 = vmul.f32 %v6258_v47, %v8028_v41  ;;  %v2679_v30 = vpop.f32.mrb[7].mxu0 }
 0x2d6   : > { %v2922_v56 = vmax.f32 %v2890_v5, 0.0  ;;  %v2853_v0 = vmul.f32 %v8028_v41, %v2679_v30  ;;  %v3766_v58 = vld [vmem:[#allocation3 + $0x22] sm:$0xff] }
 0x2d7   : > { %v3093_v34 = vld [vmem:[#allocation3 + $0x21] sm:$0xff]  ;;  %2999 = vst.msk [vmem:[#allocation3 + $0x51] sm:$0xff] %vm311_vm0, %v2923_v11  ;;  %v2893_v61 = vadd.f32 %v8033_v37, %v2854_v38  ;;  %3831 = vrot.lane.b32.xlu0 %v3766_v58, %s6630_s8  ;;  %v3028_v52 = vld [vmem:[#allocation3 + $0x18] sm:$0xff] }
 0x2d8   : > { %3160 = vrot.lane.b32.xlu1 %v3093_v34, %s6629_s30  ;;  %v3029_v40 = vld [vmem:[#allocation3 + $0x20] sm:$0xff]  ;;  %2998 = vst.msk [vmem:[#allocation3 + $0x49] sm:$0xff] %vm311_vm0, %v2922_v56  ;;  %v2892_v43 = vadd.f32 %v8033_v37, %v2853_v0  ;;  %v6261_v63 = vpop.f32.mrb[8].mxu0  ;;  %3060 = vst.msk [vmem:[#allocation4 + $0x10] sm:$0xff] %vm311_vm0, %v3028_v52 }
 0x2d9   : > { %3061 = vst.msk [vmem:[#allocation4 + $0x18] sm:$0xff] %vm311_vm0, %v3029_v40  ;;  %3542 = vst.msk [vmem:[#allocation4 + $0x8] sm:$0xff] %vm311_vm0, %v3029_v40  ;;  %v2925_v45 = vmax.f32 %v2893_v61, 0.0  ;;  %v2856_v53 = vmul.f32 %v6261_v63, %v8028_v41  ;;  %v2689_v23 = vpop.f32.mrb[9].mxu0  ;;  %v3092_v24 = vld [vmem:[#allocation3 + $0x19] sm:$0xff] }
 0x2da   : > { %3541 = vst.msk [vmem:[#allocation4] sm:$0xff] %vm311_vm0, %v3028_v52  ;;  %v2924_v54 = vmax.f32 %v2892_v43, 0.0  ;;  %v2855_v32 = vmul.f32 %v8028_v41, %v2689_v23  ;;  %v3284_v44 = vld [vmem:[#allocation3 + $0x1a] sm:$0xff] }
 0x2db   : > { %3001 = vst.msk [vmem:[#allocation3 + $0x69] sm:$0xff] %vm311_vm0, %v2925_v45  ;;  %v2895_v7 = vadd.f32 %v8033_v37, %v2856_v53  ;;  %3158 = vrot.lane.b32.xlu0 %v3092_v24, %s6629_s30  ;;  %v8073_v49 = vld [vmem:[#allocation3 + $0x38] sm:$0xff]  ;;  %v8085_v4 = vld [vmem:[#allocation3 + $0x30] sm:$0xff] }
 0x2dc   : > { %3352 = vrot.lane.b32.xlu1 %v3766_v58, %s6630_s8  ;;  %3000 = vst.msk [vmem:[#allocation3 + $0x61] sm:$0xff] %vm311_vm0, %v2924_v54  ;;  %v2894_v59 = vadd.f32 %v8033_v37, %v2855_v32  ;;  %v6264_v17 = vpop.f32.mrb[10].mxu0  ;;  %3063 = vst.msk [vmem:[#allocation4 + $0x28] sm:$0xff] %vm311_vm0, %v8073_v49  ;;  %v3095_v16 = vld [vmem:[#allocation3 + $0x39] sm:$0xff]  ;;  %v3094_v54 = vld [vmem:[#allocation3 + $0x31] sm:$0xff] }
 0x2dd   : > { %v2927_v1 = vmax.f32 %v2895_v7, 0.0  ;;  %v2858_v3 = vmul.f32 %v6264_v17, %v8028_v41  ;;  %v2699_v48 = vpop.f32.mrb[11].mxu0  ;;  %3062 = vst.msk [vmem:[#allocation4 + $0x20] sm:$0xff] %vm311_vm0, %v8085_v4  ;;  %v3287_v31 = vld [vmem:[#allocation3 + $0x3a] sm:$0xff] }
 0x2de   : > { %v2926_v15 = vmax.f32 %v2894_v59, 0.0  ;;  %v2857_v27 = vmul.f32 %v8028_v41, %v2699_v48  ;;  %v3097_v32 = vld [vmem:[#allocation3 + $0x51] sm:$0xff] }
 0x2df   : > { %3003 = vst.msk [vmem:[#allocation3 + $0x81] sm:$0xff] %vm311_vm0, %v2927_v1  ;;  %v2897_v12 = vadd.f32 %v8033_v37, %v2858_v3  ;;  %3350 = vrot.lane.b32.xlu0 %v3284_v44, %s6630_s8  ;;  %v8100_v26 = vld [vmem:[#allocation3 + $0x50] sm:$0xff]  ;;  %v8102_v19 = vld [vmem:[#allocation3 + $0x48] sm:$0xff] }
 0x2e0   : > { %3639 = vrot.lane.b32.xlu1 %v3093_v34, %s6629_s30  ;;  %3002 = vst.msk [vmem:[#allocation3 + $0x79] sm:$0xff] %vm311_vm0, %v2926_v15  ;;  %v2896_v14 = vadd.f32 %v8033_v37, %v2857_v27  ;;  %v6267_v46 = vpop.f32.mrb[12].mxu0  ;;  %3065 = vst.msk [vmem:[#allocation4 + $0x38] sm:$0xff] %vm311_vm0, %v8100_v26  ;;  %v3286_v15 = vld [vmem:[#allocation3 + $0x32] sm:$0xff] }
 0x2e1   : > { %v2929_v10 = vmax.f32 %v2897_v12, 0.0  ;;  %v2860_v50 = vmul.f32 %v6267_v46, %v8028_v41  ;;  %v2709_v39 = vpop.f32.mrb[13].mxu0  ;;  %3064 = vst.msk [vmem:[#allocation4 + $0x30] sm:$0xff] %vm311_vm0, %v8102_v19  ;;  %v3289_v27 = vld [vmem:[#allocation3 + $0x52] sm:$0xff] }
 0x2e2   : > { %v2928_v60 = vmax.f32 %v2896_v14, 0.0  ;;  %v2859_v25 = vmul.f32 %v8028_v41, %v2709_v39 }
 0x2e3   : > { %3005 = vst.msk [vmem:[#allocation3 + $0x99] sm:$0xff] %vm311_vm0, %v2929_v10  ;;  %v2899_v36 = vadd.f32 %v8033_v37, %v2860_v50  ;;  %3637 = vrot.lane.b32.xlu0 %v3092_v24, %s6629_s30  ;;  %v8114_v28 = vld [vmem:[#allocation3 + $0x68] sm:$0xff]  ;;  %v8120_v13 = vld [vmem:[#allocation3 + $0x60] sm:$0xff] }
 0x2e4   : > { %3164 = vrot.lane.b32.xlu1 %v3095_v16, %s6629_s30  ;;  %3004 = vst.msk [vmem:[#allocation3 + $0x91] sm:$0xff] %vm311_vm0, %v2928_v60  ;;  %v2898_v18 = vadd.f32 %v8033_v37, %v2859_v25  ;;  %v6270_v55 = vpop.f32.mrb[14].mxu0  ;;  %3067 = vst.msk [vmem:[#allocation4 + $0x48] sm:$0xff] %vm311_vm0, %v8114_v28 }
 0x2e5   : > { %v2931_v8 = vmax.f32 %v2899_v36, 0.0  ;;  %v2862_v62 = vmul.f32 %v6270_v55, %v8028_v41  ;;  %v2719_v29 = vpop.f32.mrb[15].mxu0  ;;  %3066 = vst.msk [vmem:[#allocation4 + $0x40] sm:$0xff] %vm311_vm0, %v8120_v13 }
 0x2e6   : > { %v2930_v6 = vmax.f32 %v2898_v18, 0.0  ;;  %v2861_v20 = vmul.f32 %v8028_v41, %v2719_v29 }
 0x2e7   : > { %3007 = vst.msk [vmem:[#allocation3 + $0xb1] sm:$0xff] %vm311_vm0, %v2931_v8  ;;  %v2901_v21 = vadd.f32 %v8033_v37, %v2862_v62  ;;  %3829 = vrot.lane.b32.xlu0 %v3284_v44, %s6630_s8  ;;  %v8130_v33 = vld [vmem:[#allocation3 + $0x80] sm:$0xff]  ;;  %v8136_v47 = vld [vmem:[#allocation3 + $0x78] sm:$0xff] }
 0x2e8   : > { %3356 = vrot.lane.b32.xlu1 %v3287_v31, %s6630_s8  ;;  %3006 = vst.msk [vmem:[#allocation3 + $0xa9] sm:$0xff] %vm311_vm0, %v2930_v6  ;;  %v2900_v35 = vadd.f32 %v8033_v37, %v2861_v20  ;;  %v6273_v5 = vpop.f32.mrb[16].mxu0  ;;  %3069 = vst.msk [vmem:[#allocation4 + $0x58] sm:$0xff] %vm311_vm0, %v8130_v33 }
 0x2e9   : > { %v2933_v11 = vmax.f32 %v2901_v21, 0.0  ;;  %v2864_v38 = vmul.f32 %v6273_v5, %v8028_v41  ;;  %v2729_v30 = vpop.f32.mrb[17].mxu0  ;;  %3068 = vst.msk [vmem:[#allocation4 + $0x50] sm:$0xff] %vm311_vm0, %v8136_v47  ;;  %v3096_v21 = vld [vmem:[#allocation3 + $0x49] sm:$0xff] }
 0x2ea   : > { %v2932_v56 = vmax.f32 %v2900_v35, 0.0  ;;  %v2863_v0 = vmul.f32 %v8028_v41, %v2729_v30 }
 0x2eb   : > { %3009 = vst.msk [vmem:[#allocation3 + $0xc9] sm:$0xff] %vm311_vm0, %v2933_v11  ;;  %v2903_v58 = vadd.f32 %v8033_v37, %v2864_v38  ;;  %3835 = vrot.lane.b32.xlu0 %v3287_v31, %s6630_s8  ;;  %v8146_v34 = vld [vmem:[#allocation3 + $0x98] sm:$0xff]  ;;  %v8152_v43 = vld [vmem:[#allocation3 + $0x90] sm:$0xff] }
 0x2ec   : > { %3643 = vrot.lane.b32.xlu1 %v3095_v16, %s6629_s30  ;;  %3008 = vst.msk [vmem:[#allocation3 + $0xc1] sm:$0xff] %vm311_vm0, %v2932_v56  ;;  %v2902_v61 = vadd.f32 %v8033_v37, %v2863_v0  ;;  %v6276_v40 = vpop.f32.mrb[18].mxu0  ;;  %3071 = vst.msk [vmem:[#allocation4 + $0x68] sm:$0xff] %vm311_vm0, %v8146_v34 }
 0x2ed   : > { %v2935_v63 = vmax.f32 %v2903_v58, 0.0  ;;  %v2866_v52 = vmul.f32 %v6276_v40, %v8028_v41  ;;  %v2739_v45 = vpop.f32.mrb[19].mxu0  ;;  %3070 = vst.msk [vmem:[#allocation4 + $0x60] sm:$0xff] %vm311_vm0, %v8152_v43 }
 0x2ee   : > { %v2934_v53 = vmax.f32 %v2902_v61, 0.0  ;;  %v2865_v23 = vmul.f32 %v8028_v41, %v2739_v45 }
 0x2ef   : > { %3011 = vst.msk [vmem:[#allocation3 + $0xe1] sm:$0xff] %vm311_vm0, %v2935_v63  ;;  %v2905_v24 = vadd.f32 %v8033_v37, %v2866_v52  ;;  %3162 = vrot.lane.b32.xlu0 %v3094_v54, %s6629_s30  ;;  %v8162_v7 = vld [vmem:[#allocation3 + $0xb0] sm:$0xff]  ;;  %v8168_v57 = vld [vmem:[#allocation3 + $0xa8] sm:$0xff] }
 0x2f0   : > { %3168 = vrot.lane.b32.xlu1 %v3097_v32, %s6629_s30  ;;  %3010 = vst.msk [vmem:[#allocation3 + $0xd9] sm:$0xff] %vm311_vm0, %v2934_v53  ;;  %v2904_v59 = vadd.f32 %v8033_v37, %v2865_v23  ;;  %v6279_v17 = vpop.f32.mrb[20].mxu0  ;;  %3073 = vst.msk [vmem:[#allocation4 + $0x78] sm:$0xff] %vm311_vm0, %v8162_v7  ;;  %v3099_v63 = vld [vmem:[#allocation3 + $0x69] sm:$0xff] }
 0x2f1   : > { %v2937_v42 = vmax.f32 %v2905_v24, 0.0  ;;  %v2868_v1 = vmul.f32 %v6279_v17, %v8028_v41  ;;  %v2749_v3 = vpop.f32.mrb[21].mxu0  ;;  %3072 = vst.msk [vmem:[#allocation4 + $0x70] sm:$0xff] %vm311_vm0, %v8168_v57 }
 0x2f2   : > { %v2936_v48 = vmax.f32 %v2904_v59, 0.0  ;;  %v2867_v22 = vmul.f32 %v8028_v41, %v2749_v3  ;;  %v3291_v3 = vld [vmem:[#allocation3 + $0x6a] sm:$0xff] }
 0x2f3   : > { %3013 = vst.msk [vmem:[#allocation3 + $0xf9] sm:$0xff] %vm311_vm0, %v2937_v42  ;;  %v2907_v44 = vadd.f32 %v8033_v37, %v2868_v1  ;;  %3354 = vrot.lane.b32.xlu0 %v3286_v15, %s6630_s8  ;;  %v8178_v12 = vld [vmem:[#allocation3 + $0xc8] sm:$0xff]  ;;  %v8184_v46 = vld [vmem:[#allocation3 + $0xc0] sm:$0xff] }
 0x2f4   : > { %3360 = vrot.lane.b32.xlu1 %v3289_v27, %s6630_s8  ;;  %3012 = vst.msk [vmem:[#allocation3 + $0xf1] sm:$0xff] %vm311_vm0, %v2936_v48  ;;  %v2906_v2 = vadd.f32 %v8033_v37, %v2867_v22  ;;  %v6282_v14 = vpop.f32.mrb[22].mxu0  ;;  %3075 = vst.msk [vmem:[#allocation4 + $0x88] sm:$0xff] %vm311_vm0, %v8178_v12  ;;  %v8238_v1 = vld [vmem:[#allocation3 + $0x4a] sm:$0xff] }
 0x2f5   : > { %v2939_v10 = vmax.f32 %v2907_v44, 0.0  ;;  %v2870_v50 = vmul.f32 %v6282_v14, %v8028_v41  ;;  %v2759_v39 = vpop.f32.mrb[23].mxu0  ;;  %3074 = vst.msk [vmem:[#allocation4 + $0x80] sm:$0xff] %vm311_vm0, %v8184_v46 }
 0x2f6   : > { %v2938_v60 = vmax.f32 %v2906_v2, 0.0  ;;  %v2869_v25 = vmul.f32 %v8028_v41, %v2759_v39 }
 0x2f7   : > { %3015 = vst.msk [vmem:[#allocation3 + $0x111] sm:$0xff] %vm311_vm0, %v2939_v10  ;;  %v2909_v16 = vadd.f32 %v8033_v37, %v2870_v50  ;;  %3641 = vrot.lane.b32.xlu0 %v3094_v54, %s6629_s30  ;;  %v8194_v36 = vld [vmem:[#allocation3 + $0xe0] sm:$0xff]  ;;  %v8200_v8 = vld [vmem:[#allocation3 + $0xd8] sm:$0xff] }
 0x2f8   : > { %3647 = vrot.lane.b32.xlu1 %v3097_v32, %s6629_s30  ;;  %3014 = vst.msk [vmem:[#allocation3 + $0x109] sm:$0xff] %vm311_vm0, %v2938_v60  ;;  %v2908_v18 = vadd.f32 %v8033_v37, %v2869_v25  ;;  %v6285_v55 = vpop.f32.mrb[24].mxu0  ;;  %3077 = vst.msk [vmem:[#allocation4 + $0x98] sm:$0xff] %vm311_vm0, %v8194_v36 }
 0x2f9   : > { %v2941_v62 = vmax.f32 %v2909_v16, 0.0  ;;  %v2872_v29 = vmul.f32 %v6285_v55, %v8028_v41  ;;  %v2769_v6 = vpop.f32.mrb[25].mxu0  ;;  %3076 = vst.msk [vmem:[#allocation4 + $0x90] sm:$0xff] %vm311_vm0, %v8200_v8 }
 0x2fa   : > { %v2940_v20 = vmax.f32 %v2908_v18, 0.0  ;;  %v2871_v31 = vmul.f32 %v8028_v41, %v2769_v6  ;;  %v3101_v6 = vld [vmem:[#allocation3 + $0x81] sm:$0xff] }
 0x2fb   : > { %3017 = vst.msk [vmem:[#allocation3 + $0x129] sm:$0xff] %vm311_vm0, %v2941_v62  ;;  %v2911_v35 = vadd.f32 %v8033_v37, %v2872_v29  ;;  %3833 = vrot.lane.b32.xlu0 %v3286_v15, %s6630_s8  ;;  %v8210_v5 = vld [vmem:[#allocation3 + $0xf8] sm:$0xff]  ;;  %v8216_v30 = vld [vmem:[#allocation3 + $0xf0] sm:$0xff]  ;;  %v8271_v62 = vld [vmem:[#allocation3 + $0x61] sm:$0xff] }
 0x2fc   : > { %3166 = vrot.lane.b32.xlu1 %v3096_v21, %s6629_s30  ;;  %3016 = vst.msk [vmem:[#allocation3 + $0x121] sm:$0xff] %vm311_vm0, %v2940_v20  ;;  %v2910_v11 = vadd.f32 %v8033_v37, %v2871_v31  ;;  %v6288_v38 = vpop.f32.mrb[26].mxu0  ;;  %3079 = vst.msk [vmem:[#allocation4 + $0xa8] sm:$0xff] %vm311_vm0, %v8210_v5 }
 0x2fd   : > { %v2943_v56 = vmax.f32 %v2911_v35, 0.0  ;;  %v2874_v0 = vmul.f32 %v6288_v38, %v8028_v41  ;;  %v2779_v58 = vpop.f32.mrb[27].mxu0  ;;  %3078 = vst.msk [vmem:[#allocation4 + $0xa0] sm:$0xff] %vm311_vm0, %v8216_v30  ;;  %v3293_v35 = vld [vmem:[#allocation3 + $0x82] sm:$0xff]  ;;  %v3103_v38 = vld [vmem:[#allocation3 + $0x99] sm:$0xff] }
 0x2fe   : > { %v2942_v61 = vmax.f32 %v2910_v11, 0.0  ;;  %v2873_v40 = vmul.f32 %v8028_v41, %v2779_v58  ;;  %v8305_v11 = vld [vmem:[#allocation3 + $0x79] sm:$0xff]  ;;  %v3102_v58 = vld [vmem:[#allocation3 + $0x91] sm:$0xff] }
 0x2ff   : > { %3019 = vst.msk [vmem:[#allocation3 + $0x141] sm:$0xff] %vm311_vm0, %v2943_v56  ;;  %v2913_v52 = vadd.f32 %v8033_v37, %v2874_v0  ;;  %3839 = vrot.lane.b32.xlu0 %v3289_v27, %s6630_s8  ;;  %v8226_v45 = vld [vmem:[#allocation3 + $0x108] sm:$0xff]  ;;  %v8232_v54 = vld [vmem:[#allocation3 + $0x110] sm:$0xff]  ;;  %v3292_v56 = vld [vmem:[#allocation3 + $0x7a] sm:$0xff] }
 0x300   : > { %3172 = vrot.lane.b32.xlu1 %v3099_v63, %s6629_s30  ;;  %3018 = vst.msk [vmem:[#allocation3 + $0x139] sm:$0xff] %vm311_vm0, %v2942_v61  ;;  %v2912_v53 = vadd.f32 %v8033_v37, %v2873_v40  ;;  %v6291_v23 = vpop.f32.mrb[28].mxu0  ;;  %3080 = vst.msk [vmem:[#allocation4 + $0xb0] sm:$0xff] %vm311_vm0, %v8226_v45  ;;  %v3295_v0 = vld [vmem:[#allocation3 + $0x9a] sm:$0xff]  ;;  %v3105_v61 = vld [vmem:[#allocation3 + $0xb1] sm:$0xff] }
 0x301   : > { %v2945_v32 = vmax.f32 %v2913_v52, 0.0  ;;  %v2876_v24 = vmul.f32 %v6291_v23, %v8028_v41  ;;  %v2789_v59 = vpop.f32.mrb[29].mxu0  ;;  %3081 = vst.msk [vmem:[#allocation4 + $0xb8] sm:$0xff] %vm311_vm0, %v8232_v54  ;;  %v3294_v40 = vld [vmem:[#allocation3 + $0x92] sm:$0xff]  ;;  %v3104_v52 = vld [vmem:[#allocation3 + $0xa9] sm:$0xff] }
 0x302   : > { %v2944_v17 = vmax.f32 %v2912_v53, 0.0  ;;  %v2875_v42 = vmul.f32 %v8028_v41, %v2789_v59  ;;  %v3107_v53 = vld [vmem:[#allocation3 + $0xc9] sm:$0xff] }
 0x303   : > { %3021 = vst.msk [vmem:[#allocation3 + $0x159] sm:$0xff] %vm311_vm0, %v2945_v32  ;;  %v2915_v48 = vadd.f32 %v8033_v37, %v2876_v24  ;;  %3358 = vrot.lane.b32.xlu0 %v8238_v1, %s6630_s8  ;;  %v8245_v22 = vld [vmem:[#allocation3 + $0x120] sm:$0xff]  ;;  %v8251_v44 = vld [vmem:[#allocation3 + $0x128] sm:$0xff] }
 0x304   : > { %3364 = vrot.lane.b32.xlu1 %v3291_v3, %s6630_s8  ;;  %3020 = vst.msk [vmem:[#allocation3 + $0x151] sm:$0xff] %vm311_vm0, %v2944_v17  ;;  %v2914_v15 = vadd.f32 %v8033_v37, %v2875_v42  ;;  %v6294_v27 = vpop.f32.mrb[30].mxu0  ;;  %3082 = vst.msk [vmem:[#allocation4 + $0xc0] sm:$0xff] %vm311_vm0, %v8245_v22  ;;  %v3296_v23 = vld [vmem:[#allocation3 + $0xaa] sm:$0xff]  ;;  %v3106_v17 = vld [vmem:[#allocation3 + $0xc1] sm:$0xff] }
 0x305   : > { %v2947_v2 = vmax.f32 %v2915_v48, 0.0  ;;  %v2878_v14 = vmul.f32 %v6294_v27, %v8028_v41  ;;  %v2799_v10 = vpop.f32.mrb[31].mxu0  ;;  %3083 = vst.msk [vmem:[#allocation4 + $0xc8] sm:$0xff] %vm311_vm0, %v8251_v44  ;;  %v3299_v32 = vld [vmem:[#allocation3 + $0xca] sm:$0xff]  ;;  %v3109_v48 = vld [vmem:[#allocation3 + $0xe1] sm:$0xff] }
 0x306   : > { %v2946_v50 = vmax.f32 %v2914_v15, 0.0  ;;  %v2877_v39 = vmul.f32 %v8028_v41, %v2799_v10 }
 0x307   : > { %3023 = vst.msk [vmem:[#allocation3 + $0x171] sm:$0xff] %vm311_vm0, %v2947_v2  ;;  %v2917_v60 = vadd.f32 %v8033_v37, %v2878_v14  ;;  %3645 = vrot.lane.b32.xlu0 %v3096_v21, %s6629_s30  ;;  %v8261_v25 = vld [vmem:[#allocation3 + $0x138] sm:$0xff]  ;;  %v8267_v18 = vld [vmem:[#allocation3 + $0x140] sm:$0xff] }
 0x308   : > { %3651 = vrot.lane.b32.xlu1 %v3099_v63, %s6629_s30  ;;  %3022 = vst.msk [vmem:[#allocation3 + $0x169] sm:$0xff] %vm311_vm0, %v2946_v50  ;;  %v2916_v16 = vadd.f32 %v8033_v37, %v2877_v39  ;;  %3084 = vst.msk [vmem:[#allocation4 + $0xd0] sm:$0xff] %vm311_vm0, %v8261_v25  ;;  %v8297_v21 = vld [vmem:[#allocation3 + $0x62] sm:$0xff]  ;;  %v3297_v63 = vld [vmem:[#allocation3 + $0xb2] sm:$0xff] }
 0x309   : > { %v2949_v41 = vmax.f32 %v2917_v60, 0.0  ;;  %3085 = vst.msk [vmem:[#allocation4 + $0xd8] sm:$0xff] %vm311_vm0, %v8267_v18  ;;  %v3298_v2 = vld [vmem:[#allocation3 + $0xc2] sm:$0xff] }
 0x30a   : > { %v2948_v55 = vmax.f32 %v2916_v16, 0.0  ;;  %v8343_v14 = vld [vmem:[#allocation3 + $0xe2] sm:$0xff] }
 0x30b   : > { %3025 = vst.msk [vmem:[#allocation3 + $0x189] sm:$0xff] %vm311_vm0, %v2949_v41  ;;  %3837 = vrot.lane.b32.xlu0 %v8238_v1, %s6630_s8  ;;  %v8278_v37 = vld [vmem:[#allocation3 + $0x150] sm:$0xff]  ;;  %v8283_v29 = vld [vmem:[#allocation3 + $0x158] sm:$0xff] }
 0x30c   : > { %3170 = vrot.lane.b32.xlu1 %v8271_v62, %s6629_s30  ;;  %3024 = vst.msk [vmem:[#allocation3 + $0x181] sm:$0xff] %vm311_vm0, %v2948_v55  ;;  %3086 = vst.msk [vmem:[#allocation4 + $0xe0] sm:$0xff] %vm311_vm0, %v8278_v37  ;;  %v8361_v55 = vld [vmem:[#allocation3 + $0xd9] sm:$0xff] }
 0x30d   : > { %3087 = vst.msk [vmem:[#allocation4 + $0xe8] sm:$0xff] %vm311_vm0, %v8283_v29 }
 0x30f   : > { %3843 = vrot.lane.b32.xlu0 %v3291_v3, %s6630_s8  ;;  %v8289_v20 = vld [vmem:[#allocation3 + $0x168] sm:$0xff]  ;;  %v8293_v31 = vld [vmem:[#allocation3 + $0x170] sm:$0xff] }
 0x310   : > { %3176 = vrot.lane.b32.xlu1 %v3101_v6, %s6629_s30  ;;  %3088 = vst.msk [vmem:[#allocation4 + $0xf0] sm:$0xff] %vm311_vm0, %v8289_v20  ;;  %3089 = vst.msk [vmem:[#allocation4 + $0xf8] sm:$0xff] %vm311_vm0, %v8293_v31 }
 0x313   : > { %3362 = vrot.lane.b32.xlu0 %v8297_v21, %s6630_s8 }
 0x314   : > { %3368 = vrot.lane.b32.xlu1 %v3293_v35, %s6630_s8 }
 0x317   : > { %3649 = vrot.lane.b32.xlu0 %v8271_v62, %s6629_s30 }
 0x318   : > { %3655 = vrot.lane.b32.xlu1 %v3101_v6, %s6629_s30 }
 0x31b   : > { %3841 = vrot.lane.b32.xlu0 %v8297_v21, %s6630_s8 }
 0x31c   : > { %3174 = vrot.lane.b32.xlu1 %v8305_v11, %s6629_s30 }
 0x31f   : > { %3847 = vrot.lane.b32.xlu0 %v3293_v35, %s6630_s8  ;;  %v4637_v35 = vld [vmem:[#allocation3 + $0x38] sm:$0xff] }
 0x320   : > { %3180 = vrot.lane.b32.xlu1 %v3103_v38, %s6629_s30 }
 0x323   : > { %3366 = vrot.lane.b32.xlu0 %v3292_v56, %s6630_s8 }
 0x324   : > { %3372 = vrot.lane.b32.xlu1 %v3295_v0, %s6630_s8 }
 0x327   : > { %3653 = vrot.lane.b32.xlu0 %v8305_v11, %s6629_s30 }
 0x328   : > { %3659 = vrot.lane.b32.xlu1 %v3103_v38, %s6629_s30 }
 0x32b   : > { %3845 = vrot.lane.b32.xlu0 %v3292_v56, %s6630_s8  ;;  %v8370_v56 = vld [vmem:[#allocation3 + $0xda] sm:$0xff] }
 0x32c   : > { %3178 = vrot.lane.b32.xlu1 %v3102_v58, %s6629_s30 }
 0x32f   : > { %3851 = vrot.lane.b32.xlu0 %v3295_v0, %s6630_s8  ;;  %v8372_v0 = vld [vmem:[#allocation3 + $0xf9] sm:$0xff] }
 0x330   : > { %3184 = vrot.lane.b32.xlu1 %v3105_v61, %s6629_s30 }
 0x333   : > { %3370 = vrot.lane.b32.xlu0 %v3294_v40, %s6630_s8 }
 0x334   : > { %3376 = vrot.lane.b32.xlu1 %v3297_v63, %s6630_s8 }
 0x337   : > { %3657 = vrot.lane.b32.xlu0 %v3102_v58, %s6629_s30 }
 0x338   : > { %3663 = vrot.lane.b32.xlu1 %v3105_v61, %s6629_s30 }
 0x33b   : > { %3849 = vrot.lane.b32.xlu0 %v3294_v40, %s6630_s8 }
 0x33c   : > { %3182 = vrot.lane.b32.xlu1 %v3104_v52, %s6629_s30 }
 0x33f   : > { %3855 = vrot.lane.b32.xlu0 %v3297_v63, %s6630_s8  ;;  %v4636_v63 = vld [vmem:[#allocation3 + $0x30] sm:$0xff] }
 0x340   : > { %3188 = vrot.lane.b32.xlu1 %v3107_v53, %s6629_s30 }
 0x343   : > { %3374 = vrot.lane.b32.xlu0 %v3296_v23, %s6630_s8 }
 0x344   : > { %3380 = vrot.lane.b32.xlu1 %v3299_v32, %s6630_s8 }
 0x347   : > { %3661 = vrot.lane.b32.xlu0 %v3104_v52, %s6629_s30  ;;  %v8390_v52 = vld [vmem:[#allocation3 + $0xfa] sm:$0xff] }
 0x348   : > { %3667 = vrot.lane.b32.xlu1 %v3107_v53, %s6629_s30 }
 0x349   : > { %v3832_v24 = vpop.permute.xlu0 %3831 }
 0x34a   : > { %v3161_v59 = vpop.permute.xlu1 %3160 }
 0x34b   : > { %3253 = vst.msk [vmem:[#allocation4 + $0x18] sm:$0xff] %vm614_vm3, %v3161_v59  ;;  %3853 = vrot.lane.b32.xlu0 %v3296_v23, %s6630_s8  ;;  %v8400_v59 = vld [vmem:[#allocation3 + $0xf1] sm:$0xff] }
 0x34c   : > { %3186 = vrot.lane.b32.xlu1 %v3106_v17, %s6629_s30 }
 0x34d   : > { %v3159_v3 = vpop.permute.xlu0 %3158 }
 0x34e   : > { %v3353_v42 = vpop.permute.xlu1 %3352  ;;  %3252 = vst.msk [vmem:[#allocation4 + $0x10] sm:$0xff] %vm614_vm3, %v3159_v3  ;;  %v8409_v3 = vld [vmem:[#allocation3 + $0x109] sm:$0xff] }
 0x34f   : > { %3445 = vst.msk [vmem:[#allocation4 + $0x18] sm:$0xff] %vm807_vm4, %v3353_v42  ;;  %3859 = vrot.lane.b32.xlu0 %v3299_v32, %s6630_s8  ;;  %v8396_v32 = vld [vmem:[#allocation3 + $0xf2] sm:$0xff] }
 0x350   : > { %3192 = vrot.lane.b32.xlu1 %v3109_v48, %s6629_s30 }
 0x351   : > { %v3351_v27 = vpop.permute.xlu0 %3350 }
 0x352   : > { %v3640_v15 = vpop.permute.xlu1 %3639  ;;  %3444 = vst.msk [vmem:[#allocation4 + $0x10] sm:$0xff] %vm807_vm4, %v3351_v27 }
 0x353   : > { %3734 = vst.msk [vmem:[#allocation4 + $0x8] sm:$0xff] %vm614_vm3, %v3640_v15  ;;  %3378 = vrot.lane.b32.xlu0 %v3298_v2, %s6630_s8 }
 0x354   : > { %3926 = vst.msk [vmem:[#allocation4 + $0x8] sm:$0xff] %vm807_vm4, %v3832_v24  ;;  %3384 = vrot.lane.b32.xlu1 %v8343_v14, %s6630_s8  ;;  %v4639_v24 = vld [vmem:[#allocation3 + $0x50] sm:$0xff] }
 0x355   : > { %v3638_v10 = vpop.permute.xlu0 %3637 }
 0x356   : > { %v3165_v50 = vpop.permute.xlu1 %3164  ;;  %v8349_v39 = vld [vmem:[#allocation4 + $0x18] sm:$0xff]  ;;  %3733 = vst.msk [vmem:[#allocation4] sm:$0xff] %vm614_vm3, %v3638_v10  ;;  %v8425_v10 = vld [vmem:[#allocation3 + $0x111] sm:$0xff] }
 0x357   : > { %3255 = vst.msk [vmem:[#allocation4 + $0x28] sm:$0xff] %vm614_vm3, %v3165_v50  ;;  %3665 = vrot.lane.b32.xlu0 %v3106_v17, %s6629_s30 }
 0x358   : > { %3544 = vst.msk [vmem:[#allocation4 + $0x18] sm:$0xff] %vm311_vm0, %v8073_v49  ;;  %3671 = vrot.lane.b32.xlu1 %v3109_v48, %s6629_s30 }
 0x359   : > { %v3830_v60 = vpop.permute.xlu0 %3829  ;;  %v8357_v41 = vld [vmem:[#allocation4 + $0x10] sm:$0xff] }
 0x35a   : > { %v3357_v16 = vpop.permute.xlu1 %3356  ;;  %3925 = vst.msk [vmem:[#allocation4] sm:$0xff] %vm807_vm4, %v3830_v60 }
 0x35b   : > { %3447 = vst.msk [vmem:[#allocation4 + $0x28] sm:$0xff] %vm807_vm4, %v3357_v16  ;;  %v3958_v6 = vld [vmem:[#allocation4 + $0x8] sm:$0xff]  ;;  %3857 = vrot.lane.b32.xlu0 %v3298_v2, %s6630_s8  ;;  %v8431_v16 = vld [vmem:[#allocation3 + $0x10a] sm:$0xff] }
 0x35c   : > { %3543 = vst.msk [vmem:[#allocation4 + $0x10] sm:$0xff] %vm311_vm0, %v8085_v4  ;;  %3190 = vrot.lane.b32.xlu1 %v8361_v55, %s6629_s30  ;;  %4669 = vst.msk [vmem:[#allocation4 + $0x8] sm:$0xff] %vm311_vm0, %v4637_v35  ;;  %v4638_v35 = vld [vmem:[#allocation3 + $0x48] sm:$0xff] }
 0x35d   : > { %v3836_v49 = vpop.permute.xlu0 %3835 }
 0x35e   : > { %v3644_v38 = vpop.permute.xlu1 %3643 }
 0x35f   : > { %3736 = vst.msk [vmem:[#allocation4 + $0x18] sm:$0xff] %vm614_vm3, %v3644_v38  ;;  %3382 = vrot.lane.b32.xlu0 %v8370_v56, %s6630_s8 }
 0x360   : > { %3928 = vst.msk [vmem:[#allocation4 + $0x18] sm:$0xff] %vm807_vm4, %v3836_v49  ;;  %3196 = vrot.lane.b32.xlu1 %v8372_v0, %s6629_s30 }
 0x361   : > { %v3163_v4 = vpop.permute.xlu0 %3162  ;;  %v3957_v61 = vld [vmem:[#allocation4] sm:$0xff] }
 0x362   : > { %v3169_v58 = vpop.permute.xlu1 %3168  ;;  %v8379_v40 = vld [vmem:[#allocation4 + $0x28] sm:$0xff]  ;;  %3254 = vst.msk [vmem:[#allocation4 + $0x20] sm:$0xff] %vm614_vm3, %v3163_v4  ;;  %6301 = vmatprep.mubr.msk.f32.mxu1 %vm1359_vm5, %v3957_v61  ;;  %v8453_v61 = vld [vmem:[#allocation3 + $0x121] sm:$0xff] }
 0x363   : > { %3257 = vst.msk [vmem:[#allocation4 + $0x38] sm:$0xff] %vm614_vm3, %v3169_v58  ;;  %6302 = vmatmul.mubr.msk.f32.vlgmr.msra.gmra.mrb[0].mxu1 %vm1359_vm5, %v3958_v6  ;;  %3669 = vrot.lane.b32.xlu0 %v8361_v55, %s6629_s30  ;;  %v4641_v58 = vld [vmem:[#allocation3 + $0x68] sm:$0xff] }
 0x364   : > { %3546 = vst.msk [vmem:[#allocation4 + $0x28] sm:$0xff] %vm311_vm0, %v8100_v26  ;;  %4668 = vst.msk [vmem:[#allocation4] sm:$0xff] %vm311_vm0, %v4636_v63  ;;  %3388 = vrot.lane.b32.xlu1 %v8390_v52, %s6630_s8 }
 0x365   : > { %v3355_v53 = vpop.permute.xlu0 %3354 }
 0x366   : > { %v3361_v23 = vpop.permute.xlu1 %3360  ;;  %3446 = vst.msk [vmem:[#allocation4 + $0x20] sm:$0xff] %vm807_vm4, %v3355_v53 }
 0x367   : > { %3449 = vst.msk [vmem:[#allocation4 + $0x38] sm:$0xff] %vm807_vm4, %v3361_v23  ;;  %v3960_v26 = vld [vmem:[#allocation4 + $0x18] sm:$0xff]  ;;  %3386 = vrot.lane.b32.xlu0 %v8396_v32, %s6630_s8 }
 0x368   : > { %4671 = vst.msk [vmem:[#allocation4 + $0x18] sm:$0xff] %vm311_vm0, %v4639_v24  ;;  %3194 = vrot.lane.b32.xlu1 %v8400_v59, %s6629_s30 }
 0x369   : > { %v3642_v17 = vpop.permute.xlu0 %3641 }
 0x36a   : > { %v3648_v42 = vpop.permute.xlu1 %3647  ;;  %3735 = vst.msk [vmem:[#allocation4 + $0x10] sm:$0xff] %vm614_vm3, %v3642_v17 }
 0x36b   : > { %3738 = vst.msk [vmem:[#allocation4 + $0x28] sm:$0xff] %vm614_vm3, %v3648_v42  ;;  %3861 = vrot.lane.b32.xlu0 %v8370_v56, %s6630_s8  ;;  %v8475_v42 = vld [vmem:[#allocation3 + $0x122] sm:$0xff] }
 0x36c   : > { %3198 = vrot.lane.b32.xlu1 %v8409_v3, %s6629_s30 }
 0x36d   : > { %v3834_v48 = vpop.permute.xlu0 %3833  ;;  %v8413_v27 = vld [vmem:[#allocation4 + $0x20] sm:$0xff] }
 0x36e   : > { %v3167_v15 = vpop.permute.xlu1 %3166  ;;  %v8415_v2 = vld [vmem:[#allocation4 + $0x38] sm:$0xff]  ;;  %3927 = vst.msk [vmem:[#allocation4 + $0x10] sm:$0xff] %vm807_vm4, %v3834_v48 }
 0x36f   : > { %9382 = vst [vmem:[#allocation37_spill] sm:$0xff] %v8415_v2  ;;  %3256 = vst.msk [vmem:[#allocation4 + $0x30] sm:$0xff] %vm614_vm3, %v3167_v15  ;;  %3863 = vrot.lane.b32.xlu0 %v8343_v14, %s6630_s8 }
 0x370   : > { %3545 = vst.msk [vmem:[#allocation4 + $0x20] sm:$0xff] %vm311_vm0, %v8102_v19  ;;  %3548 = vst.msk [vmem:[#allocation4 + $0x38] sm:$0xff] %vm311_vm0, %v8114_v28  ;;  %3200 = vrot.lane.b32.xlu1 %v8425_v10, %s6629_s30  ;;  %v8435_v19 = vld [vmem:[#allocation3 + $0x112] sm:$0xff] }
 0x371   : > { %v3840_v50 = vpop.permute.xlu0 %3839 }
 0x372   : > { %v3173_v60 = vpop.permute.xlu1 %3172  ;;  %3930 = vst.msk [vmem:[#allocation4 + $0x28] sm:$0xff] %vm807_vm4, %v3840_v50  ;;  %v4640_v50 = vld [vmem:[#allocation3 + $0x60] sm:$0xff] }
 0x373   : > { %3259 = vst.msk [vmem:[#allocation4 + $0x48] sm:$0xff] %vm614_vm3, %v3173_v60  ;;  %3390 = vrot.lane.b32.xlu0 %v8431_v16, %s6630_s8 }
 0x374   : > { %3392 = vrot.lane.b32.xlu1 %v8435_v19, %s6630_s8 }
 0x375   : > { %v3359_v28 = vpop.permute.xlu0 %3358  ;;  %v3959_v6 = vld [vmem:[#allocation4 + $0x10] sm:$0xff] }
 0x376   : > { %v3365_v14 = vpop.permute.xlu1 %3364  ;;  %3448 = vst.msk [vmem:[#allocation4 + $0x30] sm:$0xff] %vm807_vm4, %v3359_v28  ;;  %6304 = vmatprep.mubr.msk.f32.mxu1 %vm1359_vm5, %v3959_v6  ;;  %v4643_v6 = vld [vmem:[#allocation3 + $0x80] sm:$0xff] }
 0x377   : > { %3451 = vst.msk [vmem:[#allocation4 + $0x48] sm:$0xff] %vm807_vm4, %v3365_v14  ;;  %6305 = vmatmul.mubr.msk.f32.gmra.mrb[2].mxu1 %vm1359_vm5, %v3960_v26  ;;  %3673 = vrot.lane.b32.xlu0 %v8400_v59, %s6629_s30  ;;  %v8469_v26 = vld [vmem:[#allocation3 + $0x129] sm:$0xff] }
 0x378   : > { %4670 = vst.msk [vmem:[#allocation4 + $0x10] sm:$0xff] %vm311_vm0, %v4638_v35  ;;  %3675 = vrot.lane.b32.xlu1 %v8372_v0, %s6629_s30  ;;  %v8497_v35 = vld [vmem:[#allocation3 + $0x139] sm:$0xff] }
 0x379   : > { %v3646_v49 = vpop.permute.xlu0 %3645  ;;  %v3962_v4 = vld [vmem:[#allocation4 + $0x28] sm:$0xff] }
 0x37a   : > { %v3652_v38 = vpop.permute.xlu1 %3651  ;;  %3737 = vst.msk [vmem:[#allocation4 + $0x20] sm:$0xff] %vm614_vm3, %v3646_v49  ;;  %v3506_v49 = vld [vmem:[%s9304_s4] sm:$0xff] }
 0x37b   : > { %3740 = vst.msk [vmem:[#allocation4 + $0x38] sm:$0xff] %vm614_vm3, %v3652_v38  ;;  %3865 = vrot.lane.b32.xlu0 %v8396_v32, %s6630_s8  ;;  %v3507_v38 = vld [vmem:[%s9304_s4 + $0x8] sm:$0xff] }
 0x37c   : > { %4673 = vst.msk [vmem:[#allocation4 + $0x28] sm:$0xff] %vm311_vm0, %v4641_v58  ;;  %3202 = vrot.lane.b32.xlu1 %v8453_v61, %s6629_s30 }
 0x37d   : > { %v3838_v63 = vpop.permute.xlu0 %3837  ;;  %v8457_v53 = vld [vmem:[#allocation4 + $0x30] sm:$0xff] }
 0x37e   : > { %v3171_v0 = vpop.permute.xlu1 %3170  ;;  %v8459_v23 = vld [vmem:[#allocation4 + $0x48] sm:$0xff]  ;;  %3929 = vst.msk [vmem:[#allocation4 + $0x20] sm:$0xff] %vm807_vm4, %v3838_v63 }
 0x37f   : > { %9383 = vst [vmem:[#allocation38_spill] sm:$0xff] %v8459_v23  ;;  %3258 = vst.msk [vmem:[#allocation4 + $0x40] sm:$0xff] %vm614_vm3, %v3171_v0  ;;  %3867 = vrot.lane.b32.xlu0 %v8390_v52, %s6630_s8  ;;  %v4700_v23 = vld [vmem:[#allocation3 + $0x31] sm:$0xff] }
 0x380   : > { %3547 = vst.msk [vmem:[#allocation4 + $0x30] sm:$0xff] %vm311_vm0, %v8120_v13  ;;  %3550 = vst.msk [vmem:[#allocation4 + $0x48] sm:$0xff] %vm311_vm0, %v8130_v33  ;;  %3204 = vrot.lane.b32.xlu1 %v8469_v26, %s6629_s30  ;;  %v8479_v13 = vld [vmem:[#allocation3 + $0x12a] sm:$0xff] }
 0x381   : > { %v3844_v24 = vpop.permute.xlu0 %3843 }
 0x382   : > { %v3177_v17 = vpop.permute.xlu1 %3176  ;;  %3932 = vst.msk [vmem:[#allocation4 + $0x38] sm:$0xff] %vm807_vm4, %v3844_v24 }
 0x383   : > { %3261 = vst.msk [vmem:[#allocation4 + $0x58] sm:$0xff] %vm614_vm3, %v3177_v17  ;;  %3394 = vrot.lane.b32.xlu0 %v8475_v42, %s6630_s8  ;;  %v8519_v17 = vld [vmem:[#allocation3 + $0x141] sm:$0xff] }
 0x384   : > { %3396 = vrot.lane.b32.xlu1 %v8479_v13, %s6630_s8 }
 0x385   : > { %v3363_v33 = vpop.permute.xlu0 %3362  ;;  %v3961_v15 = vld [vmem:[#allocation4 + $0x20] sm:$0xff] }
 0x386   : > { %v3369_v48 = vpop.permute.xlu1 %3368  ;;  %3450 = vst.msk [vmem:[#allocation4 + $0x40] sm:$0xff] %vm807_vm4, %v3363_v33  ;;  %6307 = vmatprep.mubr.msk.f32.mxu1 %vm1359_vm5, %v3961_v15 }
 0x387   : > { %3453 = vst.msk [vmem:[#allocation4 + $0x58] sm:$0xff] %vm807_vm4, %v3369_v48  ;;  %6308 = vmatmul.mubr.msk.f32.gmra.mrb[4].mxu1 %vm1359_vm5, %v3962_v4  ;;  %3677 = vrot.lane.b32.xlu0 %v8409_v3, %s6629_s30  ;;  %v6473_v4 = vpack.c.bf16 %v3507_v38, %v3506_v49 }
 0x388   : > { %4672 = vst.msk [vmem:[#allocation4 + $0x20] sm:$0xff] %vm311_vm0, %v4640_v50  ;;  %3679 = vrot.lane.b32.xlu1 %v8425_v10, %s6629_s30 }
 0x389   : > { %v3650_v60 = vpop.permute.xlu0 %3649  ;;  %v3964_v14 = vld [vmem:[#allocation4 + $0x38] sm:$0xff]  ;;  %6474 = vmatprep.subr.bf16.mxu1 %v6473_v4 }
 0x38a   : > { %v3656_v28 = vpop.permute.xlu1 %3655  ;;  %3739 = vst.msk [vmem:[#allocation4 + $0x30] sm:$0xff] %vm614_vm3, %v3650_v60  ;;  %6476 = vmatpush3.bf16.msra.mxu1 %v6473_v4  ;;  %v4645_v4 = vld [vmem:[#allocation3 + $0x98] sm:$0xff] }
 0x38b   : > { %3742 = vst.msk [vmem:[#allocation4 + $0x48] sm:$0xff] %vm614_vm3, %v3656_v28  ;;  %3869 = vrot.lane.b32.xlu0 %v8431_v16, %s6630_s8  ;;  %v4642_v28 = vld [vmem:[#allocation3 + $0x78] sm:$0xff] }
 0x38c   : > { %4675 = vst.msk [vmem:[#allocation4 + $0x38] sm:$0xff] %vm311_vm0, %v4643_v6  ;;  %3206 = vrot.lane.b32.xlu1 %v8497_v35, %s6629_s30 }
 0x38d   : > { %v3842_v58 = vpop.permute.xlu0 %3841  ;;  %v8507_v0 = vld [vmem:[#allocation4 + $0x40] sm:$0xff] }
 0x38e   : > { %v3175_v63 = vpop.permute.xlu1 %3174  ;;  %9384 = vst [vmem:[#allocation39_spill] sm:$0xff] %v8507_v0  ;;  %v8509_v24 = vld [vmem:[#allocation4 + $0x58] sm:$0xff]  ;;  %3931 = vst.msk [vmem:[#allocation4 + $0x30] sm:$0xff] %vm807_vm4, %v3842_v58 }
 0x38f   : > { %9385 = vst [vmem:[#allocation40_spill] sm:$0xff] %v8509_v24  ;;  %3260 = vst.msk [vmem:[#allocation4 + $0x50] sm:$0xff] %vm614_vm3, %v3175_v63  ;;  %3871 = vrot.lane.b32.xlu0 %v8435_v19, %s6630_s8  ;;  %v4649_v24 = vld [vmem:[#allocation3 + $0xc8] sm:$0xff] }
 0x390   : > { %3549 = vst.msk [vmem:[#allocation4 + $0x40] sm:$0xff] %vm311_vm0, %v8136_v47  ;;  %3552 = vst.msk [vmem:[#allocation4 + $0x58] sm:$0xff] %vm311_vm0, %v8146_v34  ;;  %3208 = vrot.lane.b32.xlu1 %v8519_v17, %s6629_s30  ;;  %v8525_v47 = vld [vmem:[#allocation3 + $0x13a] sm:$0xff]  ;;  %v8529_v34 = vld [vmem:[#allocation3 + $0x142] sm:$0xff] }
 0x391   : > { %v3848_v33 = vpop.permute.xlu0 %3847 }
 0x392   : > { %v3181_v48 = vpop.permute.xlu1 %3180  ;;  %3934 = vst.msk [vmem:[#allocation4 + $0x48] sm:$0xff] %vm807_vm4, %v3848_v33 }
 0x393   : > { %3263 = vst.msk [vmem:[#allocation4 + $0x68] sm:$0xff] %vm614_vm3, %v3181_v48  ;;  %3398 = vrot.lane.b32.xlu0 %v8525_v47, %s6630_s8 }
 0x394   : > { %3400 = vrot.lane.b32.xlu1 %v8529_v34, %s6630_s8 }
 0x395   : > { %v3367_v15 = vpop.permute.xlu0 %3366  ;;  %v3963_v60 = vld [vmem:[#allocation4 + $0x30] sm:$0xff] }
 0x396   : > { %v3373_v50 = vpop.permute.xlu1 %3372  ;;  %3452 = vst.msk [vmem:[#allocation4 + $0x50] sm:$0xff] %vm807_vm4, %v3367_v15  ;;  %6310 = vmatprep.mubr.msk.f32.mxu1 %vm1359_vm5, %v3963_v60  ;;  %v8563_v15 = vld [vmem:[#allocation3 + $0x159] sm:$0xff] }
 0x397   : > { %3455 = vst.msk [vmem:[#allocation4 + $0x68] sm:$0xff] %vm807_vm4, %v3373_v50  ;;  %6311 = vmatmul.mubr.msk.f32.gmra.mrb[6].mxu1 %vm1359_vm5, %v3964_v14  ;;  %3681 = vrot.lane.b32.xlu0 %v8453_v61, %s6629_s30  ;;  %v8547_v14 = vld [vmem:[#allocation3 + $0x151] sm:$0xff] }
 0x398   : > { %4674 = vst.msk [vmem:[#allocation4 + $0x30] sm:$0xff] %vm311_vm0, %v4642_v28  ;;  %3683 = vrot.lane.b32.xlu1 %v8469_v26, %s6629_s30  ;;  %v8569_v28 = vld [vmem:[#allocation3 + $0x152] sm:$0xff] }
 0x399   : > { %v3654_v6 = vpop.permute.xlu0 %3653  ;;  %v3966_v38 = vld [vmem:[#allocation4 + $0x48] sm:$0xff] }
 0x39a   : > { %v3660_v49 = vpop.permute.xlu1 %3659  ;;  %3741 = vst.msk [vmem:[#allocation4 + $0x40] sm:$0xff] %vm614_vm3, %v3654_v6 }
 0x39b   : > { %3744 = vst.msk [vmem:[#allocation4 + $0x58] sm:$0xff] %vm614_vm3, %v3660_v49  ;;  %3873 = vrot.lane.b32.xlu0 %v8475_v42, %s6630_s8 }
 0x39c   : > { %4677 = vst.msk [vmem:[#allocation4 + $0x48] sm:$0xff] %vm311_vm0, %v4645_v4  ;;  %3210 = vrot.lane.b32.xlu1 %v8547_v14, %s6629_s30  ;;  %v4644_v4 = vld [vmem:[#allocation3 + $0x90] sm:$0xff] }
 0x39d   : > { %v3846_v58 = vpop.permute.xlu0 %3845  ;;  %v8551_v33 = vld [vmem:[#allocation4 + $0x50] sm:$0xff] }
 0x39e   : > { %v3179_v63 = vpop.permute.xlu1 %3178  ;;  %9386 = vst [vmem:[#allocation41_spill] sm:$0xff] %v8551_v33  ;;  %v8553_v48 = vld [vmem:[#allocation4 + $0x68] sm:$0xff]  ;;  %3933 = vst.msk [vmem:[#allocation4 + $0x40] sm:$0xff] %vm807_vm4, %v3846_v58 }
 0x39f   : > { %9387 = vst [vmem:[#allocation42_spill] sm:$0xff] %v8553_v48  ;;  %3262 = vst.msk [vmem:[#allocation4 + $0x60] sm:$0xff] %vm614_vm3, %v3179_v63  ;;  %3875 = vrot.lane.b32.xlu0 %v8479_v13, %s6630_s8  ;;  %v4646_v48 = vld [vmem:[#allocation3 + $0xa8] sm:$0xff] }
 0x3a0   : > { %3551 = vst.msk [vmem:[#allocation4 + $0x50] sm:$0xff] %vm311_vm0, %v8152_v43  ;;  %3554 = vst.msk [vmem:[#allocation4 + $0x68] sm:$0xff] %vm311_vm0, %v8162_v7  ;;  %3212 = vrot.lane.b32.xlu1 %v8563_v15, %s6629_s30  ;;  %v8573_v43 = vld [vmem:[#allocation3 + $0x15a] sm:$0xff] }
 0x3a1   : > { %v3852_v50 = vpop.permute.xlu0 %3851 }
 0x3a2   : > { %v3185_v60 = vpop.permute.xlu1 %3184  ;;  %3936 = vst.msk [vmem:[#allocation4 + $0x58] sm:$0xff] %vm807_vm4, %v3852_v50 }
 0x3a3   : > { %3265 = vst.msk [vmem:[#allocation4 + $0x78] sm:$0xff] %vm614_vm3, %v3185_v60  ;;  %3402 = vrot.lane.b32.xlu0 %v8569_v28, %s6630_s8  ;;  %v4647_v60 = vld [vmem:[#allocation3 + $0xb0] sm:$0xff] }
 0x3a4   : > { %3404 = vrot.lane.b32.xlu1 %v8573_v43, %s6630_s8 }
 0x3a5   : > { %v3371_v7 = vpop.permute.xlu0 %3370  ;;  %v3965_v49 = vld [vmem:[#allocation4 + $0x40] sm:$0xff] }
 0x3a6   : > { %v3377_v6 = vpop.permute.xlu1 %3376  ;;  %3454 = vst.msk [vmem:[#allocation4 + $0x60] sm:$0xff] %vm807_vm4, %v3371_v7  ;;  %6313 = vmatprep.mubr.msk.f32.mxu1 %vm1359_vm5, %v3965_v49  ;;  %v3508_v7 = vld [vmem:[%s9304_s4 + $0x10] sm:$0xff] }
 0x3a7   : > { %3457 = vst.msk [vmem:[#allocation4 + $0x78] sm:$0xff] %vm807_vm4, %v3377_v6  ;;  %6314 = vmatmul.mubr.msk.f32.gmra.mrb[8].mxu1 %vm1359_vm5, %v3966_v38  ;;  %3685 = vrot.lane.b32.xlu0 %v8497_v35, %s6629_s30  ;;  %v8591_v38 = vld [vmem:[#allocation3 + $0x169] sm:$0xff] }
 0x3a8   : > { %4676 = vst.msk [vmem:[#allocation4 + $0x40] sm:$0xff] %vm311_vm0, %v4644_v4  ;;  %3687 = vrot.lane.b32.xlu1 %v8519_v17, %s6629_s30  ;;  %6353 = vmatprep.subr.mxu1 %v3508_v7 }
 0x3a9   : > { %v3658_v58 = vpop.permute.xlu0 %3657  ;;  %v3968_v50 = vld [vmem:[#allocation4 + $0x58] sm:$0xff]  ;;  %6354 = vmatpush3.msra.mxu1 %v3508_v7 }
 0x3aa   : > { %v3664_v63 = vpop.permute.xlu1 %3663  ;;  %3743 = vst.msk [vmem:[#allocation4 + $0x50] sm:$0xff] %vm614_vm3, %v3658_v58 }
 0x3ab   : > { %3746 = vst.msk [vmem:[#allocation4 + $0x68] sm:$0xff] %vm614_vm3, %v3664_v63  ;;  %3877 = vrot.lane.b32.xlu0 %v8525_v47, %s6630_s8  ;;  %v8610_v63 = vld [vmem:[#allocation3 + $0x171] sm:$0xff] }
 0x3ac   : > { %4679 = vst.msk [vmem:[#allocation4 + $0x58] sm:$0xff] %vm311_vm0, %v4647_v60  ;;  %3214 = vrot.lane.b32.xlu1 %v8591_v38, %s6629_s30 }
 0x3ad   : > { %v3850_v6 = vpop.permute.xlu0 %3849  ;;  %v8598_v4 = vld [vmem:[#allocation4 + $0x60] sm:$0xff] }
 0x3ae   : > { %v3183_v49 = vpop.permute.xlu1 %3182  ;;  %9388 = vst [vmem:[#allocation43_spill] sm:$0xff] %v8598_v4  ;;  %v8600_v58 = vld [vmem:[#allocation4 + $0x78] sm:$0xff]  ;;  %3935 = vst.msk [vmem:[#allocation4 + $0x50] sm:$0xff] %vm807_vm4, %v3850_v6 }
 0x3af   : > { %9389 = vst [vmem:[#allocation44_spill] sm:$0xff] %v8600_v58  ;;  %3264 = vst.msk [vmem:[#allocation4 + $0x70] sm:$0xff] %vm614_vm3, %v3183_v49  ;;  %3879 = vrot.lane.b32.xlu0 %v8529_v34, %s6630_s8  ;;  %v8616_v6 = vld [vmem:[#allocation3 + $0x16a] sm:$0xff] }
 0x3b0   : > { %3553 = vst.msk [vmem:[#allocation4 + $0x60] sm:$0xff] %vm311_vm0, %v8168_v57  ;;  %3556 = vst.msk [vmem:[#allocation4 + $0x78] sm:$0xff] %vm311_vm0, %v8178_v12  ;;  %3216 = vrot.lane.b32.xlu1 %v8610_v63, %s6629_s30  ;;  %v8620_v57 = vld [vmem:[#allocation3 + $0x172] sm:$0xff] }
 0x3b1   : > { %v3856_v60 = vpop.permute.xlu0 %3855 }
 0x3b2   : > { %v3189_v7 = vpop.permute.xlu1 %3188  ;;  %3938 = vst.msk [vmem:[#allocation4 + $0x68] sm:$0xff] %vm807_vm4, %v3856_v60 }
 0x3b3   : > { %3267 = vst.msk [vmem:[#allocation4 + $0x88] sm:$0xff] %vm614_vm3, %v3189_v7  ;;  %3406 = vrot.lane.b32.xlu0 %v8616_v6, %s6630_s8 }
 0x3b4   : > { %3408 = vrot.lane.b32.xlu1 %v8620_v57, %s6630_s8 }
 0x3b5   : > { %v3375_v12 = vpop.permute.xlu0 %3374  ;;  %v3967_v58 = vld [vmem:[#allocation4 + $0x50] sm:$0xff] }
 0x3b6   : > { %v3381_v49 = vpop.permute.xlu1 %3380  ;;  %3456 = vst.msk [vmem:[#allocation4 + $0x70] sm:$0xff] %vm807_vm4, %v3375_v12  ;;  %6316 = vmatprep.mubr.msk.f32.mxu1 %vm1359_vm5, %v3967_v58 }
 0x3b7   : > { %3459 = vst.msk [vmem:[#allocation4 + $0x88] sm:$0xff] %vm807_vm4, %v3381_v49  ;;  %6317 = vmatmul.mubr.msk.f32.gmra.mrb[10].mxu1 %vm1359_vm5, %v3968_v50  ;;  %3689 = vrot.lane.b32.xlu0 %v8547_v14, %s6629_s30 }
 0x3b8   : > { %4678 = vst.msk [vmem:[#allocation4 + $0x50] sm:$0xff] %vm311_vm0, %v4646_v48  ;;  %3691 = vrot.lane.b32.xlu1 %v8563_v15, %s6629_s30 }
 0x3b9   : > { %v3662_v60 = vpop.permute.xlu0 %3661  ;;  %v3970_v4 = vld [vmem:[#allocation4 + $0x68] sm:$0xff] }
 0x3ba   : > { %v3668_v7 = vpop.permute.xlu1 %3667  ;;  %3745 = vst.msk [vmem:[#allocation4 + $0x60] sm:$0xff] %vm614_vm3, %v3662_v60 }
 0x3bb   : > { %3748 = vst.msk [vmem:[#allocation4 + $0x78] sm:$0xff] %vm614_vm3, %v3668_v7  ;;  %3881 = vrot.lane.b32.xlu0 %v8569_v28, %s6630_s8 }
 0x3bc   : > { %4681 = vst.msk [vmem:[#allocation4 + $0x68] sm:$0xff] %vm311_vm0, %v4649_v24  ;;  %3883 = vrot.lane.b32.xlu1 %v8573_v43, %s6630_s8 }
 0x3bd   : > { %v3854_v48 = vpop.permute.xlu0 %3853  ;;  %v8640_v58 = vld [vmem:[#allocation4 + $0x70] sm:$0xff] }
 0x3be   : > { %v3187_v50 = vpop.permute.xlu1 %3186  ;;  %9390 = vst [vmem:[#allocation45_spill] sm:$0xff] %v8640_v58  ;;  %v8642_v12 = vld [vmem:[#allocation4 + $0x88] sm:$0xff]  ;;  %3937 = vst.msk [vmem:[#allocation4 + $0x60] sm:$0xff] %vm807_vm4, %v3854_v48 }
 0x3bf   : > { %9391 = vst [vmem:[#allocation46_spill] sm:$0xff] %v8642_v12  ;;  %3266 = vst.msk [vmem:[#allocation4 + $0x80] sm:$0xff] %vm614_vm3, %v3187_v50  ;;  %3693 = vrot.lane.b32.xlu0 %v8591_v38, %s6629_s30  ;;  %v8663_v50 = vld [vmem:[#allocation3 + $0x181] sm:$0xff] }
 0x3c0   : > { %3555 = vst.msk [vmem:[#allocation4 + $0x70] sm:$0xff] %vm311_vm0, %v8184_v46  ;;  %3558 = vst.msk [vmem:[#allocation4 + $0x88] sm:$0xff] %vm311_vm0, %v8194_v36  ;;  %3695 = vrot.lane.b32.xlu1 %v8610_v63, %s6629_s30 }
 0x3c1   : > { %v3860_v24 = vpop.permute.xlu0 %3859 }
 0x3c2   : > { %v3193_v49 = vpop.permute.xlu1 %3192  ;;  %3940 = vst.msk [vmem:[#allocation4 + $0x78] sm:$0xff] %vm807_vm4, %v3860_v24  ;;  %v8668_v24 = vld [vmem:[#allocation3 + $0x189] sm:$0xff] }
 0x3c3   : > { %3269 = vst.msk [vmem:[#allocation4 + $0x98] sm:$0xff] %vm614_vm3, %v3193_v49  ;;  %3885 = vrot.lane.b32.xlu0 %v8616_v6, %s6630_s8 }
 0x3c4   : > { %3887 = vrot.lane.b32.xlu1 %v8620_v57, %s6630_s8 }
 0x3c5   : > { %v3379_v60 = vpop.permute.xlu0 %3378  ;;  %v3969_v48 = vld [vmem:[#allocation4 + $0x60] sm:$0xff] }
 0x3c6   : > { %v3385_v7 = vpop.permute.xlu1 %3384  ;;  %3458 = vst.msk [vmem:[#allocation4 + $0x80] sm:$0xff] %vm807_vm4, %v3379_v60  ;;  %6319 = vmatprep.mubr.msk.f32.mxu1 %vm1359_vm5, %v3969_v48  ;;  %v8676_v48 = vld [vmem:[#allocation3 + $0x182] sm:$0xff] }
 0x3c7   : > { %3461 = vst.msk [vmem:[#allocation4 + $0x98] sm:$0xff] %vm807_vm4, %v3385_v7  ;;  %6320 = vmatmul.mubr.msk.f32.gmra.mrb[12].mxu1 %vm1359_vm5, %v3970_v4  ;;  %3697 = vrot.lane.b32.xlu0 %v8663_v50, %s6629_s30  ;;  %v5882_v4 = vld [vmem:[%s9304_s4 + $0x30] sm:$0xff] }
 0x3c8   : > { %4680 = vst.msk [vmem:[#allocation4 + $0x60] sm:$0xff] %vm311_vm0, %v8184_v46  ;;  %3699 = vrot.lane.b32.xlu1 %v8668_v24, %s6629_s30  ;;  %v8680_v46 = vld [vmem:[#allocation3 + $0x18a] sm:$0xff] }
 0x3c9   : > { %v3666_v49 = vpop.permute.xlu0 %3665  ;;  %v3972_v7 = vld [vmem:[#allocation4 + $0x78] sm:$0xff] }
 0x3ca   : > { %v3672_v60 = vpop.permute.xlu1 %3671  ;;  %3747 = vst.msk [vmem:[#allocation4 + $0x70] sm:$0xff] %vm614_vm3, %v3666_v49  ;;  %v5883_v49 = vld [vmem:[%s9304_s4 + $0x38] sm:$0xff] }
 0x3cb   : > { %3750 = vst.msk [vmem:[#allocation4 + $0x88] sm:$0xff] %vm614_vm3, %v3672_v60  ;;  %3889 = vrot.lane.b32.xlu0 %v8676_v48, %s6630_s8  ;;  %v8692_v60 = vpack.c.bf16 %v5883_v49, %v5882_v4  ;;  %v4701_v4 = vld [vmem:[#allocation3 + $0x39] sm:$0xff] }
 0x3cc   : > { %4683 = vst.msk [vmem:[#allocation4 + $0x78] sm:$0xff] %vm311_vm0, %v8194_v36  ;;  %3891 = vrot.lane.b32.xlu1 %v8680_v46, %s6630_s8 }
 0x3cd   : > { %v3858_v12 = vpop.permute.xlu0 %3857  ;;  %v8694_v58 = vld [vmem:[#allocation4 + $0x80] sm:$0xff]  ;;  %6478 = vmatprep.subr.bf16.mxu1 %v8692_v60 }
 0x3ce   : > { %v3191_v36 = vpop.permute.xlu1 %3190  ;;  %9392 = vst [vmem:[#allocation47_spill] sm:$0xff] %v8694_v58  ;;  %v8696_v33 = vld [vmem:[#allocation4 + $0x98] sm:$0xff]  ;;  %3939 = vst.msk [vmem:[#allocation4 + $0x70] sm:$0xff] %vm807_vm4, %v3858_v12  ;;  %v4892_v12 = vld [vmem:[#allocation3 + $0x32] sm:$0xff] }
 0x3cf   : > { %9393 = vst [vmem:[#allocation48_spill] sm:$0xff] %v8696_v33  ;;  %3268 = vst.msk [vmem:[#allocation4 + $0x90] sm:$0xff] %vm614_vm3, %v3191_v36  ;;  %4764 = vrot.lane.b32.xlu0 %v4700_v23, %s6629_s30  ;;  %v4893_v36 = vld [vmem:[#allocation3 + $0x3a] sm:$0xff]  ;;  %v4702_v23 = vld [vmem:[#allocation3 + $0x49] sm:$0xff] }
 0x3d0   : > { %3557 = vst.msk [vmem:[#allocation4 + $0x80] sm:$0xff] %vm311_vm0, %v8200_v8  ;;  %3560 = vst.msk [vmem:[#allocation4 + $0x98] sm:$0xff] %vm311_vm0, %v8210_v5  ;;  %4766 = vrot.lane.b32.xlu1 %v4701_v4, %s6629_s30 }
 0x3d1   : > { %v3383_v49 = vpop.permute.xlu0 %3382 }
 0x3d2   : > { %v3197_v33 = vpop.permute.xlu1 %3196  ;;  %3460 = vst.msk [vmem:[#allocation4 + $0x90] sm:$0xff] %vm807_vm4, %v3383_v49 }
 0x3d3   : > { %3271 = vst.msk [vmem:[#allocation4 + $0xa8] sm:$0xff] %vm614_vm3, %v3197_v33  ;;  %4956 = vrot.lane.b32.xlu0 %v4892_v12, %s6630_s8  ;;  %v4703_v33 = vld [vmem:[#allocation3 + $0x51] sm:$0xff]  ;;  %v4705_v12 = vld [vmem:[#allocation3 + $0x69] sm:$0xff] }
 0x3d4   : > { %4958 = vrot.lane.b32.xlu1 %v4893_v36, %s6630_s8 }
 0x3d5   : > { %v3670_v58 = vpop.permute.xlu0 %3669  ;;  %v3971_v0 = vld [vmem:[#allocation4 + $0x70] sm:$0xff] }
 0x3d6   : > { %3749 = vst.msk [vmem:[#allocation4 + $0x80] sm:$0xff] %vm614_vm3, %v3670_v58  ;;  %v3389_v2 = vpop.permute.xlu1 %3388  ;;  %6322 = vmatprep.mubr.msk.f32.mxu1 %vm1359_vm5, %v3971_v0  ;;  %v4895_v0 = vld [vmem:[#allocation3 + $0x52] sm:$0xff] }
 0x3d7   : > { %4682 = vst.msk [vmem:[#allocation4 + $0x70] sm:$0xff] %vm311_vm0, %v8200_v8  ;;  %6323 = vmatmul.mubr.msk.f32.gmra.mrb[14].mxu1 %vm1359_vm5, %v3972_v7  ;;  %4768 = vrot.lane.b32.xlu0 %v4702_v23, %s6629_s30  ;;  %v4897_v23 = vld [vmem:[#allocation3 + $0x6a] sm:$0xff] }
 0x3d8   : > { %3463 = vst.msk [vmem:[#allocation4 + $0xa8] sm:$0xff] %vm807_vm4, %v3389_v2  ;;  %4770 = vrot.lane.b32.xlu1 %v4703_v33, %s6629_s30 }
 0x3d9   : > { %v3387_v4 = vpop.permute.xlu0 %3386  ;;  %v8719_v49 = vld [vmem:[#allocation4 + $0x90] sm:$0xff] }
 0x3da   : > { %v3195_v58 = vpop.permute.xlu1 %3194  ;;  %3559 = vst.msk [vmem:[#allocation4 + $0x90] sm:$0xff] %vm311_vm0, %v8216_v30 }
 0x3db   : > { %3270 = vst.msk [vmem:[#allocation4 + $0xa0] sm:$0xff] %vm614_vm3, %v3195_v58  ;;  %4960 = vrot.lane.b32.xlu0 %v8238_v1, %s6630_s8 }
 0x3dc   : > { %3462 = vst.msk [vmem:[#allocation4 + $0xa0] sm:$0xff] %vm807_vm4, %v3387_v4  ;;  %4962 = vrot.lane.b32.xlu1 %v4895_v0, %s6630_s8 }
 0x3dd   : > { %v3862_v8 = vpop.permute.xlu0 %3861 }
 0x3de   : > { %3941 = vst.msk [vmem:[#allocation4 + $0x80] sm:$0xff] %vm807_vm4, %v3862_v8  ;;  %v3199_v2 = vpop.permute.xlu1 %3198 }
 0x3df   : > { %v8729_v7 = vld [vmem:[#allocation4 + $0xa8] sm:$0xff]  ;;  %3272 = vst.msk [vmem:[#allocation4 + $0xb0] sm:$0xff] %vm614_vm3, %v3199_v2  ;;  %4772 = vrot.lane.b32.xlu0 %v8271_v62, %s6629_s30 }
 0x3e0   : > { %3562 = vst.msk [vmem:[#allocation4 + $0xa8] sm:$0xff] %vm311_vm0, %v8232_v54  ;;  %4774 = vrot.lane.b32.xlu1 %v4705_v12, %s6629_s30  ;;  %v4898_v12 = vld [vmem:[#allocation3 + $0x7a] sm:$0xff] }
 0x3e1   : > { %v3864_v1 = vpop.permute.xlu0 %3863 }
 0x3e2   : > { %3942 = vst.msk [vmem:[#allocation4 + $0x88] sm:$0xff] %vm807_vm4, %v3864_v1  ;;  %v3201_v36 = vpop.permute.xlu1 %3200 }
 0x3e3   : > { %3273 = vst.msk [vmem:[#allocation4 + $0xb8] sm:$0xff] %vm614_vm3, %v3201_v36  ;;  %4964 = vrot.lane.b32.xlu0 %v8297_v21, %s6630_s8  ;;  %v8741_v33 = vld [vmem:[#allocation4 + $0xa0] sm:$0xff]  ;;  %v4707_v21 = vld [vmem:[#allocation3 + $0x81] sm:$0xff] }
 0x3e4   : > { %4966 = vrot.lane.b32.xlu1 %v4897_v23, %s6630_s8  ;;  %3561 = vst.msk [vmem:[#allocation4 + $0xa0] sm:$0xff] %vm311_vm0, %v8226_v45  ;;  %v4708_v23 = vld [vmem:[#allocation3 + $0x91] sm:$0xff] }
 0x3e5   : > { %v3391_v62 = vpop.permute.xlu0 %3390  ;;  %v3973_v4 = vld [vmem:[#allocation4 + $0x80] sm:$0xff] }
 0x3e6   : > { %3464 = vst.msk [vmem:[#allocation4 + $0xb0] sm:$0xff] %vm807_vm4, %v3391_v62  ;;  %v3393_v58 = vpop.permute.xlu1 %3392  ;;  %6325 = vmatprep.mubr.msk.f32.mxu1 %vm1359_vm5, %v3973_v4 }
 0x3e7   : > { %4684 = vst.msk [vmem:[#allocation4 + $0x80] sm:$0xff] %vm311_vm0, %v8216_v30  ;;  %4776 = vrot.lane.b32.xlu0 %v8305_v11, %s6629_s30  ;;  %v4899_v30 = vld [vmem:[#allocation3 + $0x82] sm:$0xff] }
 0x3e8   : > { %3465 = vst.msk [vmem:[#allocation4 + $0xb8] sm:$0xff] %vm807_vm4, %v3393_v58  ;;  %4778 = vrot.lane.b32.xlu1 %v4707_v21, %s6629_s30  ;;  %v4900_v21 = vld [vmem:[#allocation3 + $0x92] sm:$0xff] }
 0x3e9   : > { %v3674_v0 = vpop.permute.xlu0 %3673  ;;  %v3974_v8 = vld [vmem:[#allocation4 + $0x88] sm:$0xff] }
 0x3ea   : > { %3751 = vst.msk [vmem:[#allocation4 + $0x90] sm:$0xff] %vm614_vm3, %v3674_v0  ;;  %v3676_v2 = vpop.permute.xlu1 %3675  ;;  %6326 = vmatmul.mubr.msk.f32.gmra.mrb[16].mxu1 %vm1359_vm5, %v3974_v8  ;;  %v4901_v0 = vld [vmem:[#allocation3 + $0x9a] sm:$0xff] }
 0x3eb   : > { %4685 = vst.msk [vmem:[#allocation4 + $0x88] sm:$0xff] %vm311_vm0, %v8210_v5  ;;  %4968 = vrot.lane.b32.xlu0 %v4898_v12, %s6630_s8  ;;  %v4709_v5 = vld [vmem:[#allocation3 + $0x99] sm:$0xff] }
 0x3ec   : > { %3752 = vst.msk [vmem:[#allocation4 + $0x98] sm:$0xff] %vm614_vm3, %v3676_v2  ;;  %4970 = vrot.lane.b32.xlu1 %v4899_v30, %s6630_s8  ;;  %v4710_v30 = vld [vmem:[#allocation3 + $0xa9] sm:$0xff] }
 0x3ed   : > { %v3866_v11 = vpop.permute.xlu0 %3865  ;;  %v8761_v1 = vld [vmem:[#allocation4 + $0xb0] sm:$0xff] }
 0x3ee   : > { %3943 = vst.msk [vmem:[#allocation4 + $0x90] sm:$0xff] %vm807_vm4, %v3866_v11  ;;  %v3203_v36 = vpop.permute.xlu1 %3202  ;;  %v4711_v11 = vld [vmem:[#allocation3 + $0xb1] sm:$0xff] }
 0x3ef   : > { %3563 = vst.msk [vmem:[#allocation4 + $0xb0] sm:$0xff] %vm311_vm0, %v8245_v22  ;;  %v8766_v62 = vld [vmem:[#allocation4 + $0xb8] sm:$0xff]  ;;  %4780 = vrot.lane.b32.xlu0 %v4708_v23, %s6629_s30 }
 0x3f0   : > { %3274 = vst.msk [vmem:[#allocation4 + $0xc0] sm:$0xff] %vm614_vm3, %v3203_v36  ;;  %4782 = vrot.lane.b32.xlu1 %v4709_v5, %s6629_s30 }
 0x3f1   : > { %3564 = vst.msk [vmem:[#allocation4 + $0xb8] sm:$0xff] %vm311_vm0, %v8251_v44  ;;  %v3868_v4 = vpop.permute.xlu0 %3867 }
 0x3f2   : > { %3944 = vst.msk [vmem:[#allocation4 + $0x98] sm:$0xff] %vm807_vm4, %v3868_v4  ;;  %v3205_v58 = vpop.permute.xlu1 %3204  ;;  %v4902_v4 = vld [vmem:[#allocation3 + $0xaa] sm:$0xff] }
 0x3f3   : > { %3275 = vst.msk [vmem:[#allocation4 + $0xc8] sm:$0xff] %vm614_vm3, %v3205_v58  ;;  %4972 = vrot.lane.b32.xlu0 %v4900_v21, %s6630_s8 }
 0x3f4   : > { %4974 = vrot.lane.b32.xlu1 %v4901_v0, %s6630_s8 }
 0x3f5   : > { %v3395_v8 = vpop.permute.xlu0 %3394  ;;  %v3975_v2 = vld [vmem:[#allocation4 + $0x90] sm:$0xff] }
 0x3f6   : > { %3466 = vst.msk [vmem:[#allocation4 + $0xc0] sm:$0xff] %vm807_vm4, %v3395_v8  ;;  %v3397_v12 = vpop.permute.xlu1 %3396  ;;  %6328 = vmatprep.mubr.msk.f32.mxu1 %vm1359_vm5, %v3975_v2  ;;  %v4712_v8 = vld [vmem:[#allocation3 + $0xc1] sm:$0xff] }
 0x3f7   : > { %4686 = vst.msk [vmem:[#allocation4 + $0x90] sm:$0xff] %vm311_vm0, %v8226_v45  ;;  %4784 = vrot.lane.b32.xlu0 %v4710_v30, %s6629_s30  ;;  %v4903_v45 = vld [vmem:[#allocation3 + $0xb2] sm:$0xff] }
 0x3f8   : > { %3467 = vst.msk [vmem:[#allocation4 + $0xc8] sm:$0xff] %vm807_vm4, %v3397_v12  ;;  %4786 = vrot.lane.b32.xlu1 %v4711_v11, %s6629_s30  ;;  %v4904_v11 = vld [vmem:[#allocation3 + $0xc2] sm:$0xff] }
 0x3f9   : > { %v3678_v36 = vpop.permute.xlu0 %3677  ;;  %v3976_v23 = vld [vmem:[#allocation4 + $0x98] sm:$0xff] }
 0x3fa   : > { %3753 = vst.msk [vmem:[#allocation4 + $0xa0] sm:$0xff] %vm614_vm3, %v3678_v36  ;;  %v3680_v5 = vpop.permute.xlu1 %3679  ;;  %6329 = vmatmul.mubr.msk.f32.gmra.mrb[18].mxu1 %vm1359_vm5, %v3976_v23  ;;  %v4905_v36 = vld [vmem:[#allocation3 + $0xca] sm:$0xff] }
 0x3fb   : > { %4687 = vst.msk [vmem:[#allocation4 + $0x98] sm:$0xff] %vm311_vm0, %v8232_v54  ;;  %4976 = vrot.lane.b32.xlu0 %v4902_v4, %s6630_s8  ;;  %v4713_v54 = vld [vmem:[#allocation3 + $0xc9] sm:$0xff] }
 0x3fc   : > { %3754 = vst.msk [vmem:[#allocation4 + $0xa8] sm:$0xff] %vm614_vm3, %v3680_v5  ;;  %4978 = vrot.lane.b32.xlu1 %v4903_v45, %s6630_s8  ;;  %v4715_v45 = vld [vmem:[#allocation3 + $0xe1] sm:$0xff] }
 0x3fd   : > { %v3870_v58 = vpop.permute.xlu0 %3869  ;;  %v8791_v21 = vld [vmem:[#allocation4 + $0xc0] sm:$0xff] }
 0x3fe   : > { %3945 = vst.msk [vmem:[#allocation4 + $0xa0] sm:$0xff] %vm807_vm4, %v3870_v58  ;;  %v3207_v0 = vpop.permute.xlu1 %3206 }
 0x3ff   : > { %3565 = vst.msk [vmem:[#allocation4 + $0xc0] sm:$0xff] %vm311_vm0, %v8261_v25  ;;  %v8796_v2 = vld [vmem:[#allocation4 + $0xc8] sm:$0xff]  ;;  %4788 = vrot.lane.b32.xlu0 %v4712_v8, %s6629_s30 }
 0x400   : > { %3276 = vst.msk [vmem:[#allocation4 + $0xd0] sm:$0xff] %vm614_vm3, %v3207_v0  ;;  %4790 = vrot.lane.b32.xlu1 %v4713_v54, %s6629_s30 }
 0x401   : > { %3566 = vst.msk [vmem:[#allocation4 + $0xc8] sm:$0xff] %vm311_vm0, %v8267_v18  ;;  %v3872_v12 = vpop.permute.xlu0 %3871 }
 0x402   : > { %3946 = vst.msk [vmem:[#allocation4 + $0xa8] sm:$0xff] %vm807_vm4, %v3872_v12  ;;  %v3209_v30 = vpop.permute.xlu1 %3208 }
 0x403   : > { %3277 = vst.msk [vmem:[#allocation4 + $0xd8] sm:$0xff] %vm614_vm3, %v3209_v30  ;;  %4980 = vrot.lane.b32.xlu0 %v4904_v11, %s6630_s8 }
 0x404   : > { %4982 = vrot.lane.b32.xlu1 %v4905_v36, %s6630_s8 }
 0x405   : > { %v3399_v23 = vpop.permute.xlu0 %3398  ;;  %v3977_v5 = vld [vmem:[#allocation4 + $0xa0] sm:$0xff] }
 0x406   : > { %3468 = vst.msk [vmem:[#allocation4 + $0xd0] sm:$0xff] %vm807_vm4, %v3399_v23  ;;  %v3401_v4 = vpop.permute.xlu1 %3400  ;;  %6331 = vmatprep.mubr.msk.f32.mxu1 %vm1359_vm5, %v3977_v5 }
 0x407   : > { %4688 = vst.msk [vmem:[#allocation4 + $0xa0] sm:$0xff] %vm311_vm0, %v8245_v22  ;;  %4792 = vrot.lane.b32.xlu0 %v8361_v55, %s6629_s30  ;;  %v4907_v22 = vld [vmem:[#allocation3 + $0xe2] sm:$0xff] }
 0x408   : > { %3469 = vst.msk [vmem:[#allocation4 + $0xd8] sm:$0xff] %vm807_vm4, %v3401_v4  ;;  %4794 = vrot.lane.b32.xlu1 %v4715_v45, %s6629_s30 }
 0x409   : > { %v3682_v58 = vpop.permute.xlu0 %3681  ;;  %v3978_v0 = vld [vmem:[#allocation4 + $0xa8] sm:$0xff] }
 0x40a   : > { %3755 = vst.msk [vmem:[#allocation4 + $0xb0] sm:$0xff] %vm614_vm3, %v3682_v58  ;;  %v3684_v8 = vpop.permute.xlu1 %3683  ;;  %6332 = vmatmul.mubr.msk.f32.gmra.mrb[20].mxu1 %vm1359_vm5, %v3978_v0 }
 0x40b   : > { %4689 = vst.msk [vmem:[#allocation4 + $0xa8] sm:$0xff] %vm311_vm0, %v8251_v44  ;;  %4984 = vrot.lane.b32.xlu0 %v8370_v56, %s6630_s8  ;;  %v4717_v44 = vld [vmem:[#allocation3 + $0xf9] sm:$0xff] }
 0x40c   : > { %3756 = vst.msk [vmem:[#allocation4 + $0xb8] sm:$0xff] %vm614_vm3, %v3684_v8  ;;  %4986 = vrot.lane.b32.xlu1 %v4907_v22, %s6630_s8  ;;  %v3540_v8 = vld [vmem:[#allocation3 + $0x188] sm:$0xff] }
 0x40d   : > { %v3874_v55 = vpop.permute.xlu0 %3873  ;;  %v8823_v54 = vld [vmem:[#allocation4 + $0xd0] sm:$0xff] }
 0x40e   : > { %3947 = vst.msk [vmem:[#allocation4 + $0xb0] sm:$0xff] %vm807_vm4, %v3874_v55  ;;  %v3211_v12 = vpop.permute.xlu1 %3210 }
 0x40f   : > { %3567 = vst.msk [vmem:[#allocation4 + $0xd0] sm:$0xff] %vm311_vm0, %v8278_v37  ;;  %v8828_v30 = vld [vmem:[#allocation4 + $0xd8] sm:$0xff]  ;;  %4796 = vrot.lane.b32.xlu0 %v8400_v59, %s6629_s30 }
 0x410   : > { %3278 = vst.msk [vmem:[#allocation4 + $0xe0] sm:$0xff] %vm614_vm3, %v3211_v12  ;;  %4798 = vrot.lane.b32.xlu1 %v4717_v44, %s6629_s30  ;;  %v4730_v12 = vld [vmem:[#allocation3 + $0x199] sm:$0xff] }
 0x411   : > { %3568 = vst.msk [vmem:[#allocation4 + $0xd8] sm:$0xff] %vm311_vm0, %v8283_v29  ;;  %v3876_v56 = vpop.permute.xlu0 %3875 }
 0x412   : > { %3948 = vst.msk [vmem:[#allocation4 + $0xb8] sm:$0xff] %vm807_vm4, %v3876_v56  ;;  %v3213_v11 = vpop.permute.xlu1 %3212 }
 0x413   : > { %3279 = vst.msk [vmem:[#allocation4 + $0xe8] sm:$0xff] %vm614_vm3, %v3213_v11  ;;  %4988 = vrot.lane.b32.xlu0 %v8396_v32, %s6630_s8  ;;  %v4731_v11 = vld [vmem:[#allocation3 + $0x1a1] sm:$0xff] }
 0x414   : > { %4990 = vrot.lane.b32.xlu1 %v8390_v52, %s6630_s8 }
 0x415   : > { %v3403_v36 = vpop.permute.xlu0 %3402  ;;  %v3979_v23 = vld [vmem:[#allocation4 + $0xb0] sm:$0xff] }
 0x416   : > { %3470 = vst.msk [vmem:[#allocation4 + $0xe0] sm:$0xff] %vm807_vm4, %v3403_v36  ;;  %v3405_v59 = vpop.permute.xlu1 %3404  ;;  %6334 = vmatprep.mubr.msk.f32.mxu1 %vm1359_vm5, %v3979_v23  ;;  %v4923_v23 = vld [vmem:[#allocation3 + $0x1a2] sm:$0xff] }
 0x417   : > { %4690 = vst.msk [vmem:[#allocation4 + $0xb0] sm:$0xff] %vm311_vm0, %v8261_v25  ;;  %4800 = vrot.lane.b32.xlu0 %v8409_v3, %s6629_s30 }
 0x418   : > { %3471 = vst.msk [vmem:[#allocation4 + $0xe8] sm:$0xff] %vm807_vm4, %v3405_v59  ;;  %4802 = vrot.lane.b32.xlu1 %v8425_v10, %s6629_s30 }
 0x419   : > { %v3686_v32 = vpop.permute.xlu0 %3685  ;;  %v3980_v52 = vld [vmem:[#allocation4 + $0xb8] sm:$0xff] }
 0x41a   : > { %3757 = vst.msk [vmem:[#allocation4 + $0xc0] sm:$0xff] %vm614_vm3, %v3686_v32  ;;  %v3688_v5 = vpop.permute.xlu1 %3687  ;;  %6335 = vmatmul.mubr.msk.f32.gmra.mrb[22].mxu1 %vm1359_vm5, %v3980_v52  ;;  %v5884_v32 = vld [vmem:[%s9304_s4 + $0x40] sm:$0xff] }
 0x41b   : > { %4691 = vst.msk [vmem:[#allocation4 + $0xb8] sm:$0xff] %vm311_vm0, %v8267_v18  ;;  %4992 = vrot.lane.b32.xlu0 %v8431_v16, %s6630_s8 }
 0x41c   : > { %3758 = vst.msk [vmem:[#allocation4 + $0xc8] sm:$0xff] %vm614_vm3, %v3688_v5  ;;  %4994 = vrot.lane.b32.xlu1 %v8435_v19, %s6630_s8 }
 0x41d   : > { %v3878_v25 = vpop.permute.xlu0 %3877  ;;  %v8860_v3 = vld [vmem:[#allocation4 + $0xe0] sm:$0xff] }
 0x41e   : > { %3949 = vst.msk [vmem:[#allocation4 + $0xc0] sm:$0xff] %vm807_vm4, %v3878_v25  ;;  %v3215_v10 = vpop.permute.xlu1 %3214 }
 0x41f   : > { %3569 = vst.msk [vmem:[#allocation4 + $0xe0] sm:$0xff] %vm311_vm0, %v8289_v20  ;;  %v8865_v4 = vld [vmem:[#allocation4 + $0xe8] sm:$0xff]  ;;  %4804 = vrot.lane.b32.xlu0 %v8453_v61, %s6629_s30 }
 0x420   : > { %3280 = vst.msk [vmem:[#allocation4 + $0xf0] sm:$0xff] %vm614_vm3, %v3215_v10  ;;  %4806 = vrot.lane.b32.xlu1 %v8469_v26, %s6629_s30 }
 0x421   : > { %3570 = vst.msk [vmem:[#allocation4 + $0xe8] sm:$0xff] %vm311_vm0, %v8293_v31  ;;  %v3880_v18 = vpop.permute.xlu0 %3879 }
 0x422   : > { %3950 = vst.msk [vmem:[#allocation4 + $0xc8] sm:$0xff] %vm807_vm4, %v3880_v18  ;;  %v3217_v16 = vpop.permute.xlu1 %3216 }
 0x423   : > { %3281 = vst.msk [vmem:[#allocation4 + $0xf8] sm:$0xff] %vm614_vm3, %v3217_v16  ;;  %4996 = vrot.lane.b32.xlu0 %v8475_v42, %s6630_s8 }
 0x424   : > { %4998 = vrot.lane.b32.xlu1 %v8479_v13, %s6630_s8 }
 0x425   : > { %v3407_v19 = vpop.permute.xlu0 %3406  ;;  %v3981_v61 = vld [vmem:[#allocation4 + $0xc0] sm:$0xff] }
 0x426   : > { %3472 = vst.msk [vmem:[#allocation4 + $0xf0] sm:$0xff] %vm807_vm4, %v3407_v19  ;;  %v3409_v45 = vpop.permute.xlu1 %3408  ;;  %6337 = vmatprep.mubr.msk.f32.mxu1 %vm1359_vm5, %v3981_v61  ;;  %v9398_v19 = vld [vmem:[#allocation40_spill] sm:$0xff]  ;;  %v9399_v61 = vld [vmem:[#allocation43_spill] sm:$0xff] }
 0x427   : > { %4692 = vst.msk [vmem:[#allocation4 + $0xc0] sm:$0xff] %vm311_vm0, %v8278_v37  ;;  %4808 = vrot.lane.b32.xlu0 %v8497_v35, %s6629_s30 }
 0x428   : > { %3473 = vst.msk [vmem:[#allocation4 + $0xf8] sm:$0xff] %vm807_vm4, %v3409_v45  ;;  %4810 = vrot.lane.b32.xlu1 %v8519_v17, %s6629_s30  ;;  %v3539_v17 = vld [vmem:[#allocation3 + $0x180] sm:$0xff] }
 0x429   : > { %v3690_v26 = vpop.permute.xlu0 %3689  ;;  %v3982_v42 = vld [vmem:[#allocation4 + $0xc8] sm:$0xff] }
 0x42a   : > { %3759 = vst.msk [vmem:[#allocation4 + $0xd0] sm:$0xff] %vm614_vm3, %v3690_v26  ;;  %v3692_v13 = vpop.permute.xlu1 %3691  ;;  %6338 = vmatmul.mubr.msk.f32.gmra.mrb[24].mxu1 %vm1359_vm5, %v3982_v42  ;;  %v9400_v42 = vld [vmem:[#allocation42_spill] sm:$0xff] }
 0x42b   : > { %4693 = vst.msk [vmem:[#allocation4 + $0xc8] sm:$0xff] %vm311_vm0, %v8283_v29  ;;  %5000 = vrot.lane.b32.xlu0 %v8525_v47, %s6630_s8 }
 0x42c   : > { %3760 = vst.msk [vmem:[#allocation4 + $0xd8] sm:$0xff] %vm614_vm3, %v3692_v13  ;;  %5002 = vrot.lane.b32.xlu1 %v8529_v34, %s6630_s8  ;;  %v9401_v13 = vld [vmem:[#allocation45_spill] sm:$0xff] }
 0x42d   : > { %v3882_v37 = vpop.permute.xlu0 %3881  ;;  %v8898_v35 = vld [vmem:[#allocation4 + $0xf0] sm:$0xff] }
 0x42e   : > { %3951 = vst.msk [vmem:[#allocation4 + $0xd0] sm:$0xff] %vm807_vm4, %v3882_v37  ;;  %v3884_v58 = vpop.permute.xlu1 %3883 }
 0x42f   : > { %v8901_v0 = vld [vmem:[#allocation4 + $0xf8] sm:$0xff]  ;;  %3571 = vst.msk [vmem:[#allocation4 + $0xf0] sm:$0xff] %vm311_vm0, %v3539_v17  ;;  %4812 = vrot.lane.b32.xlu0 %v8547_v14, %s6629_s30 }
 0x430   : > { %3952 = vst.msk [vmem:[#allocation4 + $0xd8] sm:$0xff] %vm807_vm4, %v3884_v58  ;;  %4814 = vrot.lane.b32.xlu1 %v8563_v15, %s6629_s30  ;;  %v9402_v58 = vld [vmem:[#allocation44_spill] sm:$0xff] }
 0x431   : > { %3572 = vst.msk [vmem:[#allocation4 + $0xf8] sm:$0xff] %vm311_vm0, %v3540_v8  ;;  %v3694_v29 = vpop.permute.xlu0 %3693 }
 0x432   : > { %3761 = vst.msk [vmem:[#allocation4 + $0xe0] sm:$0xff] %vm614_vm3, %v3694_v29  ;;  %v3696_v47 = vpop.permute.xlu1 %3695 }
 0x433   : > { %3762 = vst.msk [vmem:[#allocation4 + $0xe8] sm:$0xff] %vm614_vm3, %v3696_v47  ;;  %5004 = vrot.lane.b32.xlu0 %v8569_v28, %s6630_s8 }
 0x434   : > { %5006 = vrot.lane.b32.xlu1 %v8573_v43, %s6630_s8 }
 0x435   : > { %v3886_v34 = vpop.permute.xlu0 %3885  ;;  %v3983_v22 = vld [vmem:[#allocation4 + $0xd0] sm:$0xff] }
 0x436   : > { %3953 = vst.msk [vmem:[#allocation4 + $0xe0] sm:$0xff] %vm807_vm4, %v3886_v34  ;;  %v3888_v14 = vpop.permute.xlu1 %3887  ;;  %6340 = vmatprep.mubr.msk.f32.mxu1 %vm1359_vm5, %v3983_v22  ;;  %v9404_v34 = vld [vmem:[#allocation46_spill] sm:$0xff] }
 0x437   : > { %v3984_v15 = vld [vmem:[#allocation4 + $0xd8] sm:$0xff]  ;;  %4694 = vst.msk [vmem:[#allocation4 + $0xd0] sm:$0xff] %vm311_vm0, %v8289_v20  ;;  %4816 = vrot.lane.b32.xlu0 %v8591_v38, %s6629_s30 }
 0x438   : > { %3954 = vst.msk [vmem:[#allocation4 + $0xe8] sm:$0xff] %vm807_vm4, %v3888_v14  ;;  %6341 = vmatmul.mubr.msk.f32.gmra.mrb[26].mxu1 %vm1359_vm5, %v3984_v15  ;;  %4818 = vrot.lane.b32.xlu1 %v8610_v63, %s6629_s30  ;;  %v9405_v15 = vld [vmem:[#allocation48_spill] sm:$0xff] }
 0x439   : > { %4695 = vst.msk [vmem:[#allocation4 + $0xd8] sm:$0xff] %vm311_vm0, %v8293_v31  ;;  %v3698_v28 = vpop.permute.xlu0 %3697 }
 0x43a   : > { %v3700_v43 = vpop.permute.xlu1 %3699  ;;  %3763 = vst.msk [vmem:[#allocation4 + $0xf0] sm:$0xff] %vm614_vm3, %v3698_v28 }
 0x43b   : > { %3764 = vst.msk [vmem:[#allocation4 + $0xf8] sm:$0xff] %vm614_vm3, %v3700_v43  ;;  %5008 = vrot.lane.b32.xlu0 %v8616_v6, %s6630_s8 }
 0x43c   : > { %5010 = vrot.lane.b32.xlu1 %v8620_v57, %s6630_s8  ;;  %v4666_v57 = vld [vmem:[#allocation3 + $0x198] sm:$0xff] }
 0x43d   : > { %v3890_v20 = vpop.permute.xlu0 %3889  ;;  %v3985_v38 = vld [vmem:[#allocation4 + $0xe0] sm:$0xff] }
 0x43e   : > { %v3892_v55 = vpop.permute.xlu1 %3891  ;;  %3955 = vst.msk [vmem:[#allocation4 + $0xf0] sm:$0xff] %vm807_vm4, %v3890_v20  ;;  %6343 = vmatprep.mubr.msk.f32.mxu1 %vm1359_vm5, %v3985_v38 }
 0x43f   : > { %v3986_v31 = vld [vmem:[#allocation4 + $0xe8] sm:$0xff]  ;;  %4696 = vst.msk [vmem:[#allocation4 + $0xe0] sm:$0xff] %vm311_vm0, %v3539_v17  ;;  %4820 = vrot.lane.b32.xlu0 %v8663_v50, %s6629_s30  ;;  %v4667_v50 = vld [vmem:[#allocation3 + $0x1a0] sm:$0xff] }
 0x440   : > { %3956 = vst.msk [vmem:[#allocation4 + $0xf8] sm:$0xff] %vm807_vm4, %v3892_v55  ;;  %6344 = vmatmul.mubr.msk.f32.gmra.mrb[28].mxu1 %vm1359_vm5, %v3986_v31  ;;  %4822 = vrot.lane.b32.xlu1 %v8668_v24, %s6629_s30 }
 0x441   : > { %4697 = vst.msk [vmem:[#allocation4 + $0xe8] sm:$0xff] %vm311_vm0, %v3540_v8  ;;  %v4765_v63 = vpop.permute.xlu0 %4764  ;;  %v9403_v8 = vld [vmem:[#allocation47_spill] sm:$0xff] }
 0x442   : > { %v4767_v6 = vpop.permute.xlu1 %4766  ;;  %4860 = vst.msk [vmem:[#allocation4] sm:$0xff] %vm614_vm3, %v4765_v63 }
 0x443   : > { %4861 = vst.msk [vmem:[#allocation4 + $0x8] sm:$0xff] %vm614_vm3, %v4767_v6  ;;  %5012 = vrot.lane.b32.xlu0 %v8676_v48, %s6630_s8  ;;  %v4922_v48 = vld [vmem:[#allocation3 + $0x19a] sm:$0xff] }
 0x444   : > { %5014 = vrot.lane.b32.xlu1 %v8680_v46, %s6630_s8 }
 0x445   : > { %v4957_v44 = vpop.permute.xlu0 %4956  ;;  %v3987_v56 = vld [vmem:[#allocation4 + $0xf0] sm:$0xff] }
 0x446   : > { %v4959_v36 = vpop.permute.xlu1 %4958  ;;  %5052 = vst.msk [vmem:[#allocation4] sm:$0xff] %vm807_vm4, %v4957_v44  ;;  %6346 = vmatprep.mubr.msk.f32.mxu1 %vm1359_vm5, %v3987_v56 }
 0x447   : > { %v3988_v24 = vld [vmem:[#allocation4 + $0xf8] sm:$0xff]  ;;  %4698 = vst.msk [vmem:[#allocation4 + $0xf0] sm:$0xff] %vm311_vm0, %v4666_v57  ;;  %4824 = vrot.lane.b32.xlu0 %v4730_v12, %s6629_s30 }
 0x448   : > { %5053 = vst.msk [vmem:[#allocation4 + $0x8] sm:$0xff] %vm807_vm4, %v4959_v36  ;;  %6347 = vmatmul.mubr.msk.f32.gmra.mrb[30].mxu1 %vm1359_vm5, %v3988_v24  ;;  %4826 = vrot.lane.b32.xlu1 %v4731_v11, %s6629_s30 }
 0x449   : > { %4699 = vst.msk [vmem:[#allocation4 + $0xf8] sm:$0xff] %vm311_vm0, %v4667_v50  ;;  %6355 = vmatprep.mubr.msk.f32.mxu1 %vm1359_vm5, %v8055_v51  ;;  %v4769_v46 = vpop.permute.xlu0 %4768 }
 0x44a   : > { %v4771_v59 = vpop.permute.xlu1 %4770  ;;  %4862 = vst.msk [vmem:[#allocation4 + $0x10] sm:$0xff] %vm614_vm3, %v4769_v46 }
 0x44b   : > { %4863 = vst.msk [vmem:[#allocation4 + $0x18] sm:$0xff] %vm614_vm3, %v4771_v59  ;;  %5016 = vrot.lane.b32.xlu0 %v4922_v48, %s6630_s8 }
 0x44c   : > { %6356 = vmatmul.mubr.msk.f32.vlgmr.msra.gmra.mrb[0].mxu1 %vm1359_vm5, %v8052_v9  ;;  %5018 = vrot.lane.b32.xlu1 %v4923_v23, %s6630_s8 }
 0x44d   : > { %6480 = vmatpush3.bf16.msra.mxu1 %v8692_v60  ;;  %6358 = vmatprep.mubr.msk.f32.mxu1 %vm1359_vm5, %v8357_v41  ;;  %v4961_v51 = vpop.permute.xlu0 %4960 }
 0x44e   : > { %6407 = vmatprep.subr.mxu1 %v5884_v32  ;;  %v4963_v52 = vpop.permute.xlu1 %4962  ;;  %5054 = vst.msk [vmem:[#allocation4 + $0x10] sm:$0xff] %vm807_vm4, %v4961_v51 }
 0x44f   : > { %5055 = vst.msk [vmem:[#allocation4 + $0x18] sm:$0xff] %vm807_vm4, %v4963_v52 }
 0x450   : > { %6359 = vmatmul.mubr.msk.f32.gmra.mrb[2].mxu1 %vm1359_vm5, %v8349_v39  ;;  %v9394_v39 = vld [vmem:[#allocation37_spill] sm:$0xff] }
 0x451   : > { %6361 = vmatprep.mubr.msk.f32.mxu1 %vm1359_vm5, %v8413_v27  ;;  %6408 = vmatpush3.msra.mxu1 %v5884_v32  ;;  %v4773_v9 = vpop.permute.xlu0 %4772  ;;  %v9395_v27 = vld [vmem:[#allocation39_spill] sm:$0xff] }
 0x452   : > { %v4775_v60 = vpop.permute.xlu1 %4774  ;;  %4864 = vst.msk [vmem:[#allocation4 + $0x20] sm:$0xff] %vm614_vm3, %v4773_v9 }
 0x453   : > { %4865 = vst.msk [vmem:[#allocation4 + $0x28] sm:$0xff] %vm614_vm3, %v4775_v60 }
 0x454   : > { %6362 = vmatmul.mubr.msk.f32.gmra.mrb[4].mxu1 %vm1359_vm5, %v8379_v40  ;;  %v9396_v40 = vld [vmem:[#allocation38_spill] sm:$0xff] }
 0x455   : > { %6364 = vmatprep.mubr.msk.f32.mxu1 %vm1359_vm5, %v8457_v53  ;;  %v4965_v41 = vpop.permute.xlu0 %4964  ;;  %v9397_v53 = vld [vmem:[#allocation41_spill] sm:$0xff] }
 0x456   : > { %v4967_v5 = vpop.permute.xlu1 %4966  ;;  %5056 = vst.msk [vmem:[#allocation4 + $0x20] sm:$0xff] %vm807_vm4, %v4965_v41 }
 0x457   : > { %5057 = vst.msk [vmem:[#allocation4 + $0x28] sm:$0xff] %vm807_vm4, %v4967_v5 }
 0x458   : > { %6365 = vmatmul.mubr.msk.f32.gmra.mrb[6].mxu1 %vm1359_vm5, %v9394_v39 }
 0x459   : > { %6367 = vmatprep.mubr.msk.f32.mxu1 %vm1359_vm5, %v9395_v27  ;;  %v4777_v25 = vpop.permute.xlu0 %4776 }
 0x45a   : > { %v4779_v10 = vpop.permute.xlu1 %4778  ;;  %4866 = vst.msk [vmem:[#allocation4 + $0x30] sm:$0xff] %vm614_vm3, %v4777_v25 }
 0x45b   : > { %4867 = vst.msk [vmem:[#allocation4 + $0x38] sm:$0xff] %vm614_vm3, %v4779_v10 }
 0x45c   : > { %6368 = vmatmul.mubr.msk.f32.gmra.mrb[8].mxu1 %vm1359_vm5, %v9396_v40 }
 0x45d   : > { %6370 = vmatprep.mubr.msk.f32.mxu1 %vm1359_vm5, %v9397_v53  ;;  %v4969_v18 = vpop.permute.xlu0 %4968  ;;  %v5088_v6 = vld [vmem:[#allocation4 + $0x20] sm:$0xff] }
 0x45e   : > { %v4971_v16 = vpop.permute.xlu1 %4970  ;;  %5058 = vst.msk [vmem:[#allocation4 + $0x30] sm:$0xff] %vm807_vm4, %v4969_v18  ;;  %v5089_v50 = vld [vmem:[#allocation4 + $0x28] sm:$0xff] }
 0x45f   : > { %5059 = vst.msk [vmem:[#allocation4 + $0x38] sm:$0xff] %vm807_vm4, %v4971_v16 }
 0x460   : > { %6371 = vmatmul.mubr.msk.f32.gmra.mrb[10].mxu1 %vm1359_vm5, %v9398_v19 }
 0x461   : > { %6373 = vmatprep.mubr.msk.f32.mxu1 %vm1359_vm5, %v9399_v61  ;;  %v4781_v45 = vpop.permute.xlu0 %4780 }
 0x462   : > { %v4783_v26 = vpop.permute.xlu1 %4782  ;;  %4868 = vst.msk [vmem:[#allocation4 + $0x40] sm:$0xff] %vm614_vm3, %v4781_v45 }
 0x463   : > { %4869 = vst.msk [vmem:[#allocation4 + $0x48] sm:$0xff] %vm614_vm3, %v4783_v26 }
 0x464   : > { %6374 = vmatmul.mubr.msk.f32.gmra.mrb[12].mxu1 %vm1359_vm5, %v9400_v42 }
 0x465   : > { %6376 = vmatprep.mubr.msk.f32.mxu1 %vm1359_vm5, %v9401_v13  ;;  %v4973_v37 = vpop.permute.xlu0 %4972  ;;  %v5090_v44 = vld [vmem:[#allocation4 + $0x30] sm:$0xff] }
 0x466   : > { %v4975_v17 = vpop.permute.xlu1 %4974  ;;  %5060 = vst.msk [vmem:[#allocation4 + $0x40] sm:$0xff] %vm807_vm4, %v4973_v37  ;;  %v5091_v36 = vld [vmem:[#allocation4 + $0x38] sm:$0xff] }
 0x467   : > { %5061 = vst.msk [vmem:[#allocation4 + $0x48] sm:$0xff] %vm807_vm4, %v4975_v17 }
 0x468   : > { %6377 = vmatmul.mubr.msk.f32.gmra.mrb[14].mxu1 %vm1359_vm5, %v9402_v58 }
 0x469   : > { %6379 = vmatprep.mubr.msk.f32.mxu1 %vm1359_vm5, %v9403_v8  ;;  %v4785_v29 = vpop.permute.xlu0 %4784 }
 0x46a   : > { %v4787_v47 = vpop.permute.xlu1 %4786  ;;  %4870 = vst.msk [vmem:[#allocation4 + $0x50] sm:$0xff] %vm614_vm3, %v4785_v29 }
 0x46b   : > { %4871 = vst.msk [vmem:[#allocation4 + $0x58] sm:$0xff] %vm614_vm3, %v4787_v47 }
 0x46c   : > { %6380 = vmatmul.mubr.msk.f32.gmra.mrb[16].mxu1 %vm1359_vm5, %v9404_v34 }
 0x46d   : > { %6382 = vmatprep.mubr.msk.f32.mxu1 %vm1359_vm5, %v8719_v49  ;;  %v4977_v22 = vpop.permute.xlu0 %4976  ;;  %v5092_v24 = vld [vmem:[#allocation4 + $0x40] sm:$0xff] }
 0x46e   : > { %v4979_v14 = vpop.permute.xlu1 %4978  ;;  %5062 = vst.msk [vmem:[#allocation4 + $0x50] sm:$0xff] %vm807_vm4, %v4977_v22  ;;  %v5093_v23 = vld [vmem:[#allocation4 + $0x48] sm:$0xff] }
 0x46f   : > { %5063 = vst.msk [vmem:[#allocation4 + $0x58] sm:$0xff] %vm807_vm4, %v4979_v14 }
 0x470   : > { %6383 = vmatmul.mubr.msk.f32.gmra.mrb[18].mxu1 %vm1359_vm5, %v9405_v15 }
 0x471   : > { %6385 = vmatprep.mubr.msk.f32.mxu1 %vm1359_vm5, %v8741_v33  ;;  %v4789_v28 = vpop.permute.xlu0 %4788 }
 0x472   : > { %v4791_v43 = vpop.permute.xlu1 %4790  ;;  %4872 = vst.msk [vmem:[#allocation4 + $0x60] sm:$0xff] %vm614_vm3, %v4789_v28 }
 0x473   : > { %4873 = vst.msk [vmem:[#allocation4 + $0x68] sm:$0xff] %vm614_vm3, %v4791_v43 }
 0x474   : > { %6386 = vmatmul.mubr.msk.f32.gmra.mrb[20].mxu1 %vm1359_vm5, %v8729_v7 }
 0x475   : > { %6388 = vmatprep.mubr.msk.f32.mxu1 %vm1359_vm5, %v8761_v1  ;;  %v4981_v49 = vpop.permute.xlu0 %4980  ;;  %v5094_v59 = vld [vmem:[#allocation4 + $0x50] sm:$0xff] }
 0x476   : > { %v4983_v20 = vpop.permute.xlu1 %4982  ;;  %5064 = vst.msk [vmem:[#allocation4 + $0x60] sm:$0xff] %vm807_vm4, %v4981_v49  ;;  %v5095_v52 = vld [vmem:[#allocation4 + $0x58] sm:$0xff] }
 0x477   : > { %5065 = vst.msk [vmem:[#allocation4 + $0x68] sm:$0xff] %vm807_vm4, %v4983_v20 }
 0x478   : > { %6389 = vmatmul.mubr.msk.f32.gmra.mrb[22].mxu1 %vm1359_vm5, %v8766_v62 }
 0x479   : > { %6391 = vmatprep.mubr.msk.f32.mxu1 %vm1359_vm5, %v8791_v21  ;;  %v4793_v33 = vpop.permute.xlu0 %4792 }
 0x47a   : > { %v4795_v38 = vpop.permute.xlu1 %4794  ;;  %4874 = vst.msk [vmem:[#allocation4 + $0x70] sm:$0xff] %vm614_vm3, %v4793_v33 }
 0x47b   : > { %4875 = vst.msk [vmem:[#allocation4 + $0x78] sm:$0xff] %vm614_vm3, %v4795_v38 }
 0x47c   : > { %6392 = vmatmul.mubr.msk.f32.gmra.mrb[24].mxu1 %vm1359_vm5, %v8796_v2 }
 0x47d   : > { %6394 = vmatprep.mubr.msk.f32.mxu1 %vm1359_vm5, %v8823_v54  ;;  %v4985_v7 = vpop.permute.xlu0 %4984  ;;  %v5096_v9 = vld [vmem:[#allocation4 + $0x60] sm:$0xff] }
 0x47e   : > { %v4987_v1 = vpop.permute.xlu1 %4986  ;;  %5066 = vst.msk [vmem:[#allocation4 + $0x70] sm:$0xff] %vm807_vm4, %v4985_v7  ;;  %v5097_v5 = vld [vmem:[#allocation4 + $0x68] sm:$0xff] }
 0x47f   : > { %5067 = vst.msk [vmem:[#allocation4 + $0x78] sm:$0xff] %vm807_vm4, %v4987_v1 }
 0x480   : > { %6395 = vmatmul.mubr.msk.f32.gmra.mrb[26].mxu1 %vm1359_vm5, %v8828_v30  ;;  %v5084_v30 = vld [vmem:[#allocation4] sm:$0xff] }
 0x481   : > { %6397 = vmatprep.mubr.msk.f32.mxu1 %vm1359_vm5, %v8860_v3  ;;  %v4797_v62 = vpop.permute.xlu0 %4796 }
 0x482   : > { %v4799_v21 = vpop.permute.xlu1 %4798  ;;  %4876 = vst.msk [vmem:[#allocation4 + $0x80] sm:$0xff] %vm614_vm3, %v4797_v62  ;;  %v9123_v62 = vld [vmem:[%s9305_s5] ss:$0 sm:$0xff] }
 0x483   : > { %4877 = vst.msk [vmem:[#allocation4 + $0x88] sm:$0xff] %vm614_vm3, %v4799_v21 }
 0x484   : > { %6398 = vmatmul.mubr.msk.f32.gmra.mrb[28].mxu1 %vm1359_vm5, %v8865_v4  ;;  %v5085_v4 = vld [vmem:[#allocation4 + $0x8] sm:$0xff] }
 0x485   : > { %6400 = vmatprep.mubr.msk.f32.mxu1 %vm1359_vm5, %v8898_v35  ;;  %v4989_v2 = vpop.permute.xlu0 %4988  ;;  %v5086_v35 = vld [vmem:[#allocation4 + $0x10] sm:$0xff] }
 0x486   : > { %v4991_v54 = vpop.permute.xlu1 %4990  ;;  %5068 = vst.msk [vmem:[#allocation4 + $0x80] sm:$0xff] %vm807_vm4, %v4989_v2  ;;  %v5098_v39 = vld [vmem:[#allocation4 + $0x70] sm:$0xff]  ;;  %v5099_v10 = vld [vmem:[#allocation4 + $0x78] sm:$0xff]  ;;  %v9128_v2 = vld [vmem:[%s9306_s6] ss:$0 sm:$0xff] }
 0x487   : > { %5069 = vst.msk [vmem:[#allocation4 + $0x88] sm:$0xff] %vm807_vm4, %v4991_v54 }
 0x488   : > { %6401 = vmatmul.mubr.msk.f32.gmra.mrb[30].mxu1 %vm1359_vm5, %v8901_v0  ;;  %v5087_v0 = vld [vmem:[#allocation4 + $0x18] sm:$0xff] }
 0x489   : > { %6409 = vmatprep.mubr.msk.f32.mxu1 %vm1359_vm5, %v5084_v30  ;;  %v4801_v3 = vpop.permute.xlu0 %4800 }
 0x48a   : > { %v4803_v55 = vpop.permute.xlu1 %4802  ;;  %4878 = vst.msk [vmem:[#allocation4 + $0x90] sm:$0xff] %vm614_vm3, %v4801_v3 }
 0x48b   : > { %4879 = vst.msk [vmem:[#allocation4 + $0x98] sm:$0xff] %vm614_vm3, %v4803_v55 }
 0x48c   : > { %6410 = vmatmul.mubr.msk.f32.vlgmr.msra.gmra.mrb[0].mxu1 %vm1359_vm5, %v5085_v4 }
 0x48d   : > { %6412 = vmatprep.mubr.msk.f32.mxu1 %vm1359_vm5, %v5086_v35  ;;  %v4993_v31 = vpop.permute.xlu0 %4992  ;;  %v5100_v40 = vld [vmem:[#allocation4 + $0x80] sm:$0xff] }
 0x48e   : > { %v4995_v63 = vpop.permute.xlu1 %4994  ;;  %5070 = vst.msk [vmem:[#allocation4 + $0x90] sm:$0xff] %vm807_vm4, %v4993_v31  ;;  %v5101_v16 = vld [vmem:[#allocation4 + $0x88] sm:$0xff] }
 0x48f   : > { %5071 = vst.msk [vmem:[#allocation4 + $0x98] sm:$0xff] %vm807_vm4, %v4995_v63  ;;  %v9406_v31 = vld [vmem:[#allocation6_spill] sm:$0xff] }
 0x490   : > { %6413 = vmatmul.mubr.msk.f32.gmra.mrb[2].mxu1 %vm1359_vm5, %v5087_v0 }
 0x491   : > { %6415 = vmatprep.mubr.msk.f32.mxu1 %vm1359_vm5, %v5088_v6  ;;  %v4805_v57 = vpop.permute.xlu0 %4804 }
 0x492   : > { %v4807_v12 = vpop.permute.xlu1 %4806  ;;  %4880 = vst.msk [vmem:[#allocation4 + $0xa0] sm:$0xff] %vm614_vm3, %v4805_v57  ;;  %v9407_v57 = vld [vmem:[#allocation5_spill] sm:$0xff] }
 0x493   : > { %4881 = vst.msk [vmem:[#allocation4 + $0xa8] sm:$0xff] %vm614_vm3, %v4807_v12 }
 0x494   : > { %6416 = vmatmul.mubr.msk.f32.gmra.mrb[4].mxu1 %vm1359_vm5, %v5089_v50 }
 0x495   : > { %6418 = vmatprep.mubr.msk.f32.mxu1 %vm1359_vm5, %v5090_v44  ;;  %v4997_v56 = vpop.permute.xlu0 %4996  ;;  %v5102_v19 = vld [vmem:[#allocation4 + $0x90] sm:$0xff] }
 0x496   : > { %v4999_v11 = vpop.permute.xlu1 %4998  ;;  %5072 = vst.msk [vmem:[#allocation4 + $0xa0] sm:$0xff] %vm807_vm4, %v4997_v56  ;;  %v5103_v26 = vld [vmem:[#allocation4 + $0x98] sm:$0xff] }
 0x497   : > { %5073 = vst.msk [vmem:[#allocation4 + $0xa8] sm:$0xff] %vm807_vm4, %v4999_v11 }
 0x498   : > { %6419 = vmatmul.mubr.msk.f32.gmra.mrb[6].mxu1 %vm1359_vm5, %v5091_v36 }
 0x499   : > { %6421 = vmatprep.mubr.msk.f32.mxu1 %vm1359_vm5, %v5092_v24  ;;  %v4809_v48 = vpop.permute.xlu0 %4808 }
 0x49a   : > { %v4811_v46 = vpop.permute.xlu1 %4810  ;;  %4882 = vst.msk [vmem:[#allocation4 + $0xb0] sm:$0xff] %vm614_vm3, %v4809_v48  ;;  %v9408_v48 = vld [vmem:[#allocation8_spill] sm:$0xff] }
 0x49b   : > { %4883 = vst.msk [vmem:[#allocation4 + $0xb8] sm:$0xff] %vm614_vm3, %v4811_v46 }
 0x49c   : > { %6422 = vmatmul.mubr.msk.f32.gmra.mrb[8].mxu1 %vm1359_vm5, %v5093_v23 }
 0x49d   : > { %6424 = vmatprep.mubr.msk.f32.mxu1 %vm1359_vm5, %v5094_v59  ;;  %v5001_v32 = vpop.permute.xlu0 %5000  ;;  %v5104_v42 = vld [vmem:[#allocation4 + $0xa0] sm:$0xff] }
 0x49e   : > { %v5003_v51 = vpop.permute.xlu1 %5002  ;;  %5074 = vst.msk [vmem:[#allocation4 + $0xb0] sm:$0xff] %vm807_vm4, %v5001_v32  ;;  %v5105_v17 = vld [vmem:[#allocation4 + $0xa8] sm:$0xff]  ;;  %v9409_v32 = vld [vmem:[#allocation7_spill] sm:$0xff] }
 0x49f   : > { %5075 = vst.msk [vmem:[#allocation4 + $0xb8] sm:$0xff] %vm807_vm4, %v5003_v51 }
 0x4a0   : > { %6425 = vmatmul.mubr.msk.f32.gmra.mrb[10].mxu1 %vm1359_vm5, %v5095_v52 }
 0x4a1   : > { %6427 = vmatprep.mubr.msk.f32.mxu1 %vm1359_vm5, %v5096_v9  ;;  %v4813_v60 = vpop.permute.xlu0 %4812 }
 0x4a2   : > { %v4815_v41 = vpop.permute.xlu1 %4814  ;;  %4884 = vst.msk [vmem:[#allocation4 + $0xc0] sm:$0xff] %vm614_vm3, %v4813_v60 }
 0x4a3   : > { %4885 = vst.msk [vmem:[#allocation4 + $0xc8] sm:$0xff] %vm614_vm3, %v4815_v41 }
 0x4a4   : > { %6428 = vmatmul.mubr.msk.f32.gmra.mrb[12].mxu1 %vm1359_vm5, %v5097_v5 }
 0x4a5   : > { %6430 = vmatprep.mubr.msk.f32.mxu1 %vm1359_vm5, %v5098_v39  ;;  %v5005_v27 = vpop.permute.xlu0 %5004  ;;  %v5106_v58 = vld [vmem:[#allocation4 + $0xb0] sm:$0xff] }
 0x4a6   : > { %v5007_v25 = vpop.permute.xlu1 %5006  ;;  %5076 = vst.msk [vmem:[#allocation4 + $0xc0] sm:$0xff] %vm807_vm4, %v5005_v27  ;;  %v5107_v47 = vld [vmem:[#allocation4 + $0xb8] sm:$0xff]  ;;  %v9410_v27 = vld [vmem:[#allocation10_spill] sm:$0xff] }
 0x4a7   : > { %5077 = vst.msk [vmem:[#allocation4 + $0xc8] sm:$0xff] %vm807_vm4, %v5007_v25 }
 0x4a8   : > { %6431 = vmatmul.mubr.msk.f32.gmra.mrb[14].mxu1 %vm1359_vm5, %v5099_v10 }
 0x4a9   : > { %6433 = vmatprep.mubr.msk.f32.mxu1 %vm1359_vm5, %v5100_v40  ;;  %v4817_v53 = vpop.permute.xlu0 %4816 }
 0x4aa   : > { %v4819_v18 = vpop.permute.xlu1 %4818  ;;  %4886 = vst.msk [vmem:[#allocation4 + $0xd0] sm:$0xff] %vm614_vm3, %v4817_v53  ;;  %v9411_v53 = vld [vmem:[#allocation9_spill] sm:$0xff] }
 0x4ab   : > { %4887 = vst.msk [vmem:[#allocation4 + $0xd8] sm:$0xff] %vm614_vm3, %v4819_v18 }
 0x4ac   : > { %6434 = vmatmul.mubr.msk.f32.gmra.mrb[16].mxu1 %vm1359_vm5, %v5101_v16 }
 0x4ad   : > { %6436 = vmatprep.mubr.msk.f32.mxu1 %vm1359_vm5, %v5102_v19  ;;  %v5009_v61 = vpop.permute.xlu0 %5008  ;;  %v5108_v34 = vld [vmem:[#allocation4 + $0xc0] sm:$0xff] }
 0x4ae   : > { %v5011_v45 = vpop.permute.xlu1 %5010  ;;  %5078 = vst.msk [vmem:[#allocation4 + $0xd0] sm:$0xff] %vm807_vm4, %v5009_v61  ;;  %v5109_v15 = vld [vmem:[#allocation4 + $0xc8] sm:$0xff] }
 0x4af   : > { %5079 = vst.msk [vmem:[#allocation4 + $0xd8] sm:$0xff] %vm807_vm4, %v5011_v45 }
 0x4b0   : > { %6437 = vmatmul.mubr.msk.f32.gmra.mrb[18].mxu1 %vm1359_vm5, %v5103_v26 }
 0x4b1   : > { %6439 = vmatprep.mubr.msk.f32.mxu1 %vm1359_vm5, %v5104_v42  ;;  %v4821_v13 = vpop.permute.xlu0 %4820 }
 0x4b2   : > { %v4823_v37 = vpop.permute.xlu1 %4822  ;;  %4888 = vst.msk [vmem:[#allocation4 + $0xe0] sm:$0xff] %vm614_vm3, %v4821_v13  ;;  %v9412_v13 = vld [vmem:[#allocation12_spill] sm:$0xff] }
 0x4b3   : > { %4889 = vst.msk [vmem:[#allocation4 + $0xe8] sm:$0xff] %vm614_vm3, %v4823_v37 }
 0x4b4   : > { %6440 = vmatmul.mubr.msk.f32.gmra.mrb[20].mxu1 %vm1359_vm5, %v5105_v17 }
 0x4b5   : > { %6442 = vmatprep.mubr.msk.f32.mxu1 %vm1359_vm5, %v5106_v58  ;;  %v5013_v8 = vpop.permute.xlu0 %5012  ;;  %v5110_v28 = vld [vmem:[#allocation4 + $0xd0] sm:$0xff] }
 0x4b6   : > { %v5015_v29 = vpop.permute.xlu1 %5014  ;;  %5080 = vst.msk [vmem:[#allocation4 + $0xe0] sm:$0xff] %vm807_vm4, %v5013_v8  ;;  %v5111_v20 = vld [vmem:[#allocation4 + $0xd8] sm:$0xff]  ;;  %v9413_v8 = vld [vmem:[#allocation11_spill] sm:$0xff] }
 0x4b7   : > { %5081 = vst.msk [vmem:[#allocation4 + $0xe8] sm:$0xff] %vm807_vm4, %v5015_v29 }
 0x4b8   : > { %6443 = vmatmul.mubr.msk.f32.gmra.mrb[22].mxu1 %vm1359_vm5, %v5107_v47 }
 0x4b9   : > { %6445 = vmatprep.mubr.msk.f32.mxu1 %vm1359_vm5, %v5108_v34  ;;  %v4825_v22 = vpop.permute.xlu0 %4824 }
 0x4ba   : > { %4890 = vst.msk [vmem:[#allocation4 + $0xf0] sm:$0xff] %vm614_vm3, %v4825_v22  ;;  %v4827_v14 = vpop.permute.xlu1 %4826 }
 0x4bb   : > { %4891 = vst.msk [vmem:[#allocation4 + $0xf8] sm:$0xff] %vm614_vm3, %v4827_v14 }
 0x4bc   : > { %6446 = vmatmul.mubr.msk.f32.gmra.mrb[24].mxu1 %vm1359_vm5, %v5109_v15 }
 0x4bd   : > { %6448 = vmatprep.mubr.msk.f32.mxu1 %vm1359_vm5, %v5110_v28  ;;  %v5017_v43 = vpop.permute.xlu0 %5016  ;;  %v5112_v33 = vld [vmem:[#allocation4 + $0xe0] sm:$0xff] }
 0x4be   : > { %5082 = vst.msk [vmem:[#allocation4 + $0xf0] sm:$0xff] %vm807_vm4, %v5017_v43  ;;  %v5019_v49 = vpop.permute.xlu1 %5018  ;;  %v5113_v38 = vld [vmem:[#allocation4 + $0xe8] sm:$0xff] }
 0x4bf   : > { %5083 = vst.msk [vmem:[#allocation4 + $0xf8] sm:$0xff] %vm807_vm4, %v5019_v49  ;;  %v9414_v43 = vld [vmem:[#allocation14_spill] sm:$0xff] }
 0x4c0   : > { %6449 = vmatmul.mubr.msk.f32.gmra.mrb[26].mxu1 %vm1359_vm5, %v5111_v20 }
 0x4c1   : > { %6451 = vmatprep.mubr.msk.f32.mxu1 %vm1359_vm5, %v5112_v33 }
 0x4c4   : > { %6452 = vmatmul.mubr.msk.f32.gmra.mrb[28].mxu1 %vm1359_vm5, %v5113_v38  ;;  %v9415_v38 = vld [vmem:[#allocation13_spill] sm:$0xff] }
 0x4c5   : > { %v5114_v7 = vld [vmem:[#allocation4 + $0xf0] sm:$0xff] }
 0x4c6   : > { %6454 = vmatprep.mubr.msk.f32.mxu1 %vm1359_vm5, %v5114_v7  ;;  %v5115_v1 = vld [vmem:[#allocation4 + $0xf8] sm:$0xff] }
 0x4c8   : > { %6455 = vmatmul.mubr.msk.f32.gmra.mrb[30].mxu1 %vm1359_vm5, %v5115_v1 }
 0x55f   : > { %v6411_v21 = vpop.f32.mrb[0].mxu1 }
 0x560   : > { %v5481_v54 = vmul.f32 %v6411_v21, %v9123_v62  ;;  %v5282_v30 = vpop.f32.mrb[1].mxu1 }
 0x561   : > { %v5480_v3 = vmul.f32 %v9123_v62, %v5282_v30 }
 0x562   : > { %v5520_v55 = vadd.f32 %v9128_v2, %v5481_v54 }
 0x563   : > { %v5519_v4 = vadd.f32 %v9128_v2, %v5480_v3  ;;  %v6414_v35 = vpop.f32.mrb[2].mxu1 }
 0x564   : > { %v5552_v63 = vadd.f32 %v5520_v55, %v9406_v31  ;;  %v5483_v0 = vmul.f32 %v6414_v35, %v9123_v62  ;;  %v5292_v6 = vpop.f32.mrb[3].mxu1 }
 0x565   : > { %v5551_v12 = vadd.f32 %v5519_v4, %v9407_v57  ;;  %v5482_v50 = vmul.f32 %v9123_v62, %v5292_v6  ;;  %v9416_v4 = vld [vmem:[#allocation16_spill] sm:$0xff] }
 0x566   : > { %v5584_v44 = vmax.f32 %v5552_v63, 0.0  ;;  %v5522_v56 = vadd.f32 %v9128_v2, %v5483_v0  ;;  %v9417_v0 = vld [vmem:[#allocation15_spill] sm:$0xff] }
 0x567   : > { %v5583_v11 = vmax.f32 %v5551_v12, 0.0  ;;  %v5521_v36 = vadd.f32 %v9128_v2, %v5482_v50  ;;  %v6417_v24 = vpop.f32.mrb[4].mxu1 }
 0x568   : > { %5616 = vst.msk [vmem:[%s9141_s17 + $0x8] sm:$0xff] %vm311_vm0, %v5584_v44  ;;  %v5554_v46 = vadd.f32 %v5522_v56, %v9408_v48  ;;  %v5485_v23 = vmul.f32 %v6417_v24, %v9123_v62  ;;  %v5302_v59 = vpop.f32.mrb[5].mxu1 }
 0x569   : > { %5615 = vst.msk [vmem:[%s9141_s17] sm:$0xff] %vm311_vm0, %v5583_v11  ;;  %v5553_v51 = vadd.f32 %v5521_v36, %v9409_v32  ;;  %v5484_v52 = vmul.f32 %v9123_v62, %v5302_v59  ;;  %v9418_v36 = vld [vmem:[#allocation18_spill] sm:$0xff] }
 0x56a   : > { %v5586_v9 = vmax.f32 %v5554_v46, 0.0  ;;  %v5524_v60 = vadd.f32 %v9128_v2, %v5485_v23  ;;  %v9419_v23 = vld [vmem:[#allocation17_spill] sm:$0xff] }
 0x56b   : > { %v5585_v41 = vmax.f32 %v5553_v51, 0.0  ;;  %v5523_v5 = vadd.f32 %v9128_v2, %v5484_v52  ;;  %v6420_v39 = vpop.f32.mrb[6].mxu1 }
 0x56c   : > { %5618 = vst.msk [vmem:[%s9141_s17 + $0x18] sm:$0xff] %vm311_vm0, %v5586_v9  ;;  %v5556_v25 = vadd.f32 %v5524_v60, %v9410_v27  ;;  %v5487_v10 = vmul.f32 %v6420_v39, %v9123_v62  ;;  %v5312_v40 = vpop.f32.mrb[7].mxu1 }
 0x56d   : > { %5617 = vst.msk [vmem:[%s9141_s17 + $0x10] sm:$0xff] %vm311_vm0, %v5585_v41  ;;  %v5555_v18 = vadd.f32 %v5523_v5, %v9411_v53  ;;  %v5486_v16 = vmul.f32 %v9123_v62, %v5312_v40  ;;  %v9420_v5 = vld [vmem:[#allocation20_spill] sm:$0xff] }
 0x56e   : > { %v5588_v19 = vmax.f32 %v5556_v25, 0.0  ;;  %v5526_v61 = vadd.f32 %v9128_v2, %v5487_v10  ;;  %v9421_v10 = vld [vmem:[#allocation19_spill] sm:$0xff] }
 0x56f   : > { %v5587_v45 = vmax.f32 %v5555_v18, 0.0  ;;  %v5525_v26 = vadd.f32 %v9128_v2, %v5486_v16  ;;  %v6423_v42 = vpop.f32.mrb[8].mxu1 }
 0x570   : > { %5620 = vst.msk [vmem:[%s9141_s17 + $0x28] sm:$0xff] %vm311_vm0, %v5588_v19  ;;  %v5558_v37 = vadd.f32 %v5526_v61, %v9412_v13  ;;  %v5489_v17 = vmul.f32 %v6423_v42, %v9123_v62  ;;  %v5322_v58 = vpop.f32.mrb[9].mxu1 }
 0x571   : > { %5619 = vst.msk [vmem:[%s9141_s17 + $0x20] sm:$0xff] %vm311_vm0, %v5587_v45  ;;  %v5557_v29 = vadd.f32 %v5525_v26, %v9413_v8  ;;  %v5488_v47 = vmul.f32 %v9123_v62, %v5322_v58  ;;  %v9422_v26 = vld [vmem:[#allocation22_spill] sm:$0xff] }
 0x572   : > { %v5590_v34 = vmax.f32 %v5558_v37, 0.0  ;;  %v5528_v22 = vadd.f32 %v9128_v2, %v5489_v17  ;;  %v9423_v17 = vld [vmem:[#allocation21_spill] sm:$0xff] }
 0x573   : > { %v5589_v14 = vmax.f32 %v5557_v29, 0.0  ;;  %v5527_v15 = vadd.f32 %v9128_v2, %v5488_v47  ;;  %v6426_v28 = vpop.f32.mrb[10].mxu1 }
 0x574   : > { %5622 = vst.msk [vmem:[%s9141_s17 + $0x38] sm:$0xff] %vm311_vm0, %v5590_v34  ;;  %v5560_v49 = vadd.f32 %v5528_v22, %v9414_v43  ;;  %v5491_v20 = vmul.f32 %v6426_v28, %v9123_v62  ;;  %v5332_v33 = vpop.f32.mrb[11].mxu1 }
 0x575   : > { %5621 = vst.msk [vmem:[%s9141_s17 + $0x30] sm:$0xff] %vm311_vm0, %v5589_v14  ;;  %v5559_v7 = vadd.f32 %v5527_v15, %v9415_v38  ;;  %v5490_v1 = vmul.f32 %v9123_v62, %v5332_v33  ;;  %v9424_v15 = vld [vmem:[#allocation24_spill] sm:$0xff] }
 0x576   : > { %v5592_v21 = vmax.f32 %v5560_v49, 0.0  ;;  %v5530_v54 = vadd.f32 %v9128_v2, %v5491_v20  ;;  %v9425_v20 = vld [vmem:[#allocation23_spill] sm:$0xff] }
 0x577   : > { %v5591_v30 = vmax.f32 %v5559_v7, 0.0  ;;  %v5529_v3 = vadd.f32 %v9128_v2, %v5490_v1  ;;  %v6429_v55 = vpop.f32.mrb[12].mxu1 }
 0x578   : > { %5624 = vst.msk [vmem:[%s9141_s17 + $0x48] sm:$0xff] %vm311_vm0, %v5592_v21  ;;  %v5562_v35 = vadd.f32 %v5530_v54, %v9416_v4  ;;  %v5493_v31 = vmul.f32 %v6429_v55, %v9123_v62  ;;  %v5342_v63 = vpop.f32.mrb[13].mxu1 }
 0x579   : > { %5623 = vst.msk [vmem:[%s9141_s17 + $0x40] sm:$0xff] %vm311_vm0, %v5591_v30  ;;  %v5561_v6 = vadd.f32 %v5529_v3, %v9417_v0  ;;  %v5492_v57 = vmul.f32 %v9123_v62, %v5342_v63  ;;  %v9426_v3 = vld [vmem:[#allocation26_spill] sm:$0xff] }
 0x57a   : > { %v5594_v12 = vmax.f32 %v5562_v35, 0.0  ;;  %v5532_v50 = vadd.f32 %v9128_v2, %v5493_v31  ;;  %v9427_v31 = vld [vmem:[#allocation25_spill] sm:$0xff] }
 0x57b   : > { %v5593_v44 = vmax.f32 %v5561_v6, 0.0  ;;  %v5531_v56 = vadd.f32 %v9128_v2, %v5492_v57  ;;  %v6432_v11 = vpop.f32.mrb[14].mxu1 }
 0x57c   : > { %5626 = vst.msk [vmem:[%s9141_s17 + $0x58] sm:$0xff] %vm311_vm0, %v5594_v12  ;;  %v5564_v24 = vadd.f32 %v5532_v50, %v9418_v36  ;;  %v5495_v48 = vmul.f32 %v6432_v11, %v9123_v62  ;;  %v5352_v46 = vpop.f32.mrb[15].mxu1 }
 0x57d   : > { %5625 = vst.msk [vmem:[%s9141_s17 + $0x50] sm:$0xff] %vm311_vm0, %v5593_v44  ;;  %v5563_v59 = vadd.f32 %v5531_v56, %v9419_v23  ;;  %v5494_v32 = vmul.f32 %v9123_v62, %v5352_v46  ;;  %v9428_v56 = vld [vmem:[#allocation28_spill] sm:$0xff] }
 0x57e   : > { %v5596_v51 = vmax.f32 %v5564_v24, 0.0  ;;  %v5534_v52 = vadd.f32 %v9128_v2, %v5495_v48  ;;  %v9429_v48 = vld [vmem:[#allocation27_spill] sm:$0xff] }
 0x57f   : > { %v5595_v9 = vmax.f32 %v5563_v59, 0.0  ;;  %v5533_v60 = vadd.f32 %v9128_v2, %v5494_v32  ;;  %v6435_v41 = vpop.f32.mrb[16].mxu1 }
 0x580   : > { %5628 = vst.msk [vmem:[%s9141_s17 + $0x68] sm:$0xff] %vm311_vm0, %v5596_v51  ;;  %v5566_v39 = vadd.f32 %v5534_v52, %v9420_v5  ;;  %v5497_v27 = vmul.f32 %v6435_v41, %v9123_v62  ;;  %v5362_v25 = vpop.f32.mrb[17].mxu1 }
 0x581   : > { %5627 = vst.msk [vmem:[%s9141_s17 + $0x60] sm:$0xff] %vm311_vm0, %v5595_v9  ;;  %v5565_v40 = vadd.f32 %v5533_v60, %v9421_v10  ;;  %v5496_v53 = vmul.f32 %v9123_v62, %v5362_v25  ;;  %v9430_v60 = vld [vmem:[#allocation30_spill] sm:$0xff] }
 0x582   : > { %v5598_v18 = vmax.f32 %v5566_v39, 0.0  ;;  %v5536_v16 = vadd.f32 %v9128_v2, %v5497_v27  ;;  %v9431_v27 = vld [vmem:[#allocation29_spill] sm:$0xff] }
 0x583   : > { %v5597_v19 = vmax.f32 %v5565_v40, 0.0  ;;  %v5535_v61 = vadd.f32 %v9128_v2, %v5496_v53  ;;  %v6438_v45 = vpop.f32.mrb[18].mxu1 }
 0x584   : > { %5630 = vst.msk [vmem:[%s9141_s17 + $0x78] sm:$0xff] %vm311_vm0, %v5598_v18  ;;  %v5568_v42 = vadd.f32 %v5536_v16, %v9422_v26  ;;  %v5499_v13 = vmul.f32 %v6438_v45, %v9123_v62  ;;  %v5372_v37 = vpop.f32.mrb[19].mxu1 }
 0x585   : > { %5629 = vst.msk [vmem:[%s9141_s17 + $0x70] sm:$0xff] %vm311_vm0, %v5597_v19  ;;  %v5567_v58 = vadd.f32 %v5535_v61, %v9423_v17  ;;  %v5498_v8 = vmul.f32 %v9123_v62, %v5372_v37  ;;  %v9432_v61 = vld [vmem:[#allocation32_spill] sm:$0xff] }
 0x586   : > { %v5600_v29 = vmax.f32 %v5568_v42, 0.0  ;;  %v5538_v47 = vadd.f32 %v9128_v2, %v5499_v13  ;;  %v9433_v13 = vld [vmem:[#allocation31_spill] sm:$0xff] }
 0x587   : > { %v5599_v34 = vmax.f32 %v5567_v58, 0.0  ;;  %v5537_v22 = vadd.f32 %v9128_v2, %v5498_v8  ;;  %v6441_v14 = vpop.f32.mrb[20].mxu1 }
 0x588   : > { %5632 = vst.msk [vmem:[%s9141_s17 + $0x88] sm:$0xff] %vm311_vm0, %v5600_v29  ;;  %v5570_v28 = vadd.f32 %v5538_v47, %v9424_v15  ;;  %v5501_v43 = vmul.f32 %v6441_v14, %v9123_v62  ;;  %v5382_v49 = vpop.f32.mrb[21].mxu1 }
 0x589   : > { %5631 = vst.msk [vmem:[%s9141_s17 + $0x80] sm:$0xff] %vm311_vm0, %v5599_v34  ;;  %v5569_v33 = vadd.f32 %v5537_v22, %v9425_v20  ;;  %v5500_v38 = vmul.f32 %v9123_v62, %v5382_v49  ;;  %v9434_v22 = vld [vmem:[#allocation34_spill] sm:$0xff] }
 0x58a   : > { %v5602_v7 = vmax.f32 %v5570_v28, 0.0  ;;  %v5540_v1 = vadd.f32 %v9128_v2, %v5501_v43  ;;  %v9435_v43 = vld [vmem:[#allocation33_spill] sm:$0xff] }
 0x58b   : > { %v5601_v21 = vmax.f32 %v5569_v33, 0.0  ;;  %v5539_v54 = vadd.f32 %v9128_v2, %v5500_v38  ;;  %v6444_v30 = vpop.f32.mrb[22].mxu1 }
 0x58c   : > { %5634 = vst.msk [vmem:[%s9141_s17 + $0x98] sm:$0xff] %vm311_vm0, %v5602_v7  ;;  %v5572_v55 = vadd.f32 %v5540_v1, %v9426_v3  ;;  %v5503_v4 = vmul.f32 %v6444_v30, %v9123_v62  ;;  %v5392_v35 = vpop.f32.mrb[23].mxu1  ;;  %v9437_v30 = vld [vmem:[#allocation35_spill] sm:$0xff] }
 0x58d   : > { %5633 = vst.msk [vmem:[%s9141_s17 + $0x90] sm:$0xff] %vm311_vm0, %v5601_v21  ;;  %v5571_v63 = vadd.f32 %v5539_v54, %v9427_v31  ;;  %v5502_v0 = vmul.f32 %v9123_v62, %v5392_v35  ;;  %v9436_v21 = vld [vmem:[#allocation36_spill] sm:$0xff] }
 0x58e   : > { %v5604_v6 = vmax.f32 %v5572_v55, 0.0  ;;  %v5542_v57 = vadd.f32 %v9128_v2, %v5503_v4 }
 0x58f   : > { %v5603_v12 = vmax.f32 %v5571_v63, 0.0  ;;  %v5541_v50 = vadd.f32 %v9128_v2, %v5502_v0  ;;  %v6447_v44 = vpop.f32.mrb[24].mxu1 }
 0x590   : > { %5636 = vst.msk [vmem:[%s9141_s17 + $0xa8] sm:$0xff] %vm311_vm0, %v5604_v6  ;;  %v5574_v11 = vadd.f32 %v5542_v57, %v9428_v56  ;;  %v5505_v36 = vmul.f32 %v6447_v44, %v9123_v62  ;;  %v5402_v24 = vpop.f32.mrb[25].mxu1 }
 0x591   : > { %5635 = vst.msk [vmem:[%s9141_s17 + $0xa0] sm:$0xff] %vm311_vm0, %v5603_v12  ;;  %v5573_v46 = vadd.f32 %v5541_v50, %v9429_v48  ;;  %v5504_v23 = vmul.f32 %v9123_v62, %v5402_v24 }
 0x592   : > { %v5606_v59 = vmax.f32 %v5574_v11, 0.0  ;;  %v5544_v32 = vadd.f32 %v9128_v2, %v5505_v36 }
 0x593   : > { %v5605_v51 = vmax.f32 %v5573_v46, 0.0  ;;  %v5543_v52 = vadd.f32 %v9128_v2, %v5504_v23  ;;  %v6450_v9 = vpop.f32.mrb[26].mxu1 }
 0x594   : > { %5638 = vst.msk [vmem:[%s9141_s17 + $0xb8] sm:$0xff] %vm311_vm0, %v5606_v59  ;;  %v5576_v41 = vadd.f32 %v5544_v32, %v9430_v60  ;;  %v5507_v5 = vmul.f32 %v6450_v9, %v9123_v62  ;;  %v5412_v39 = vpop.f32.mrb[27].mxu1 }
 0x595   : > { %5637 = vst.msk [vmem:[%s9141_s17 + $0xb0] sm:$0xff] %vm311_vm0, %v5605_v51  ;;  %v5575_v25 = vadd.f32 %v5543_v52, %v9431_v27  ;;  %v5506_v10 = vmul.f32 %v9123_v62, %v5412_v39 }
 0x596   : > { %v5608_v40 = vmax.f32 %v5576_v41, 0.0  ;;  %v5546_v53 = vadd.f32 %v9128_v2, %v5507_v5 }
 0x597   : > { %v5607_v18 = vmax.f32 %v5575_v25, 0.0  ;;  %v5545_v16 = vadd.f32 %v9128_v2, %v5506_v10  ;;  %v6453_v19 = vpop.f32.mrb[28].mxu1 }
 0x598   : > { %5640 = vst.msk [vmem:[%s9141_s17 + $0xc8] sm:$0xff] %vm311_vm0, %v5608_v40  ;;  %v5578_v45 = vadd.f32 %v5546_v53, %v9432_v61  ;;  %v5509_v26 = vmul.f32 %v6453_v19, %v9123_v62  ;;  %v5422_v42 = vpop.f32.mrb[29].mxu1 }
 0x599   : > { %5639 = vst.msk [vmem:[%s9141_s17 + $0xc0] sm:$0xff] %vm311_vm0, %v5607_v18  ;;  %v5577_v37 = vadd.f32 %v5545_v16, %v9433_v13  ;;  %v5508_v17 = vmul.f32 %v9123_v62, %v5422_v42 }
 0x59a   : > { %v5610_v58 = vmax.f32 %v5578_v45, 0.0  ;;  %v5548_v8 = vadd.f32 %v9128_v2, %v5509_v26 }
 0x59b   : > { %v5609_v29 = vmax.f32 %v5577_v37, 0.0  ;;  %v5547_v47 = vadd.f32 %v9128_v2, %v5508_v17  ;;  %v6456_v34 = vpop.f32.mrb[30].mxu1 }
 0x59c   : > { %5642 = vst.msk [vmem:[%s9141_s17 + $0xd8] sm:$0xff] %vm311_vm0, %v5610_v58  ;;  %v5580_v14 = vadd.f32 %v5548_v8, %v9434_v22  ;;  %v5511_v15 = vmul.f32 %v6456_v34, %v9123_v62  ;;  %v5432_v28 = vpop.f32.mrb[31].mxu1 }
 0x59d   : > { %5641 = vst.msk [vmem:[%s9141_s17 + $0xd0] sm:$0xff] %vm311_vm0, %v5609_v29  ;;  %v5579_v49 = vadd.f32 %v5547_v47, %v9435_v43  ;;  %v5510_v20 = vmul.f32 %v9123_v62, %v5432_v28 }
 0x59e   : > { %v5612_v33 = vmax.f32 %v5580_v14, 0.0  ;;  %v5550_v38 = vadd.f32 %v9128_v2, %v5511_v15 }
 0x59f   : > { %v5611_v7 = vmax.f32 %v5579_v49, 0.0  ;;  %v5549_v1 = vadd.f32 %v9128_v2, %v5510_v20 }
 0x5a0   : > { %5644 = vst.msk [vmem:[%s9141_s17 + $0xe8] sm:$0xff] %vm311_vm0, %v5612_v33  ;;  %v5582_v54 = vadd.f32 %v5550_v38, %v9436_v21 }
 0x5a1   : > { %5643 = vst.msk [vmem:[%s9141_s17 + $0xe0] sm:$0xff] %vm311_vm0, %v5611_v7  ;;  %v5581_v3 = vadd.f32 %v5549_v1, %v9437_v30 }
 0x5a2   : > { %v5614_v55 = vmax.f32 %v5582_v54, 0.0 }
 0x5a3   : > { %v5613_v4 = vmax.f32 %v5581_v3, 0.0 }
 0x5a4   : > { %5646 = vst.msk [vmem:[%s9141_s17 + $0xf8] sm:$0xff] %vm311_vm0, %v5614_v55 }
 0x5a5   : > { %5645 = vst.msk [vmem:[%s9141_s17 + $0xf0] sm:$0xff] %vm311_vm0, %v5613_v4 }
 0x5a6 PF: > { %s17_s24 = sadd.s32 1, %s6626_s24  }
 0x5a7   : > { %p14_p4 = scmp.ge.s32.totalorder %s17_s24, 4  }
 0x5a9   :  { %16 = sbr.rel (!%p14_p4) target bundleno = 1 (0x1), region = 88 }

</bundles_post_ra>
